<compile_context>
chip_gen: v7x
topology: tpu7x:2x2x1
jax: 0.10.0
libtpu: 0.0.40
codegen_flags: <defaults>
</compile_context>

<pallas_src>
import jax
import jax.numpy as jnp
import numpy as np
from jax.experimental import pallas as pl
from jax.experimental.pallas import tpu as pltpu  # noqa: F401  (TPU backend)

jax.config.update("jax_default_matmul_precision", "highest")

# ----------------------------- model dims ---------------------------------
B, H, W, C_IN = 2, 16, 16, 4     # batch, image height/width, image channels
S = 8                            # caption sequence length
D = 32                           # hidden size (stand-in for 768)
V = 128                          # vocab size (lane-dense stand-in for 10000)
KH = KW = 3                      # conv kernel
HW = H * W
PATCH = KH * KW * C_IN           # im2col row width = 36


# --------------------- fused forward kernel (single call) ------------------
def fused_kernel(patch_ref, pool_ref, wconv_ref, bconv_ref,
                 emb_ref, wenc_ref, benc_ref,
                 wih_ref, whh_ref, bih_ref, bhh_ref,
                 wcap_ref, bcap_ref, o_ref):
    f32 = jnp.float32

    # ---- vision backbone: 3x3 SAME conv as one im2col matmul + ReLU,
    #      then global-average-pool as one MXU matmul with a pooling matrix.
    conv = jnp.dot(patch_ref[...], wconv_ref[...],
                   preferred_element_type=f32)                       # (B*HW, D)
    conv = jnp.maximum(conv + bconv_ref[...], 0.0)
    img_feat = jnp.dot(pool_ref[...], conv,
                       preferred_element_type=f32)                   # (B, D)

    # ---- text encoder surrogate: tanh(Linear) over all tokens at once.
    #      emb_ref is TIME-major flat: row = t*B + b.
    cap = jnp.tanh(jnp.dot(emb_ref[...], wenc_ref[...],
                           preferred_element_type=f32) + benc_ref[...])  # (S*B, D)

    # ---- GRU input projection hoisted out of the recurrence.
    # combined = cap + broadcast(img_feat)  =>  combined @ Wih = cap@Wih + img@Wih
    gi_cap = jnp.dot(cap, wih_ref[...],
                     preferred_element_type=f32) + bih_ref[...]      # (S*B, 3D)
    gi_img = jnp.dot(img_feat, wih_ref[...],
                     preferred_element_type=f32)                     # (B, 3D)

    whh = whh_ref[...]                                               # (D, 3D)
    bhh = bhh_ref[...]                                               # (1, 3D)

    h = jnp.zeros((B, D), f32)
    h_steps = []
    for t in range(S):  # static unroll: recurrence state stays in vregs
        gi_t = gi_cap[t * B:(t + 1) * B, :] + gi_img                 # contiguous slice
        gh_t = jnp.dot(h, whh, preferred_element_type=f32) + bhh     # (B, 3D)
        # gate order r | z | n (PyTorch GRU)
        r = jax.nn.sigmoid(gi_t[:, 0:D] + gh_t[:, 0:D])
        z = jax.nn.sigmoid(gi_t[:, D:2 * D] + gh_t[:, D:2 * D])
        n = jnp.tanh(gi_t[:, 2 * D:3 * D] + r * gh_t[:, 2 * D:3 * D])
        h = (1.0 - z) * n + z * h
        h_steps.append(h)

    # ---- batched fc_caption: assemble H batch-major once and do a single
    #      lane-dense matmul, then B dense (S, 128) tile stores into (B, S, V).
    h_bm = jnp.concatenate(
        [h_steps[t][b:b + 1, :] for b in range(B) for t in range(S)],
        axis=0)                                                      # (B*S, D)
    logits = jnp.dot(h_bm, wcap_ref[...],
                     preferred_element_type=f32) + bcap_ref[...]     # (B*S, V)
    for b in range(B):
        o_ref[b] = logits[b * S:(b + 1) * S, :]


@jax.jit
def video_captioning_forward(images, input_ids, p):
    # --- tiny XLA glue: im2col, pooling matrix, embedding gather (time-major),
    #     GRU gate-weight concatenation ---
    x_pad = jnp.pad(images, ((0, 0), (1, 1), (1, 1), (0, 0)))
    patches = [x_pad[:, kh:kh + H, kw:kw + W, :]
               for kh in range(KH) for kw in range(KW)]
    patches = jnp.stack(patches, axis=-2)                   # (B, H, W, 9, C)
    patches = patches.reshape(B * H * W, PATCH)             # (512, 36)
    w_conv_mat = p["w_conv"].reshape(PATCH, D)               # (36, D)

    # block-diagonal average-pooling matrix: (B, B*HW)
    pool = jnp.repeat(jnp.eye(B, dtype=jnp.float32), HW, axis=1) / float(HW)

    emb = jnp.take(p["embed"], input_ids, axis=0)            # (B, S, D)
    emb_tm = emb.transpose(1, 0, 2).reshape(S * B, D)        # time-major flat

    # concatenate GRU gate weights (r|z|n) along the output dim -> (D, 3D)
    w_ih_cat = jnp.concatenate([p["w_ih"][g] for g in range(3)], axis=1)
    w_hh_cat = jnp.concatenate([p["w_hh"][g] for g in range(3)], axis=1)
    b_ih_cat = p["b_ih"].reshape(1, 3 * D)
    b_hh_cat = p["b_hh"].reshape(1, 3 * D)

    # Everything (<200 KB) fits VMEM on v5e/v6e/v7x -> single grid-less call,
    # all operands placed whole in VMEM (default BlockSpec = full array).
    logits = pl.pallas_call(
        fused_kernel,
        out_shape=jax.ShapeDtypeStruct((B, S, V), jnp.float32),
    )(patches, pool, w_conv_mat, p["b_conv"],
      emb_tm, p["w_enc"], p["b_enc"],
      w_ih_cat, w_hh_cat, b_ih_cat, b_hh_cat,
      p["w_cap"], p["b_cap"])
    return logits                                            # (B, S, V)


# --------------------------- pure-JAX reference ----------------------------
def reference_forward(images, input_ids, p):
    conv = jax.lax.conv_general_dilated(
        images, p["w_conv"], (1, 1), "SAME",
        dimension_numbers=("NHWC", "HWIO", "NHWC"))
    conv = jnp.maximum(conv + p["b_conv"].reshape(1, 1, 1, D), 0.0)
    img_feat = conv.mean(axis=(1, 2))                                 # (B, D)

    emb = jnp.take(p["embed"], input_ids, axis=0)
    cap = jnp.tanh(emb @ p["w_enc"] + p["b_enc"])                     # (B, S, D)

    combined = cap + img_feat[:, None, :]
    h = jnp.zeros((B, D), jnp.float32)
    outs = []
    for t in range(S):
        xt = combined[:, t, :]
        r = jax.nn.sigmoid(xt @ p["w_ih"][0] + p["b_ih"][0]
                           + h @ p["w_hh"][0] + p["b_hh"][0])
        z = jax.nn.sigmoid(xt @ p["w_ih"][1] + p["b_ih"][1]
                           + h @ p["w_hh"][1] + p["b_hh"][1])
        n = jnp.tanh(xt @ p["w_ih"][2] + p["b_ih"][2]
                     + r * (h @ p["w_hh"][2] + p["b_hh"][2]))
        h = (1.0 - z) * n + z * h
        outs.append(h)
    out = jnp.stack(outs, axis=1)                                     # (B, S, D)
    return out @ p["w_cap"] + p["b_cap"]                              # (B, S, V)


# ---------------------------------- main -----------------------------------
if __name__ == "__main__":
    key = jax.random.PRNGKey(0)
    ks = jax.random.split(key, 12)

    def init(k, shape, scale):
        return jax.random.normal(k, shape, jnp.float32) * scale

    params = {
        "w_conv": init(ks[0], (KH, KW, C_IN, D), 0.1),   # HWIO
        "b_conv": init(ks[1], (1, D), 0.1),
        "embed":  init(ks[2], (V, D), 0.1),
        "w_enc":  init(ks[3], (D, D), 0.1),
        "b_enc":  init(ks[4], (1, D), 0.1),
        "w_ih":   init(ks[5], (3, D, D), 0.2),           # gate order r, z, n
        "w_hh":   init(ks[6], (3, D, D), 0.2),
        "b_ih":   init(ks[7], (3, 1, D), 0.1),
        "b_hh":   init(ks[8], (3, 1, D), 0.1),
        "w_cap":  init(ks[9], (D, V), 0.1),
        "b_cap":  init(ks[10], (1, V), 0.1),
    }

    images = jax.random.normal(ks[11], (B, H, W, C_IN), jnp.float32)
    input_ids = jax.random.randint(jax.random.PRNGKey(1), (B, S), 0, V)

    logits = video_captioning_forward(images, input_ids, params)
    logits = jax.block_until_ready(logits)

    ref = reference_forward(images, input_ids, params)
    np.testing.assert_allclose(np.asarray(logits), np.asarray(ref),
                               rtol=2e-5, atol=2e-5)
    assert logits.shape == (B, S, V)
    print("KERNEL_OK")
</pallas_src>

<mosaic_0001>
module attributes {stable_mosaic.version = 11 : i64} {
  func.func @fused_kernel(%arg0: memref<512x36xf32, #tpu.memory_space<vmem>>, %arg1: memref<2x512xf32, #tpu.memory_space<vmem>>, %arg2: memref<36x32xf32, #tpu.memory_space<vmem>>, %arg3: memref<1x32xf32, #tpu.memory_space<vmem>>, %arg4: memref<16x32xf32, #tpu.memory_space<vmem>>, %arg5: memref<32x32xf32, #tpu.memory_space<vmem>>, %arg6: memref<1x32xf32, #tpu.memory_space<vmem>>, %arg7: memref<32x96xf32, #tpu.memory_space<vmem>>, %arg8: memref<32x96xf32, #tpu.memory_space<vmem>>, %arg9: memref<1x96xf32, #tpu.memory_space<vmem>>, %arg10: memref<1x96xf32, #tpu.memory_space<vmem>>, %arg11: memref<32x128xf32, #tpu.memory_space<vmem>>, %arg12: memref<1x128xf32, #tpu.memory_space<vmem>>, %arg13: memref<2x8x128xf32, #tpu.memory_space<vmem>>) attributes {dimension_semantics = [], scalar_prefetch = 0 : i64, scratch_operands = 0 : i64, tpu.core_type = #tpu.core_type<tc>} {
    %c0 = arith.constant 0 : index
    %c0_0 = arith.constant 0 : index
    %0 = vector.load %arg0[%c0, %c0_0] : memref<512x36xf32, #tpu.memory_space<vmem>>, vector<512x36xf32>
    %c0_1 = arith.constant 0 : index
    %c0_2 = arith.constant 0 : index
    %1 = vector.load %arg2[%c0_1, %c0_2] : memref<36x32xf32, #tpu.memory_space<vmem>>, vector<36x32xf32>
    %cst = arith.constant dense<0.000000e+00> : vector<512x32xf32>
    %2 = tpu.matmul %0, %1, %cst {dimension_numbers = #tpu.dot_dimension_numbers<[1], [0], [0], [1], [0, 0, 1, 1], [], []>, precision = #tpu.contract_precision<fp32>} : vector<512x36xf32>, vector<36x32xf32>, vector<512x32xf32> -> vector<512x32xf32>
    %c0_3 = arith.constant 0 : index
    %c0_4 = arith.constant 0 : index
    %3 = vector.load %arg3[%c0_3, %c0_4] : memref<1x32xf32, #tpu.memory_space<vmem>>, vector<1x32xf32>
    %4 = vector.broadcast %3 : vector<1x32xf32> to vector<512x32xf32>
    %5 = arith.addf %2, %4 : vector<512x32xf32>
    %cst_5 = arith.constant 0.000000e+00 : f32
    %6 = vector.broadcast %cst_5 : f32 to vector<512x32xf32>
    %7 = arith.maximumf %5, %6 : vector<512x32xf32>
    %c0_6 = arith.constant 0 : index
    %c0_7 = arith.constant 0 : index
    %8 = vector.load %arg1[%c0_6, %c0_7] : memref<2x512xf32, #tpu.memory_space<vmem>>, vector<2x512xf32>
    %cst_8 = arith.constant dense<0.000000e+00> : vector<2x32xf32>
    %9 = tpu.matmul %8, %7, %cst_8 {dimension_numbers = #tpu.dot_dimension_numbers<[1], [0], [0], [1], [0, 0, 1, 1], [], []>, precision = #tpu.contract_precision<fp32>} : vector<2x512xf32>, vector<512x32xf32>, vector<2x32xf32> -> vector<2x32xf32>
    %c0_9 = arith.constant 0 : index
    %c0_10 = arith.constant 0 : index
    %10 = vector.load %arg4[%c0_9, %c0_10] : memref<16x32xf32, #tpu.memory_space<vmem>>, vector<16x32xf32>
    %c0_11 = arith.constant 0 : index
    %c0_12 = arith.constant 0 : index
    %11 = vector.load %arg5[%c0_11, %c0_12] : memref<32x32xf32, #tpu.memory_space<vmem>>, vector<32x32xf32>
    %cst_13 = arith.constant dense<0.000000e+00> : vector<16x32xf32>
    %12 = tpu.matmul %10, %11, %cst_13 {dimension_numbers = #tpu.dot_dimension_numbers<[1], [0], [0], [1], [0, 0, 1, 1], [], []>, precision = #tpu.contract_precision<fp32>} : vector<16x32xf32>, vector<32x32xf32>, vector<16x32xf32> -> vector<16x32xf32>
    %c0_14 = arith.constant 0 : index
    %c0_15 = arith.constant 0 : index
    %13 = vector.load %arg6[%c0_14, %c0_15] : memref<1x32xf32, #tpu.memory_space<vmem>>, vector<1x32xf32>
    %14 = vector.broadcast %13 : vector<1x32xf32> to vector<16x32xf32>
    %15 = arith.addf %12, %14 : vector<16x32xf32>
    %16 = math.tanh %15 : vector<16x32xf32>
    %c0_16 = arith.constant 0 : index
    %c0_17 = arith.constant 0 : index
    %17 = vector.load %arg7[%c0_16, %c0_17] : memref<32x96xf32, #tpu.memory_space<vmem>>, vector<32x96xf32>
    %cst_18 = arith.constant dense<0.000000e+00> : vector<16x96xf32>
    %18 = tpu.matmul %16, %17, %cst_18 {dimension_numbers = #tpu.dot_dimension_numbers<[1], [0], [0], [1], [0, 0, 1, 1], [], []>, precision = #tpu.contract_precision<fp32>} : vector<16x32xf32>, vector<32x96xf32>, vector<16x96xf32> -> vector<16x96xf32>
    %c0_19 = arith.constant 0 : index
    %c0_20 = arith.constant 0 : index
    %19 = vector.load %arg9[%c0_19, %c0_20] : memref<1x96xf32, #tpu.memory_space<vmem>>, vector<1x96xf32>
    %20 = vector.broadcast %19 : vector<1x96xf32> to vector<16x96xf32>
    %21 = arith.addf %18, %20 : vector<16x96xf32>
    %c0_21 = arith.constant 0 : index
    %c0_22 = arith.constant 0 : index
    %22 = vector.load %arg7[%c0_21, %c0_22] : memref<32x96xf32, #tpu.memory_space<vmem>>, vector<32x96xf32>
    %cst_23 = arith.constant dense<0.000000e+00> : vector<2x96xf32>
    %23 = tpu.matmul %9, %22, %cst_23 {dimension_numbers = #tpu.dot_dimension_numbers<[1], [0], [0], [1], [0, 0, 1, 1], [], []>, precision = #tpu.contract_precision<fp32>} : vector<2x32xf32>, vector<32x96xf32>, vector<2x96xf32> -> vector<2x96xf32>
    %c0_24 = arith.constant 0 : index
    %c0_25 = arith.constant 0 : index
    %24 = vector.load %arg8[%c0_24, %c0_25] : memref<32x96xf32, #tpu.memory_space<vmem>>, vector<32x96xf32>
    %c0_26 = arith.constant 0 : index
    %c0_27 = arith.constant 0 : index
    %25 = vector.load %arg10[%c0_26, %c0_27] : memref<1x96xf32, #tpu.memory_space<vmem>>, vector<1x96xf32>
    %cst_28 = arith.constant 0.000000e+00 : f32
    %26 = vector.broadcast %cst_28 : f32 to vector<2x32xf32>
    %27 = vector.extract_strided_slice %21 {offsets = [0, 0], sizes = [2, 96], strides = [1, 1]} : vector<16x96xf32> to vector<2x96xf32>
    %28 = arith.addf %27, %23 : vector<2x96xf32>
    %cst_29 = arith.constant dense<0.000000e+00> : vector<2x96xf32>
    %29 = tpu.matmul %26, %24, %cst_29 {dimension_numbers = #tpu.dot_dimension_numbers<[1], [0], [0], [1], [0, 0, 1, 1], [], []>, precision = #tpu.contract_precision<fp32>} : vector<2x32xf32>, vector<32x96xf32>, vector<2x96xf32> -> vector<2x96xf32>
    %30 = vector.broadcast %25 : vector<1x96xf32> to vector<2x96xf32>
    %31 = arith.addf %29, %30 : vector<2x96xf32>
    %32 = vector.extract_strided_slice %28 {offsets = [0, 0], sizes = [2, 32], strides = [1, 1]} : vector<2x96xf32> to vector<2x32xf32>
    %33 = vector.extract_strided_slice %31 {offsets = [0, 0], sizes = [2, 32], strides = [1, 1]} : vector<2x96xf32> to vector<2x32xf32>
    %34 = arith.addf %32, %33 : vector<2x32xf32>
    %35 = arith.negf %34 : vector<2x32xf32>
    %36 = math.exp %35 : vector<2x32xf32>
    %cst_30 = arith.constant 1.000000e+00 : f32
    %37 = vector.broadcast %cst_30 : f32 to vector<2x32xf32>
    %38 = arith.addf %37, %36 : vector<2x32xf32>
    %39 = arith.divf %37, %38 : vector<2x32xf32>
    %40 = vector.extract_strided_slice %28 {offsets = [0, 32], sizes = [2, 32], strides = [1, 1]} : vector<2x96xf32> to vector<2x32xf32>
    %41 = vector.extract_strided_slice %31 {offsets = [0, 32], sizes = [2, 32], strides = [1, 1]} : vector<2x96xf32> to vector<2x32xf32>
    %42 = arith.addf %40, %41 : vector<2x32xf32>
    %43 = arith.negf %42 : vector<2x32xf32>
    %44 = math.exp %43 : vector<2x32xf32>
    %cst_31 = arith.constant 1.000000e+00 : f32
    %45 = vector.broadcast %cst_31 : f32 to vector<2x32xf32>
    %46 = arith.addf %45, %44 : vector<2x32xf32>
    %47 = arith.divf %45, %46 : vector<2x32xf32>
    %48 = vector.extract_strided_slice %28 {offsets = [0, 64], sizes = [2, 32], strides = [1, 1]} : vector<2x96xf32> to vector<2x32xf32>
    %49 = vector.extract_strided_slice %31 {offsets = [0, 64], sizes = [2, 32], strides = [1, 1]} : vector<2x96xf32> to vector<2x32xf32>
    %50 = arith.mulf %39, %49 : vector<2x32xf32>
    %51 = arith.addf %48, %50 : vector<2x32xf32>
    %52 = math.tanh %51 : vector<2x32xf32>
    %cst_32 = arith.constant 1.000000e+00 : f32
    %53 = vector.broadcast %cst_32 : f32 to vector<2x32xf32>
    %54 = arith.subf %53, %47 : vector<2x32xf32>
    %55 = arith.mulf %54, %52 : vector<2x32xf32>
    %56 = arith.mulf %47, %26 : vector<2x32xf32>
    %57 = arith.addf %55, %56 : vector<2x32xf32>
    %58 = vector.extract_strided_slice %21 {offsets = [2, 0], sizes = [2, 96], strides = [1, 1]} : vector<16x96xf32> to vector<2x96xf32>
    %59 = arith.addf %58, %23 : vector<2x96xf32>
    %cst_33 = arith.constant dense<0.000000e+00> : vector<2x96xf32>
    %60 = tpu.matmul %57, %24, %cst_33 {dimension_numbers = #tpu.dot_dimension_numbers<[1], [0], [0], [1], [0, 0, 1, 1], [], []>, precision = #tpu.contract_precision<fp32>} : vector<2x32xf32>, vector<32x96xf32>, vector<2x96xf32> -> vector<2x96xf32>
    %61 = vector.broadcast %25 : vector<1x96xf32> to vector<2x96xf32>
    %62 = arith.addf %60, %61 : vector<2x96xf32>
    %63 = vector.extract_strided_slice %59 {offsets = [0, 0], sizes = [2, 32], strides = [1, 1]} : vector<2x96xf32> to vector<2x32xf32>
    %64 = vector.extract_strided_slice %62 {offsets = [0, 0], sizes = [2, 32], strides = [1, 1]} : vector<2x96xf32> to vector<2x32xf32>
    %65 = arith.addf %63, %64 : vector<2x32xf32>
    %66 = arith.negf %65 : vector<2x32xf32>
    %67 = math.exp %66 : vector<2x32xf32>
    %cst_34 = arith.constant 1.000000e+00 : f32
    %68 = vector.broadcast %cst_34 : f32 to vector<2x32xf32>
    %69 = arith.addf %68, %67 : vector<2x32xf32>
    %70 = arith.divf %68, %69 : vector<2x32xf32>
    %71 = vector.extract_strided_slice %59 {offsets = [0, 32], sizes = [2, 32], strides = [1, 1]} : vector<2x96xf32> to vector<2x32xf32>
    %72 = vector.extract_strided_slice %62 {offsets = [0, 32], sizes = [2, 32], strides = [1, 1]} : vector<2x96xf32> to vector<2x32xf32>
    %73 = arith.addf %71, %72 : vector<2x32xf32>
    %74 = arith.negf %73 : vector<2x32xf32>
    %75 = math.exp %74 : vector<2x32xf32>
    %cst_35 = arith.constant 1.000000e+00 : f32
    %76 = vector.broadcast %cst_35 : f32 to vector<2x32xf32>
    %77 = arith.addf %76, %75 : vector<2x32xf32>
    %78 = arith.divf %76, %77 : vector<2x32xf32>
    %79 = vector.extract_strided_slice %59 {offsets = [0, 64], sizes = [2, 32], strides = [1, 1]} : vector<2x96xf32> to vector<2x32xf32>
    %80 = vector.extract_strided_slice %62 {offsets = [0, 64], sizes = [2, 32], strides = [1, 1]} : vector<2x96xf32> to vector<2x32xf32>
    %81 = arith.mulf %70, %80 : vector<2x32xf32>
    %82 = arith.addf %79, %81 : vector<2x32xf32>
    %83 = math.tanh %82 : vector<2x32xf32>
    %cst_36 = arith.constant 1.000000e+00 : f32
    %84 = vector.broadcast %cst_36 : f32 to vector<2x32xf32>
    %85 = arith.subf %84, %78 : vector<2x32xf32>
    %86 = arith.mulf %85, %83 : vector<2x32xf32>
    %87 = arith.mulf %78, %57 : vector<2x32xf32>
    %88 = arith.addf %86, %87 : vector<2x32xf32>
    %89 = vector.extract_strided_slice %21 {offsets = [4, 0], sizes = [2, 96], strides = [1, 1]} : vector<16x96xf32> to vector<2x96xf32>
    %90 = arith.addf %89, %23 : vector<2x96xf32>
    %cst_37 = arith.constant dense<0.000000e+00> : vector<2x96xf32>
    %91 = tpu.matmul %88, %24, %cst_37 {dimension_numbers = #tpu.dot_dimension_numbers<[1], [0], [0], [1], [0, 0, 1, 1], [], []>, precision = #tpu.contract_precision<fp32>} : vector<2x32xf32>, vector<32x96xf32>, vector<2x96xf32> -> vector<2x96xf32>
    %92 = vector.broadcast %25 : vector<1x96xf32> to vector<2x96xf32>
    %93 = arith.addf %91, %92 : vector<2x96xf32>
    %94 = vector.extract_strided_slice %90 {offsets = [0, 0], sizes = [2, 32], strides = [1, 1]} : vector<2x96xf32> to vector<2x32xf32>
    %95 = vector.extract_strided_slice %93 {offsets = [0, 0], sizes = [2, 32], strides = [1, 1]} : vector<2x96xf32> to vector<2x32xf32>
    %96 = arith.addf %94, %95 : vector<2x32xf32>
    %97 = arith.negf %96 : vector<2x32xf32>
    %98 = math.exp %97 : vector<2x32xf32>
    %cst_38 = arith.constant 1.000000e+00 : f32
    %99 = vector.broadcast %cst_38 : f32 to vector<2x32xf32>
    %100 = arith.addf %99, %98 : vector<2x32xf32>
    %101 = arith.divf %99, %100 : vector<2x32xf32>
    %102 = vector.extract_strided_slice %90 {offsets = [0, 32], sizes = [2, 32], strides = [1, 1]} : vector<2x96xf32> to vector<2x32xf32>
    %103 = vector.extract_strided_slice %93 {offsets = [0, 32], sizes = [2, 32], strides = [1, 1]} : vector<2x96xf32> to vector<2x32xf32>
    %104 = arith.addf %102, %103 : vector<2x32xf32>
    %105 = arith.negf %104 : vector<2x32xf32>
    %106 = math.exp %105 : vector<2x32xf32>
    %cst_39 = arith.constant 1.000000e+00 : f32
    %107 = vector.broadcast %cst_39 : f32 to vector<2x32xf32>
    %108 = arith.addf %107, %106 : vector<2x32xf32>
    %109 = arith.divf %107, %108 : vector<2x32xf32>
    %110 = vector.extract_strided_slice %90 {offsets = [0, 64], sizes = [2, 32], strides = [1, 1]} : vector<2x96xf32> to vector<2x32xf32>
    %111 = vector.extract_strided_slice %93 {offsets = [0, 64], sizes = [2, 32], strides = [1, 1]} : vector<2x96xf32> to vector<2x32xf32>
    %112 = arith.mulf %101, %111 : vector<2x32xf32>
    %113 = arith.addf %110, %112 : vector<2x32xf32>
    %114 = math.tanh %113 : vector<2x32xf32>
    %cst_40 = arith.constant 1.000000e+00 : f32
    %115 = vector.broadcast %cst_40 : f32 to vector<2x32xf32>
    %116 = arith.subf %115, %109 : vector<2x32xf32>
    %117 = arith.mulf %116, %114 : vector<2x32xf32>
    %118 = arith.mulf %109, %88 : vector<2x32xf32>
    %119 = arith.addf %117, %118 : vector<2x32xf32>
    %120 = vector.extract_strided_slice %21 {offsets = [6, 0], sizes = [2, 96], strides = [1, 1]} : vector<16x96xf32> to vector<2x96xf32>
    %121 = arith.addf %120, %23 : vector<2x96xf32>
    %cst_41 = arith.constant dense<0.000000e+00> : vector<2x96xf32>
    %122 = tpu.matmul %119, %24, %cst_41 {dimension_numbers = #tpu.dot_dimension_numbers<[1], [0], [0], [1], [0, 0, 1, 1], [], []>, precision = #tpu.contract_precision<fp32>} : vector<2x32xf32>, vector<32x96xf32>, vector<2x96xf32> -> vector<2x96xf32>
    %123 = vector.broadcast %25 : vector<1x96xf32> to vector<2x96xf32>
    %124 = arith.addf %122, %123 : vector<2x96xf32>
    %125 = vector.extract_strided_slice %121 {offsets = [0, 0], sizes = [2, 32], strides = [1, 1]} : vector<2x96xf32> to vector<2x32xf32>
    %126 = vector.extract_strided_slice %124 {offsets = [0, 0], sizes = [2, 32], strides = [1, 1]} : vector<2x96xf32> to vector<2x32xf32>
    %127 = arith.addf %125, %126 : vector<2x32xf32>
    %128 = arith.negf %127 : vector<2x32xf32>
    %129 = math.exp %128 : vector<2x32xf32>
    %cst_42 = arith.constant 1.000000e+00 : f32
    %130 = vector.broadcast %cst_42 : f32 to vector<2x32xf32>
    %131 = arith.addf %130, %129 : vector<2x32xf32>
    %132 = arith.divf %130, %131 : vector<2x32xf32>
    %133 = vector.extract_strided_slice %121 {offsets = [0, 32], sizes = [2, 32], strides = [1, 1]} : vector<2x96xf32> to vector<2x32xf32>
    %134 = vector.extract_strided_slice %124 {offsets = [0, 32], sizes = [2, 32], strides = [1, 1]} : vector<2x96xf32> to vector<2x32xf32>
    %135 = arith.addf %133, %134 : vector<2x32xf32>
    %136 = arith.negf %135 : vector<2x32xf32>
    %137 = math.exp %136 : vector<2x32xf32>
    %cst_43 = arith.constant 1.000000e+00 : f32
    %138 = vector.broadcast %cst_43 : f32 to vector<2x32xf32>
    %139 = arith.addf %138, %137 : vector<2x32xf32>
    %140 = arith.divf %138, %139 : vector<2x32xf32>
    %141 = vector.extract_strided_slice %121 {offsets = [0, 64], sizes = [2, 32], strides = [1, 1]} : vector<2x96xf32> to vector<2x32xf32>
    %142 = vector.extract_strided_slice %124 {offsets = [0, 64], sizes = [2, 32], strides = [1, 1]} : vector<2x96xf32> to vector<2x32xf32>
    %143 = arith.mulf %132, %142 : vector<2x32xf32>
    %144 = arith.addf %141, %143 : vector<2x32xf32>
    %145 = math.tanh %144 : vector<2x32xf32>
    %cst_44 = arith.constant 1.000000e+00 : f32
    %146 = vector.broadcast %cst_44 : f32 to vector<2x32xf32>
    %147 = arith.subf %146, %140 : vector<2x32xf32>
    %148 = arith.mulf %147, %145 : vector<2x32xf32>
    %149 = arith.mulf %140, %119 : vector<2x32xf32>
    %150 = arith.addf %148, %149 : vector<2x32xf32>
    %151 = vector.extract_strided_slice %21 {offsets = [8, 0], sizes = [2, 96], strides = [1, 1]} : vector<16x96xf32> to vector<2x96xf32>
    %152 = arith.addf %151, %23 : vector<2x96xf32>
    %cst_45 = arith.constant dense<0.000000e+00> : vector<2x96xf32>
    %153 = tpu.matmul %150, %24, %cst_45 {dimension_numbers = #tpu.dot_dimension_numbers<[1], [0], [0], [1], [0, 0, 1, 1], [], []>, precision = #tpu.contract_precision<fp32>} : vector<2x32xf32>, vector<32x96xf32>, vector<2x96xf32> -> vector<2x96xf32>
    %154 = vector.broadcast %25 : vector<1x96xf32> to vector<2x96xf32>
    %155 = arith.addf %153, %154 : vector<2x96xf32>
    %156 = vector.extract_strided_slice %152 {offsets = [0, 0], sizes = [2, 32], strides = [1, 1]} : vector<2x96xf32> to vector<2x32xf32>
    %157 = vector.extract_strided_slice %155 {offsets = [0, 0], sizes = [2, 32], strides = [1, 1]} : vector<2x96xf32> to vector<2x32xf32>
    %158 = arith.addf %156, %157 : vector<2x32xf32>
    %159 = arith.negf %158 : vector<2x32xf32>
    %160 = math.exp %159 : vector<2x32xf32>
    %cst_46 = arith.constant 1.000000e+00 : f32
    %161 = vector.broadcast %cst_46 : f32 to vector<2x32xf32>
    %162 = arith.addf %161, %160 : vector<2x32xf32>
    %163 = arith.divf %161, %162 : vector<2x32xf32>
    %164 = vector.extract_strided_slice %152 {offsets = [0, 32], sizes = [2, 32], strides = [1, 1]} : vector<2x96xf32> to vector<2x32xf32>
    %165 = vector.extract_strided_slice %155 {offsets = [0, 32], sizes = [2, 32], strides = [1, 1]} : vector<2x96xf32> to vector<2x32xf32>
    %166 = arith.addf %164, %165 : vector<2x32xf32>
    %167 = arith.negf %166 : vector<2x32xf32>
    %168 = math.exp %167 : vector<2x32xf32>
    %cst_47 = arith.constant 1.000000e+00 : f32
    %169 = vector.broadcast %cst_47 : f32 to vector<2x32xf32>
    %170 = arith.addf %169, %168 : vector<2x32xf32>
    %171 = arith.divf %169, %170 : vector<2x32xf32>
    %172 = vector.extract_strided_slice %152 {offsets = [0, 64], sizes = [2, 32], strides = [1, 1]} : vector<2x96xf32> to vector<2x32xf32>
    %173 = vector.extract_strided_slice %155 {offsets = [0, 64], sizes = [2, 32], strides = [1, 1]} : vector<2x96xf32> to vector<2x32xf32>
    %174 = arith.mulf %163, %173 : vector<2x32xf32>
    %175 = arith.addf %172, %174 : vector<2x32xf32>
    %176 = math.tanh %175 : vector<2x32xf32>
    %cst_48 = arith.constant 1.000000e+00 : f32
    %177 = vector.broadcast %cst_48 : f32 to vector<2x32xf32>
    %178 = arith.subf %177, %171 : vector<2x32xf32>
    %179 = arith.mulf %178, %176 : vector<2x32xf32>
    %180 = arith.mulf %171, %150 : vector<2x32xf32>
    %181 = arith.addf %179, %180 : vector<2x32xf32>
    %182 = vector.extract_strided_slice %21 {offsets = [10, 0], sizes = [2, 96], strides = [1, 1]} : vector<16x96xf32> to vector<2x96xf32>
    %183 = arith.addf %182, %23 : vector<2x96xf32>
    %cst_49 = arith.constant dense<0.000000e+00> : vector<2x96xf32>
    %184 = tpu.matmul %181, %24, %cst_49 {dimension_numbers = #tpu.dot_dimension_numbers<[1], [0], [0], [1], [0, 0, 1, 1], [], []>, precision = #tpu.contract_precision<fp32>} : vector<2x32xf32>, vector<32x96xf32>, vector<2x96xf32> -> vector<2x96xf32>
    %185 = vector.broadcast %25 : vector<1x96xf32> to vector<2x96xf32>
    %186 = arith.addf %184, %185 : vector<2x96xf32>
    %187 = vector.extract_strided_slice %183 {offsets = [0, 0], sizes = [2, 32], strides = [1, 1]} : vector<2x96xf32> to vector<2x32xf32>
    %188 = vector.extract_strided_slice %186 {offsets = [0, 0], sizes = [2, 32], strides = [1, 1]} : vector<2x96xf32> to vector<2x32xf32>
    %189 = arith.addf %187, %188 : vector<2x32xf32>
    %190 = arith.negf %189 : vector<2x32xf32>
    %191 = math.exp %190 : vector<2x32xf32>
    %cst_50 = arith.constant 1.000000e+00 : f32
    %192 = vector.broadcast %cst_50 : f32 to vector<2x32xf32>
    %193 = arith.addf %192, %191 : vector<2x32xf32>
    %194 = arith.divf %192, %193 : vector<2x32xf32>
    %195 = vector.extract_strided_slice %183 {offsets = [0, 32], sizes = [2, 32], strides = [1, 1]} : vector<2x96xf32> to vector<2x32xf32>
    %196 = vector.extract_strided_slice %186 {offsets = [0, 32], sizes = [2, 32], strides = [1, 1]} : vector<2x96xf32> to vector<2x32xf32>
    %197 = arith.addf %195, %196 : vector<2x32xf32>
    %198 = arith.negf %197 : vector<2x32xf32>
    %199 = math.exp %198 : vector<2x32xf32>
    %cst_51 = arith.constant 1.000000e+00 : f32
    %200 = vector.broadcast %cst_51 : f32 to vector<2x32xf32>
    %201 = arith.addf %200, %199 : vector<2x32xf32>
    %202 = arith.divf %200, %201 : vector<2x32xf32>
    %203 = vector.extract_strided_slice %183 {offsets = [0, 64], sizes = [2, 32], strides = [1, 1]} : vector<2x96xf32> to vector<2x32xf32>
    %204 = vector.extract_strided_slice %186 {offsets = [0, 64], sizes = [2, 32], strides = [1, 1]} : vector<2x96xf32> to vector<2x32xf32>
    %205 = arith.mulf %194, %204 : vector<2x32xf32>
    %206 = arith.addf %203, %205 : vector<2x32xf32>
    %207 = math.tanh %206 : vector<2x32xf32>
    %cst_52 = arith.constant 1.000000e+00 : f32
    %208 = vector.broadcast %cst_52 : f32 to vector<2x32xf32>
    %209 = arith.subf %208, %202 : vector<2x32xf32>
    %210 = arith.mulf %209, %207 : vector<2x32xf32>
    %211 = arith.mulf %202, %181 : vector<2x32xf32>
    %212 = arith.addf %210, %211 : vector<2x32xf32>
    %213 = vector.extract_strided_slice %21 {offsets = [12, 0], sizes = [2, 96], strides = [1, 1]} : vector<16x96xf32> to vector<2x96xf32>
    %214 = arith.addf %213, %23 : vector<2x96xf32>
    %cst_53 = arith.constant dense<0.000000e+00> : vector<2x96xf32>
    %215 = tpu.matmul %212, %24, %cst_53 {dimension_numbers = #tpu.dot_dimension_numbers<[1], [0], [0], [1], [0, 0, 1, 1], [], []>, precision = #tpu.contract_precision<fp32>} : vector<2x32xf32>, vector<32x96xf32>, vector<2x96xf32> -> vector<2x96xf32>
    %216 = vector.broadcast %25 : vector<1x96xf32> to vector<2x96xf32>
    %217 = arith.addf %215, %216 : vector<2x96xf32>
    %218 = vector.extract_strided_slice %214 {offsets = [0, 0], sizes = [2, 32], strides = [1, 1]} : vector<2x96xf32> to vector<2x32xf32>
    %219 = vector.extract_strided_slice %217 {offsets = [0, 0], sizes = [2, 32], strides = [1, 1]} : vector<2x96xf32> to vector<2x32xf32>
    %220 = arith.addf %218, %219 : vector<2x32xf32>
    %221 = arith.negf %220 : vector<2x32xf32>
    %222 = math.exp %221 : vector<2x32xf32>
    %cst_54 = arith.constant 1.000000e+00 : f32
    %223 = vector.broadcast %cst_54 : f32 to vector<2x32xf32>
    %224 = arith.addf %223, %222 : vector<2x32xf32>
    %225 = arith.divf %223, %224 : vector<2x32xf32>
    %226 = vector.extract_strided_slice %214 {offsets = [0, 32], sizes = [2, 32], strides = [1, 1]} : vector<2x96xf32> to vector<2x32xf32>
    %227 = vector.extract_strided_slice %217 {offsets = [0, 32], sizes = [2, 32], strides = [1, 1]} : vector<2x96xf32> to vector<2x32xf32>
    %228 = arith.addf %226, %227 : vector<2x32xf32>
    %229 = arith.negf %228 : vector<2x32xf32>
    %230 = math.exp %229 : vector<2x32xf32>
    %cst_55 = arith.constant 1.000000e+00 : f32
    %231 = vector.broadcast %cst_55 : f32 to vector<2x32xf32>
    %232 = arith.addf %231, %230 : vector<2x32xf32>
    %233 = arith.divf %231, %232 : vector<2x32xf32>
    %234 = vector.extract_strided_slice %214 {offsets = [0, 64], sizes = [2, 32], strides = [1, 1]} : vector<2x96xf32> to vector<2x32xf32>
    %235 = vector.extract_strided_slice %217 {offsets = [0, 64], sizes = [2, 32], strides = [1, 1]} : vector<2x96xf32> to vector<2x32xf32>
    %236 = arith.mulf %225, %235 : vector<2x32xf32>
    %237 = arith.addf %234, %236 : vector<2x32xf32>
    %238 = math.tanh %237 : vector<2x32xf32>
    %cst_56 = arith.constant 1.000000e+00 : f32
    %239 = vector.broadcast %cst_56 : f32 to vector<2x32xf32>
    %240 = arith.subf %239, %233 : vector<2x32xf32>
    %241 = arith.mulf %240, %238 : vector<2x32xf32>
    %242 = arith.mulf %233, %212 : vector<2x32xf32>
    %243 = arith.addf %241, %242 : vector<2x32xf32>
    %244 = vector.extract_strided_slice %21 {offsets = [14, 0], sizes = [2, 96], strides = [1, 1]} : vector<16x96xf32> to vector<2x96xf32>
    %245 = arith.addf %244, %23 : vector<2x96xf32>
    %cst_57 = arith.constant dense<0.000000e+00> : vector<2x96xf32>
    %246 = tpu.matmul %243, %24, %cst_57 {dimension_numbers = #tpu.dot_dimension_numbers<[1], [0], [0], [1], [0, 0, 1, 1], [], []>, precision = #tpu.contract_precision<fp32>} : vector<2x32xf32>, vector<32x96xf32>, vector<2x96xf32> -> vector<2x96xf32>
    %247 = vector.broadcast %25 : vector<1x96xf32> to vector<2x96xf32>
    %248 = arith.addf %246, %247 : vector<2x96xf32>
    %249 = vector.extract_strided_slice %245 {offsets = [0, 0], sizes = [2, 32], strides = [1, 1]} : vector<2x96xf32> to vector<2x32xf32>
    %250 = vector.extract_strided_slice %248 {offsets = [0, 0], sizes = [2, 32], strides = [1, 1]} : vector<2x96xf32> to vector<2x32xf32>
    %251 = arith.addf %249, %250 : vector<2x32xf32>
    %252 = arith.negf %251 : vector<2x32xf32>
    %253 = math.exp %252 : vector<2x32xf32>
    %cst_58 = arith.constant 1.000000e+00 : f32
    %254 = vector.broadcast %cst_58 : f32 to vector<2x32xf32>
    %255 = arith.addf %254, %253 : vector<2x32xf32>
    %256 = arith.divf %254, %255 : vector<2x32xf32>
    %257 = vector.extract_strided_slice %245 {offsets = [0, 32], sizes = [2, 32], strides = [1, 1]} : vector<2x96xf32> to vector<2x32xf32>
    %258 = vector.extract_strided_slice %248 {offsets = [0, 32], sizes = [2, 32], strides = [1, 1]} : vector<2x96xf32> to vector<2x32xf32>
    %259 = arith.addf %257, %258 : vector<2x32xf32>
    %260 = arith.negf %259 : vector<2x32xf32>
    %261 = math.exp %260 : vector<2x32xf32>
    %cst_59 = arith.constant 1.000000e+00 : f32
    %262 = vector.broadcast %cst_59 : f32 to vector<2x32xf32>
    %263 = arith.addf %262, %261 : vector<2x32xf32>
    %264 = arith.divf %262, %263 : vector<2x32xf32>
    %265 = vector.extract_strided_slice %245 {offsets = [0, 64], sizes = [2, 32], strides = [1, 1]} : vector<2x96xf32> to vector<2x32xf32>
    %266 = vector.extract_strided_slice %248 {offsets = [0, 64], sizes = [2, 32], strides = [1, 1]} : vector<2x96xf32> to vector<2x32xf32>
    %267 = arith.mulf %256, %266 : vector<2x32xf32>
    %268 = arith.addf %265, %267 : vector<2x32xf32>
    %269 = math.tanh %268 : vector<2x32xf32>
    %cst_60 = arith.constant 1.000000e+00 : f32
    %270 = vector.broadcast %cst_60 : f32 to vector<2x32xf32>
    %271 = arith.subf %270, %264 : vector<2x32xf32>
    %272 = arith.mulf %271, %269 : vector<2x32xf32>
    %273 = arith.mulf %264, %243 : vector<2x32xf32>
    %274 = arith.addf %272, %273 : vector<2x32xf32>
    %275 = vector.extract_strided_slice %57 {offsets = [0, 0], sizes = [1, 32], strides = [1, 1]} : vector<2x32xf32> to vector<1x32xf32>
    %276 = vector.extract_strided_slice %88 {offsets = [0, 0], sizes = [1, 32], strides = [1, 1]} : vector<2x32xf32> to vector<1x32xf32>
    %277 = vector.extract_strided_slice %119 {offsets = [0, 0], sizes = [1, 32], strides = [1, 1]} : vector<2x32xf32> to vector<1x32xf32>
    %278 = vector.extract_strided_slice %150 {offsets = [0, 0], sizes = [1, 32], strides = [1, 1]} : vector<2x32xf32> to vector<1x32xf32>
    %279 = vector.extract_strided_slice %181 {offsets = [0, 0], sizes = [1, 32], strides = [1, 1]} : vector<2x32xf32> to vector<1x32xf32>
    %280 = vector.extract_strided_slice %212 {offsets = [0, 0], sizes = [1, 32], strides = [1, 1]} : vector<2x32xf32> to vector<1x32xf32>
    %281 = vector.extract_strided_slice %243 {offsets = [0, 0], sizes = [1, 32], strides = [1, 1]} : vector<2x32xf32> to vector<1x32xf32>
    %282 = vector.extract_strided_slice %274 {offsets = [0, 0], sizes = [1, 32], strides = [1, 1]} : vector<2x32xf32> to vector<1x32xf32>
    %283 = vector.extract_strided_slice %57 {offsets = [1, 0], sizes = [1, 32], strides = [1, 1]} : vector<2x32xf32> to vector<1x32xf32>
    %284 = vector.extract_strided_slice %88 {offsets = [1, 0], sizes = [1, 32], strides = [1, 1]} : vector<2x32xf32> to vector<1x32xf32>
    %285 = vector.extract_strided_slice %119 {offsets = [1, 0], sizes = [1, 32], strides = [1, 1]} : vector<2x32xf32> to vector<1x32xf32>
    %286 = vector.extract_strided_slice %150 {offsets = [1, 0], sizes = [1, 32], strides = [1, 1]} : vector<2x32xf32> to vector<1x32xf32>
    %287 = vector.extract_strided_slice %181 {offsets = [1, 0], sizes = [1, 32], strides = [1, 1]} : vector<2x32xf32> to vector<1x32xf32>
    %288 = vector.extract_strided_slice %212 {offsets = [1, 0], sizes = [1, 32], strides = [1, 1]} : vector<2x32xf32> to vector<1x32xf32>
    %289 = vector.extract_strided_slice %243 {offsets = [1, 0], sizes = [1, 32], strides = [1, 1]} : vector<2x32xf32> to vector<1x32xf32>
    %290 = vector.extract_strided_slice %274 {offsets = [1, 0], sizes = [1, 32], strides = [1, 1]} : vector<2x32xf32> to vector<1x32xf32>
    %291 = tpu.concatenate %275, %276, %277, %278, %279, %280, %281, %282, %283, %284, %285, %286, %287, %288, %289, %290 in 0 : vector<1x32xf32>, vector<1x32xf32>, vector<1x32xf32>, vector<1x32xf32>, vector<1x32xf32>, vector<1x32xf32>, vector<1x32xf32>, vector<1x32xf32>, vector<1x32xf32>, vector<1x32xf32>, vector<1x32xf32>, vector<1x32xf32>, vector<1x32xf32>, vector<1x32xf32>, vector<1x32xf32>, vector<1x32xf32> -> vector<16x32xf32>
    %c0_61 = arith.constant 0 : index
    %c0_62 = arith.constant 0 : index
    %292 = vector.load %arg11[%c0_61, %c0_62] : memref<32x128xf32, #tpu.memory_space<vmem>>, vector<32x128xf32>
    %cst_63 = arith.constant dense<0.000000e+00> : vector<16x128xf32>
    %293 = tpu.matmul %291, %292, %cst_63 {dimension_numbers = #tpu.dot_dimension_numbers<[1], [0], [0], [1], [0, 0, 1, 1], [], []>, precision = #tpu.contract_precision<fp32>} : vector<16x32xf32>, vector<32x128xf32>, vector<16x128xf32> -> vector<16x128xf32>
    %c0_64 = arith.constant 0 : index
    %c0_65 = arith.constant 0 : index
    %294 = vector.load %arg12[%c0_64, %c0_65] : memref<1x128xf32, #tpu.memory_space<vmem>>, vector<1x128xf32>
    %295 = vector.broadcast %294 : vector<1x128xf32> to vector<16x128xf32>
    %296 = arith.addf %293, %295 : vector<16x128xf32>
    %297 = vector.extract_strided_slice %296 {offsets = [0, 0], sizes = [8, 128], strides = [1, 1]} : vector<16x128xf32> to vector<8x128xf32>
    %c0_66 = arith.constant 0 : index
    %c0_67 = arith.constant 0 : index
    %c0_68 = arith.constant 0 : index
    %298 = vector.load %arg13[%c0_66, %c0_67, %c0_68] : memref<2x8x128xf32, #tpu.memory_space<vmem>>, vector<1x8x128xf32>
    %299 = vector.shape_cast %298 : vector<1x8x128xf32> to vector<8x128xf32>
    %300 = vector.shape_cast %297 : vector<8x128xf32> to vector<1x8x128xf32>
    tpu.vector_store %arg13[%c0_66, %c0_67, %c0_68], %300 {strides = array<i32>} : memref<2x8x128xf32, #tpu.memory_space<vmem>>, vector<1x8x128xf32>,
    %301 = vector.extract_strided_slice %296 {offsets = [8, 0], sizes = [8, 128], strides = [1, 1]} : vector<16x128xf32> to vector<8x128xf32>
    %c1 = arith.constant 1 : index
    %c0_69 = arith.constant 0 : index
    %c0_70 = arith.constant 0 : index
    %302 = vector.load %arg13[%c1, %c0_69, %c0_70] : memref<2x8x128xf32, #tpu.memory_space<vmem>>, vector<1x8x128xf32>
    %303 = vector.shape_cast %302 : vector<1x8x128xf32> to vector<8x128xf32>
    %304 = vector.shape_cast %301 : vector<8x128xf32> to vector<1x8x128xf32>
    tpu.vector_store %arg13[%c1, %c0_69, %c0_70], %304 {strides = array<i32>} : memref<2x8x128xf32, #tpu.memory_space<vmem>>, vector<1x8x128xf32>,
    return
  }
}

</mosaic_0001>

<bundles_post_ra>
// kernel: video_captioning_forward.1
= control target key start
LH: loop header
LB: loop body
LE: loop exit
PB: predicated region body
PF: predicated region fallthrough
CT: control target
= control target key end

     0   :  { %vm314_vm0 = vcmask 1043456   ;;  %vm121_vm1 = vcmask 293888   ;;  %s19193_s0 = inlined_call_operand.vmem [shape: f32[512,36], index: 0, kind: input, shape index: {}]   ;;  %s19194_s1 = inlined_call_operand.vmem [shape: f32[2,512], index: 1, kind: input, shape index: {}]   ;;  %s19195_s2 = inlined_call_operand.vmem [shape: f32[36,32], index: 2, kind: input, shape index: {}]   ;;  %s19196_s3 = inlined_call_operand.vmem [shape: f32[1,32], index: 3, kind: input, shape index: {}]   ;;  %s19197_s4 = inlined_call_operand.vmem [shape: f32[16,32], index: 4, kind: input, shape index: {}]   ;;  %s19198_s5 = inlined_call_operand.vmem [shape: f32[32,32], index: 5, kind: input, shape index: {}]   ;;  %s19199_s6 = inlined_call_operand.vmem [shape: f32[1,32], index: 6, kind: input, shape index: {}]   ;;  %s19200_s7 = inlined_call_operand.vmem [shape: f32[32,96], index: 7, kind: input, shape index: {}]   ;;  %s19201_s8 = inlined_call_operand.vmem [shape: f32[32,96], index: 8, kind: input, shape index: {}]   ;;  %s19202_s9 = inlined_call_operand.vmem [shape: f32[1,96], index: 9, kind: input, shape index: {}]   ;;  %s19203_s10 = inlined_call_operand.vmem [shape: f32[1,96], index: 10, kind: input, shape index: {}]   ;;  %s19204_s11 = inlined_call_operand.vmem [shape: f32[32,128], index: 11, kind: input, shape index: {}]   ;;  %s19205_s12 = inlined_call_operand.vmem [shape: f32[1,128], index: 12, kind: input, shape index: {}]   ;;  %s19206_s13 = inlined_call_operand.hbm [shape: f32[2,8,128], index: 13, kind: output, shape index: {}]  }
   0x1   :  { %v109_v0 = vld [vmem:[%s19195_s2] sm:$0xff]  ;;  %v110_v1 = vld [vmem:[%s19195_s2 + $0x8] sm:$0xff]  ;;  %v15961_v2 = vld [vmem:[%s19195_s2 + $0x10] sm:$0xff] }
   0x2   :  { %v319_v3 = vand.u32 4294901760, %v109_v0  ;;  %v322_v4 = vand.u32 4294901760, %v110_v1  ;;  %v15966_v5 = vld [vmem:[%s19195_s2 + $0x18] sm:$0xff]  ;;  %v19225_v6 = vand.u32 4294901760, %v15961_v2  ;;  %v113_v7 = vld [vmem:[%s19195_s2 + $0x20] sm:$0xf] }
   0x3   :  { %v19223_v8 = vand.u32 4294901760, %v15966_v5  ;;  %v15974_v9 = vsel %vm314_vm0, %v113_v7, 0  ;;  %v45_v10 = vld [vmem:[%s19193_s0] sm:$0xff]  ;;  %v46_v11 = vld [vmem:[%s19193_s0 + $0x8] sm:$0xff]  ;;  %v47_v12 = vld [vmem:[%s19193_s0 + $0x10] sm:$0xff] }
   0x4   :  { %v15985_v13 = vpack.c.bf16 %v322_v4, %v319_v3  ;;  %v15988_v14 = vand.u32 4294901760, %v15974_v9  ;;  %v123_v15 = vsel %vm121_vm1, %v45_v10, 0  ;;  %v126_v16 = vsel %vm121_vm1, %v46_v11, 0  ;;  %v48_v17 = vld [vmem:[%s19193_s0 + $0x18] sm:$0xff]  ;;  %v49_v18 = vld [vmem:[%s19193_s0 + $0x20] sm:$0xff]  ;;  %v50_v23 = vld [vmem:[%s19193_s0 + $0x28] sm:$0xff] }
   0x5   :  { %v16002_v19 = vpack.c.bf16 %v19223_v8, %v19225_v6  ;;  %v16004_v20 = vand.u32 4294901760, %v123_v15  ;;  %v16006_v21 = vand.u32 4294901760, %v126_v16  ;;  %v16008_v22 = vsub.f32 %v109_v0, %v319_v3  ;;  %v51_v44 = vld [vmem:[%s19193_s0 + $0x30] sm:$0xff]  ;;  %v52_v53 = vld [vmem:[%s19193_s0 + $0x38] sm:$0xff]  ;;  %v53_v54 = vld [vmem:[%s19193_s0 + $0x40] sm:$0xff] }
   0x6   :  { %19653 = vst [vmem:[#allocation5_spill] sm:$0xff] %v15988_v14  ;;  %14367 = vmatprep.subr.bf16.mxu0 %v15985_v13  ;;  %v16014_v24 = vsub.f32 %v110_v1, %v322_v4  ;;  %v129_v25 = vsel %vm121_vm1, %v47_v12, 0  ;;  %v132_v26 = vsel %vm121_vm1, %v48_v17, 0  ;;  %v135_v27 = vsel %vm121_vm1, %v49_v18, 0  ;;  %v54_v63 = vld [vmem:[%s19193_s0 + $0x48] sm:$0xff]  ;;  %v55_v0 = vld [vmem:[%s19193_s0 + $0x50] sm:$0xff] }
   0x7   :  { %19654 = vst [vmem:[#allocation6_spill] sm:$0xff] %v16002_v19  ;;  %19655 = vst [vmem:[#allocation7_spill] sm:$0xff] %v16004_v20  ;;  %14369 = vmatpush3.bf16.msra.mxu0 %v15985_v13  ;;  %v16021_v28 = vsub.f32 %v123_v15, %v16004_v20  ;;  %v16024_v29 = vsub.f32 %v126_v16, %v16006_v21  ;;  %v19221_v30 = vand.u32 4294901760, %v16008_v22  ;;  %v16027_v31 = vand.u32 4294901760, %v129_v25  ;;  %v56_v16 = vld [vmem:[%s19193_s0 + $0x58] sm:$0xff]  ;;  %v57_v17 = vld [vmem:[%s19193_s0 + $0x60] sm:$0xff] }
   0x8   :  { %19656 = vst [vmem:[#allocation8_spill] sm:$0xff] %v16006_v21  ;;  %19657 = vst [vmem:[#allocation9_spill] sm:$0xff] %v16008_v22  ;;  %14371 = vmatprep.subr.bf16.mxu0 %v16002_v19  ;;  %v19220_v32 = vand.u32 4294901760, %v16014_v24  ;;  %v16031_v33 = vand.u32 4294901760, %v132_v26  ;;  %v16033_v34 = vand.u32 4294901760, %v135_v27  ;;  %v138_v35 = vsel %vm121_vm1, %v50_v23, 0 }
   0x9   :  { %19658 = vst [vmem:[#allocation10_spill] sm:$0xff] %v16014_v24  ;;  %19659 = vst [vmem:[#allocation11_spill] sm:$0xff] %v16021_v28  ;;  %v19219_v36 = vand.u32 4294901760, %v16021_v28  ;;  %v19218_v37 = vand.u32 4294901760, %v16024_v29  ;;  %v1032_v38 = vsub.f32 %v16008_v22, %v19221_v30  ;;  %v16042_v39 = vsub.f32 %v129_v25, %v16027_v31 }
   0xa   :  { %19660 = vst [vmem:[#allocation12_spill] sm:$0xff] %v16024_v29  ;;  %19661 = vst [vmem:[#allocation13_spill] sm:$0xff] %v16027_v31  ;;  %v1039_v40 = vsub.f32 %v16014_v24, %v19220_v32  ;;  %v16048_v41 = vsub.f32 %v132_v26, %v16031_v33  ;;  %v16051_v42 = vsub.f32 %v135_v27, %v16033_v34  ;;  %v16053_v43 = vand.u32 4294901760, %v138_v35 }
   0xb   :  { %19662 = vst [vmem:[#allocation14_spill] sm:$0xff] %v16031_v33  ;;  %19663 = vst [vmem:[#allocation15_spill] sm:$0xff] %v16033_v34  ;;  %14373 = vmatpush3.bf16.msra.mxu0 %v16002_v19  ;;  %v391_v45 = vsub.f32 %v16021_v28, %v19219_v36  ;;  %v401_v46 = vsub.f32 %v16024_v29, %v19218_v37  ;;  %v1033_v47 = vand.u32 4294901760, %v1032_v38  ;;  %v19217_v48 = vand.u32 4294901760, %v16042_v39 }
   0xc   :  { %19664 = vst [vmem:[#allocation16_spill] sm:$0xff] %v16042_v39  ;;  %19665 = vst [vmem:[#allocation17_spill] sm:$0xff] %v16048_v41  ;;  %12946 = vmatprep.subr.mxu0 %v15988_v14  ;;  %v1040_v49 = vand.u32 4294901760, %v1039_v40  ;;  %v19215_v50 = vand.u32 4294901760, %v16048_v41  ;;  %v19214_v51 = vand.u32 4294901760, %v16051_v42  ;;  %v16070_v52 = vsub.f32 %v138_v35, %v16053_v43 }
   0xd   :  { %19666 = vst [vmem:[#allocation18_spill] sm:$0xff] %v16051_v42  ;;  %19667 = vst [vmem:[#allocation19_spill] sm:$0xff] %v16053_v43  ;;  %v392_v55 = vand.u32 4294901760, %v391_v45  ;;  %v402_v56 = vand.u32 4294901760, %v401_v46  ;;  %v411_v57 = vsub.f32 %v16042_v39, %v19217_v48  ;;  %v141_v58 = vsel %vm121_vm1, %v51_v44, 0  ;;  %v58_v44 = vld [vmem:[%s19193_s0 + $0x68] sm:$0xff] }
   0xe   :  { %19668 = vst [vmem:[#allocation20_spill] sm:$0xff] %v16070_v52  ;;  %v14374_v59 = vpack.c.bf16 %v1040_v49, %v1033_v47  ;;  %v421_v60 = vsub.f32 %v16048_v41, %v19215_v50  ;;  %v431_v61 = vsub.f32 %v16051_v42, %v19214_v51  ;;  %v19213_v62 = vand.u32 4294901760, %v16070_v52 }
   0xf   :  { %12947 = vmatpush3.msra.mxu0 %v15988_v14  ;;  %12948 = vmatprep.mubr.f32.mxu0 %v392_v55  ;;  %v412_v1 = vand.u32 4294901760, %v411_v57  ;;  %v16096_v3 = vand.u32 4294901760, %v141_v58  ;;  %v144_v4 = vsel %vm121_vm1, %v52_v53, 0  ;;  %v147_v7 = vsel %vm121_vm1, %v53_v54, 0 }
  0x10   :  { %12949 = vmatmul.mubr.f32.vlgmr.msra.gmra.mrb[0].mxu0 %v402_v56  ;;  %14375 = vmatprep.subr.bf16.mxu0 %v14374_v59  ;;  %v422_v10 = vand.u32 4294901760, %v421_v60  ;;  %v432_v11 = vand.u32 4294901760, %v431_v61  ;;  %v441_v12 = vsub.f32 %v16070_v52, %v19213_v62  ;;  %v16103_v15 = vand.u32 4294901760, %v144_v4 }
  0x11   :  { %19669 = vst [vmem:[#allocation21_spill] sm:$0xff] %v16096_v3  ;;  %14377 = vmatpush3.bf16.msra.mxu0 %v14374_v59  ;;  %12951 = vmatprep.mubr.f32.mxu0 %v412_v1  ;;  %v16112_v18 = vsub.f32 %v141_v58, %v16096_v3  ;;  %v16114_v23 = vand.u32 4294901760, %v147_v7  ;;  %v150_v25 = vsel %vm121_vm1, %v54_v63, 0  ;;  %v153_v26 = vsel %vm121_vm1, %v55_v0, 0 }
  0x12   :  { %19670 = vst [vmem:[#allocation22_spill] sm:$0xff] %v16103_v15  ;;  %v442_v27 = vand.u32 4294901760, %v441_v12  ;;  %v16119_v35 = vsub.f32 %v144_v4, %v16103_v15  ;;  %v16121_v38 = vand.u32 4294901760, %v150_v25  ;;  %v16123_v40 = vand.u32 4294901760, %v153_v26  ;;  %v59_v4 = vld [vmem:[%s19193_s0 + $0x70] sm:$0xff] }
  0x13   :  { %19671 = vst [vmem:[#allocation23_spill] sm:$0xff] %v16112_v18  ;;  %19672 = vst [vmem:[#allocation24_spill] sm:$0xff] %v16114_v23  ;;  %v19212_v45 = vand.u32 4294901760, %v16112_v18  ;;  %v16130_v46 = vsub.f32 %v147_v7, %v16114_v23  ;;  %v156_v47 = vsel %vm121_vm1, %v56_v16, 0  ;;  %v159_v49 = vsel %vm121_vm1, %v57_v17, 0 }
  0x14   :  { %19673 = vst [vmem:[#allocation25_spill] sm:$0xff] %v16119_v35  ;;  %19674 = vst [vmem:[#allocation26_spill] sm:$0xff] %v16121_v38  ;;  %12952 = vmatmul.mubr.f32.gmra.mrb[2].mxu0 %v422_v10  ;;  %v19211_v53 = vand.u32 4294901760, %v16119_v35  ;;  %v16136_v54 = vsub.f32 %v150_v25, %v16121_v38  ;;  %v16139_v55 = vsub.f32 %v153_v26, %v16123_v40  ;;  %v16141_v56 = vand.u32 4294901760, %v156_v47 }
  0x15   :  { %19675 = vst [vmem:[#allocation27_spill] sm:$0xff] %v16123_v40  ;;  %19676 = vst [vmem:[#allocation28_spill] sm:$0xff] %v16130_v46  ;;  %12954 = vmatprep.mubr.f32.mxu0 %v432_v11  ;;  %v451_v57 = vsub.f32 %v16112_v18, %v19212_v45  ;;  %v19209_v58 = vand.u32 4294901760, %v16130_v46  ;;  %v16147_v59 = vand.u32 4294901760, %v159_v49  ;;  %v162_v60 = vsel %vm121_vm1, %v58_v44, 0  ;;  %v60_v44 = vld [vmem:[%s19193_s0 + $0x78] sm:$0xff] }
  0x16   :  { %19677 = vst [vmem:[#allocation29_spill] sm:$0xff] %v16136_v54  ;;  %19678 = vst [vmem:[#allocation30_spill] sm:$0xff] %v16139_v55  ;;  %v461_v61 = vsub.f32 %v16119_v35, %v19211_v53  ;;  %v19208_v63 = vand.u32 4294901760, %v16136_v54  ;;  %v19207_v0 = vand.u32 4294901760, %v16139_v55  ;;  %v16156_v1 = vsub.f32 %v156_v47, %v16141_v56  ;;  %v61_v47 = vld [vmem:[%s19193_s0 + $0x80] sm:$0xff] }
  0x17   :  { %19679 = vst [vmem:[#allocation31_spill] sm:$0xff] %v16141_v56  ;;  %19680 = vst [vmem:[#allocation32_spill] sm:$0xff] %v16147_v59  ;;  %v452_v7 = vand.u32 4294901760, %v451_v57  ;;  %v471_v10 = vsub.f32 %v16130_v46, %v19209_v58  ;;  %v16165_v11 = vsub.f32 %v159_v49, %v16147_v59  ;;  %v16167_v12 = vand.u32 4294901760, %v162_v60 }
  0x18   :  { %19681 = vst [vmem:[#allocation33_spill] sm:$0xff] %v16156_v1  ;;  %12955 = vmatmul.mubr.f32.gmra.mrb[4].mxu0 %v442_v27  ;;  %v462_v16 = vand.u32 4294901760, %v461_v61  ;;  %v481_v17 = vsub.f32 %v16136_v54, %v19208_v63  ;;  %v491_v25 = vsub.f32 %v16139_v55, %v19207_v0  ;;  %v19210_v26 = vand.u32 4294901760, %v16156_v1 }
  0x19   :  { %19682 = vst [vmem:[#allocation34_spill] sm:$0xff] %v16165_v11  ;;  %19683 = vst [vmem:[#allocation35_spill] sm:$0xff] %v16167_v12  ;;  %12957 = vmatprep.mubr.f32.mxu0 %v452_v7  ;;  %v472_v27 = vand.u32 4294901760, %v471_v10  ;;  %v19216_v49 = vand.u32 4294901760, %v16165_v11  ;;  %v16184_v57 = vsub.f32 %v162_v60, %v16167_v12  ;;  %v165_v61 = vsel %vm121_vm1, %v59_v4, 0 }
  0x1b   :  { %19684 = vst [vmem:[#allocation36_spill] sm:$0xff] %v16184_v57 }
  0x1c   :  { %18 = vsyncpa [#allocation3], 0  ;;  %v482_v0 = vand.u32 4294901760, %v481_v17  ;;  %v501_v63 = vsub.f32 %v16156_v1, %v19210_v26  ;;  %v16190_v58 = vand.u32 4294901760, %v165_v61  ;;  %v62_v7 = vld [vmem:[%s19193_s0 + $0x88] sm:$0xff]  ;;  %v63_v10 = vld [vmem:[%s19193_s0 + $0x90] sm:$0xff]  ;;  %v511_v60 = vsub.f32 %v16165_v11, %v19216_v49  ;;  %12958 = vmatmul.mubr.f32.gmra.mrb[6].mxu0 %v462_v16 }
  0x1d   :  { %v19222_v4 = vand.u32 4294901760, %v16184_v57  ;;  %v168_v17 = vsel %vm121_vm1, %v60_v44, 0  ;;  %v171_v26 = vsel %vm121_vm1, %v61_v47, 0  ;;  %v492_v53 = vand.u32 4294901760, %v491_v25  ;;  %v64_v50 = vld [vmem:[%s19193_s0 + $0x98] sm:$0xff]  ;;  %v65_v49 = vld [vmem:[%s19193_s0 + $0xa0] sm:$0xff]  ;;  %12960 = vmatprep.mubr.f32.mxu0 %v472_v27 }
  0x1e   :  { %19685 = vst [vmem:[#allocation37_spill] sm:$0xff] %v16190_v58  ;;  %v16205_v45 = vsub.f32 %v165_v61, %v16190_v58  ;;  %v16207_v62 = vand.u32 4294901760, %v168_v17  ;;  %v16209_v51 = vand.u32 4294901760, %v171_v26  ;;  %v502_v44 = vand.u32 4294901760, %v501_v63  ;;  %v66_v27 = vld [vmem:[%s19193_s0 + $0xa8] sm:$0xff]  ;;  %s15877_s14 = smov 64  }
  0x1f   :  { %v512_v47 = vand.u32 4294901760, %v511_v60  ;;  %v174_v16 = vsel %vm121_vm1, %v62_v7, 0  ;;  %v177_v25 = vsel %vm121_vm1, %v63_v10, 0  ;;  %v521_v63 = vsub.f32 %v16184_v57, %v19222_v4  ;;  %s15879_s21 = smov [#allocation2]  }
  0x20   :  { %19686 = vst [vmem:[#allocation38_spill] sm:$0xff] %v16205_v45  ;;  %19687 = vst [vmem:[#allocation39_spill] sm:$0xff] %v16207_v62  ;;  %v19224_v61 = vand.u32 4294901760, %v16205_v45  ;;  %v16221_v48 = vsub.f32 %v168_v17, %v16207_v62  ;;  %v16224_v37 = vsub.f32 %v171_v26, %v16209_v51  ;;  %v16226_v36 = vand.u32 4294901760, %v174_v16  ;;  %12961 = vmatmul.mubr.f32.gmra.mrb[8].mxu0 %v482_v0  ;;  %s11702_s22 = sshll.u32 %s15879_s21, 4  ;;  %s11703_s22 = int_to_ptr.vmem [resolvable:$true] %s11702_s22 }
  0x21   :  { %19688 = vst [vmem:[#allocation40_spill] sm:$0xff] %v16209_v51  ;;  %v16234_v7 = vand.u32 4294901760, %v177_v25  ;;  %v180_v10 = vsel %vm121_vm1, %v64_v50, 0  ;;  %v183_v60 = vsel %vm121_vm1, %v65_v49, 0  ;;  %12963 = vmatprep.mubr.f32.mxu0 %v492_v53  ;;  %v186_v0 = vsel %vm121_vm1, %v66_v27, 0  ;;  %v67_v49 = vld [vmem:[%s19193_s0 + $0xb0] sm:$0xff]  ;;  %p15854_p1 = scmp.lt.s32.totalorder %s11703_s22, %s11703_s22 }
  0x22   :  { %19689 = vst [vmem:[#allocation41_spill] sm:$0xff] %v16221_v48  ;;  %19690 = vst [vmem:[#allocation42_spill] sm:$0xff] %v16224_v37  ;;  %v531_v26 = vsub.f32 %v16205_v45, %v19224_v61  ;;  %v19230_v17 = vand.u32 4294901760, %v16221_v48  ;;  %v19233_v32 = vand.u32 4294901760, %v16224_v37  ;;  %v16244_v30 = vsub.f32 %v174_v16, %v16226_v36  ;;  %s15849_s23 = scalar_lea.vmem %s11703_s22, 256 }
  0x23   :  { %19691 = vst [vmem:[#allocation43_spill] sm:$0xff] %v16226_v36  ;;  %19692 = vst [vmem:[#allocation44_spill] sm:$0xff] %v16234_v7  ;;  %v16247_v4 = vsub.f32 %v177_v25, %v16234_v7  ;;  %v16249_v8 = vand.u32 4294901760, %v180_v10  ;;  %v16251_v50 = vand.u32 4294901760, %v183_v60  ;;  %v16268_v27 = vand.u32 4294901760, %v186_v0  ;;  %p15850_p0 = scmp.ne.s32.totalorder %s11703_s22, %s15849_s23  ;;  %p15855_p2 = scmp.lt.s32.totalorder %s15849_s23, %s15849_s23 }
  0x24   :  { %19693 = vst [vmem:[#allocation45_spill] sm:$0xff] %v16244_v30  ;;  %v541_v61 = vsub.f32 %v16221_v48, %v19230_v17  ;;  %v551_v53 = vsub.f32 %v16224_v37, %v19233_v32  ;;  %12964 = vmatmul.mubr.f32.gmra.mrb[10].mxu0 %v502_v44  ;;  %v522_v45 = vand.u32 4294901760, %v521_v63  ;;  %v189_v17 = vsel %vm121_vm1, %v67_v49, 0  ;;  %v68_v44 = vld [vmem:[%s19193_s0 + $0xb8] sm:$0xff] }
  0x25   :  { %19694 = vst [vmem:[#allocation46_spill] sm:$0xff] %v16247_v4  ;;  %19695 = vst [vmem:[#allocation47_spill] sm:$0xff] %v16249_v8  ;;  %v19234_v25 = vand.u32 4294901760, %v16247_v4  ;;  %v16266_v6 = vsub.f32 %v180_v10, %v16249_v8  ;;  %v16271_v57 = vsub.f32 %v183_v60, %v16251_v50  ;;  %12966 = vmatprep.mubr.f32.mxu0 %v512_v47  ;;  %v532_v16 = vand.u32 4294901760, %v531_v26  ;;  %p15856_p3 = por %p15855_p2, %p15854_p1 }
  0x26   :  { %19696 = vst [vmem:[#allocation48_spill] sm:$0xff] %v16251_v50  ;;  %19698 = vst [vmem:[#allocation50_spill] sm:$0xff] %v16268_v27  ;;  %v19700_v48 = vand.u32 4294901760, %v16244_v30  ;;  %v16284_v63 = vsub.f32 %v186_v0, %v16268_v27  ;;  %v16286_v60 = vand.u32 4294901760, %v189_v17  ;;  %v19703_v47 = vand.u32 4294901760, %v15961_v2  ;;  %v69_v0 = vld [vmem:[%s19193_s0 + $0xc0] sm:$0xff] }
  0x27   :  { %19697 = vst [vmem:[#allocation49_spill] sm:$0xff] %v16266_v6  ;;  %19699 = vst [vmem:[#allocation51_spill] sm:$0xff] %v16271_v57  ;;  %v571_v10 = vsub.f32 %v16247_v4, %v19234_v25  ;;  %v542_v25 = vand.u32 4294901760, %v541_v61  ;;  %v552_v4 = vand.u32 4294901760, %v551_v53  ;;  %v195_v1 = vsel %vm121_vm1, %v69_v0, 0  ;;  %p15857_p4 = pnand %p15856_p3, %p15850_p0 }
  0x28   :  { %v561_v32 = vsub.f32 %v16244_v30, %v19700_v48  ;;  %19701 = vst [vmem:[#allocation52_spill] sm:$0xff] %v16284_v63  ;;  %19702 = vst [vmem:[#allocation53_spill] sm:$0xff] %v16286_v60  ;;  %v16291_v26 = vsub.f32 %v15961_v2, %v19703_v47  ;;  %v19705_v48 = vand.u32 4294901760, %v15966_v5  ;;  %12967 = vmatmul.mubr.f32.gmra.mrb[12].mxu0 %v522_v45  ;;  %v192_v47 = vsel %vm121_vm1, %v68_v44, 0 }
  0x29   :  { %12969 = vmatprep.mubr.f32.mxu0 %v532_v16  ;;  %v572_v53 = vand.u32 4294901760, %v571_v10  ;;  %v16312_v30 = vand.u32 4294901760, %v192_v47  ;;  %v19709_v16 = vand.u32 4294901760, %v16266_v6  ;;  %v16334_v45 = vand.u32 4294901760, %v195_v1 }
  0x2a   :  { %19704 = vst [vmem:[#allocation54_spill] sm:$0xff] %v16291_v26  ;;  %v16296_v49 = vsub.f32 %v15966_v5, %v19705_v48  ;;  %v19245_v11 = vand.u32 4294901760, %v16291_v26  ;;  %v70_v5 = vld [vmem:[%s19193_s0 + $0xc8] sm:$0xff]  ;;  %v562_v61 = vand.u32 4294901760, %v561_v32  ;;  %v16310_v48 = vsub.f32 %v189_v17, %v16286_v60  ;;  %v71_v32 = vld [vmem:[%s19193_s0 + $0xd0] sm:$0xff]  ;;  %v72_v17 = vld [vmem:[%s19193_s0 + $0xd8] sm:$0xff] }
  0x2b   :  { %19708 = vst [vmem:[#allocation57_spill] sm:$0xff] %v16312_v30  ;;  %v581_v10 = vsub.f32 %v16266_v6, %v19709_v16  ;;  %19711 = vst [vmem:[#allocation59_spill] sm:$0xff] %v16334_v45  ;;  %v19712_v0 = vand.u32 4294901760, %v16271_v57  ;;  %v73_v16 = vld [vmem:[%s19193_s0 + $0xe0] sm:$0xff]  ;;  %v16347_v6 = vsub.f32 %v195_v1, %v16334_v45  ;;  %vm5349_vm2 = vcmask 261120  }
  0x2c   :  { %19706 = vst [vmem:[#allocation55_spill] sm:$0xff] %v16296_v49  ;;  %v19246_v2 = vand.u32 4294901760, %v16296_v49  ;;  %19707 = vst [vmem:[#allocation56_spill] sm:$0xff] %v16310_v48  ;;  %v1046_v37 = vsub.f32 %v16291_v26, %v19245_v11  ;;  %v16332_v11 = vsub.f32 %v192_v47, %v16312_v30  ;;  %12970 = vmatmul.mubr.f32.gmra.mrb[14].mxu0 %v542_v25  ;;  %v201_v25 = vsel %vm121_vm1, %v71_v32, 0 }
  0x2d   :  { %v591_v55 = vsub.f32 %v16271_v57, %v19712_v0  ;;  %12972 = vmatprep.mubr.f32.mxu0 %v552_v4  ;;  %19714 = vst [vmem:[#allocation61_spill] sm:$0xff] %v16347_v6  ;;  %v19715_v0 = vand.u32 4294901760, %v16284_v63  ;;  %v16354_v57 = vand.u32 4294901760, %v201_v25  ;;  %v74_v4 = vld [vmem:[%s19193_s0 + $0xe8] sm:$0xff]  ;;  %v207_v32 = vsel %vm121_vm1, %v73_v16, 0 }
  0x2e   :  { %v1053_v44 = vsub.f32 %v16296_v49, %v19246_v2  ;;  %19710 = vst [vmem:[#allocation58_spill] sm:$0xff] %v16332_v11  ;;  %v198_v2 = vsel %vm121_vm1, %v70_v5, 0  ;;  %v1047_v54 = vand.u32 4294901760, %v1046_v37  ;;  %v204_v5 = vsel %vm121_vm1, %v72_v17, 0  ;;  %v75_v17 = vld [vmem:[%s19193_s0 + $0xf0] sm:$0xff] }
  0x2f   :  { %v16340_v35 = vand.u32 4294901760, %v198_v2  ;;  %v601_v37 = vsub.f32 %v16284_v63, %v19715_v0  ;;  %19716 = vst [vmem:[#allocation62_spill] sm:$0xff] %v16354_v57  ;;  %v16363_v18 = vand.u32 4294901760, %v204_v5  ;;  %v19719_v47 = vand.u32 4294901760, %v16310_v48 }
  0x30   :  { %v1054_v46 = vand.u32 4294901760, %v1053_v44  ;;  %12973 = vmatmul.mubr.f32.gmra.mrb[16].mxu0 %v562_v61  ;;  %v16374_v63 = vsub.f32 %v201_v25, %v16354_v57  ;;  %v16376_v16 = vand.u32 4294901760, %v207_v32  ;;  %v210_v52 = vsel %vm121_vm1, %v74_v4, 0 }
  0x31   :  { %19713 = vst [vmem:[#allocation60_spill] sm:$0xff] %v16340_v35  ;;  %v16361_v1 = vsub.f32 %v198_v2, %v16340_v35  ;;  %19718 = vst [vmem:[#allocation64_spill] sm:$0xff] %v16363_v18  ;;  %12975 = vmatprep.mubr.f32.mxu0 %v572_v53  ;;  %v611_v2 = vsub.f32 %v16310_v48, %v19719_v47  ;;  %v213_v61 = vsel %vm121_vm1, %v75_v17, 0  ;;  %v19722_v53 = vand.u32 4294901760, %v16332_v11 }
  0x32   :  { %v14378_v44 = vpack.c.bf16 %v1054_v46, %v1047_v54  ;;  %v582_v46 = vand.u32 4294901760, %v581_v10  ;;  %v592_v54 = vand.u32 4294901760, %v591_v55  ;;  %19720 = vst [vmem:[#allocation65_spill] sm:$0xff] %v16374_v63  ;;  %19721 = vst [vmem:[#allocation66_spill] sm:$0xff] %v16376_v16  ;;  %v76_v55 = vld [vmem:[%s19193_s0 + $0xf8] sm:$0xff]  ;;  %v602_v10 = vand.u32 4294901760, %v601_v37 }
  0x33   :  { %19717 = vst [vmem:[#allocation63_spill] sm:$0xff] %v16361_v1  ;;  %v621_v0 = vsub.f32 %v16332_v11, %v19722_v53  ;;  %v16388_v25 = vsub.f32 %v204_v5, %v16363_v18  ;;  %v19724_v4 = vand.u32 4294901760, %v16347_v6  ;;  %v16396_v17 = vand.u32 4294901760, %v210_v52  ;;  %v78_v5 = vld [vmem:[%s19193_s0 + $0x108] sm:$0xff] }
  0x34   :  { %14379 = vmatprep.subr.bf16.mxu0 %v14378_v44  ;;  %12976 = vmatmul.mubr.f32.gmra.mrb[18].mxu0 %v582_v46  ;;  %v16398_v37 = vand.u32 4294901760, %v213_v61  ;;  %v216_v53 = vsel %vm121_vm1, %v76_v55, 0  ;;  %v612_v47 = vand.u32 4294901760, %v611_v2  ;;  %v16406_v46 = vsub.f32 %v207_v32, %v16376_v16 }
  0x35   :  { %14381 = vmatpush3.bf16.msra.mxu0 %v14378_v44  ;;  %19723 = vst [vmem:[#allocation67_spill] sm:$0xff] %v16388_v25  ;;  %v77_v44 = vld [vmem:[%s19193_s0 + $0x100] sm:$0xff]  ;;  %v631_v48 = vsub.f32 %v16347_v6, %v19724_v4  ;;  %19725 = vst [vmem:[#allocation68_spill] sm:$0xff] %v16396_v17  ;;  %12978 = vmatprep.mubr.f32.mxu0 %v592_v54  ;;  %v79_v4 = vld [vmem:[%s19193_s0 + $0x110] sm:$0xff]  ;;  %v19728_v6 = vand.u32 4294901760, %v16361_v1  ;;  %v16416_v19 = vand.u32 4294901760, %v216_v53 }
  0x36   :  { %19726 = vst [vmem:[#allocation69_spill] sm:$0xff] %v16398_v37  ;;  %19727 = vst [vmem:[#allocation70_spill] sm:$0xff] %v16406_v46  ;;  %v219_v42 = vsel %vm121_vm1, %v77_v44, 0  ;;  %v222_v54 = vsel %vm121_vm1, %v78_v5, 0  ;;  %v622_v2 = vand.u32 4294901760, %v621_v0  ;;  %v16420_v11 = vsub.f32 %v210_v52, %v16396_v17 }
  0x37   :  { %v641_v55 = vsub.f32 %v16361_v1, %v19728_v6  ;;  %19729 = vst [vmem:[#allocation71_spill] sm:$0xff] %v16416_v19  ;;  %v632_v32 = vand.u32 4294901760, %v631_v48  ;;  %v16423_v44 = vsub.f32 %v213_v61, %v16398_v37  ;;  %v19732_v39 = vand.u32 4294901760, %v16374_v63  ;;  %v80_v48 = vld [vmem:[%s19193_s0 + $0x118] sm:$0xff] }
  0x38   :  { %12979 = vmatmul.mubr.f32.gmra.mrb[20].mxu0 %v602_v10  ;;  %19730 = vst [vmem:[#allocation72_spill] sm:$0xff] %v16420_v11  ;;  %v16429_v1 = vand.u32 4294901760, %v219_v42  ;;  %v225_v5 = vsel %vm121_vm1, %v79_v4, 0  ;;  %v16435_v52 = vand.u32 4294901760, %v222_v54  ;;  %v19735_v61 = vand.u32 4294901760, %v16388_v25 }
  0x39   :  { %19731 = vst [vmem:[#allocation73_spill] sm:$0xff] %v16423_v44  ;;  %12981 = vmatprep.mubr.f32.mxu0 %v612_v47  ;;  %v651_v6 = vsub.f32 %v16374_v63, %v19732_v39  ;;  %v642_v0 = vand.u32 4294901760, %v641_v55  ;;  %v16441_v47 = vsub.f32 %v216_v53, %v16416_v19  ;;  %v81_v39 = vld [vmem:[%s19193_s0 + $0x120] sm:$0xff]  ;;  %v16448_v63 = vand.u32 4294901760, %v225_v5 }
  0x3a   :  { %19733 = vst [vmem:[#allocation74_spill] sm:$0xff] %v16429_v1  ;;  %19734 = vst [vmem:[#allocation75_spill] sm:$0xff] %v16435_v52  ;;  %v661_v10 = vsub.f32 %v16388_v25, %v19735_v61  ;;  %v228_v55 = vsel %vm121_vm1, %v80_v48, 0  ;;  %v19738_v61 = vand.u32 4294901760, %v16406_v46  ;;  %v16455_v25 = vsub.f32 %v219_v42, %v16429_v1  ;;  %v83_v48 = vld [vmem:[%s19193_s0 + $0x130] sm:$0xff] }
  0x3b   :  { %19736 = vst [vmem:[#allocation76_spill] sm:$0xff] %v16441_v47  ;;  %19737 = vst [vmem:[#allocation77_spill] sm:$0xff] %v16448_v63  ;;  %v652_v29 = vand.u32 4294901760, %v651_v6  ;;  %v16461_v4 = vsub.f32 %v222_v54, %v16435_v52  ;;  %v231_v41 = vsel %vm121_vm1, %v81_v39, 0  ;;  %v16465_v6 = vand.u32 4294901760, %v228_v55 }
  0x3c   :  { %12982 = vmatmul.mubr.f32.gmra.mrb[22].mxu0 %v622_v2  ;;  %v671_v53 = vsub.f32 %v16406_v46, %v19738_v61  ;;  %19739 = vst [vmem:[#allocation78_spill] sm:$0xff] %v16455_v25  ;;  %v82_v2 = vld [vmem:[%s19193_s0 + $0x128] sm:$0xff]  ;;  %v662_v28 = vand.u32 4294901760, %v661_v10  ;;  %v19742_v42 = vand.u32 4294901760, %v16420_v11  ;;  %v19743_v46 = vand.u32 4294901760, %v16423_v44 }
  0x3d   :  { %12984 = vmatprep.mubr.f32.mxu0 %v632_v32  ;;  %19740 = vst [vmem:[#allocation79_spill] sm:$0xff] %v16461_v4  ;;  %19741 = vst [vmem:[#allocation80_spill] sm:$0xff] %v16465_v6  ;;  %v16477_v39 = vsub.f32 %v225_v5, %v16448_v63  ;;  %v234_v10 = vsel %vm121_vm1, %v82_v2, 0  ;;  %v16481_v1 = vand.u32 4294901760, %v231_v41  ;;  %v19746_v5 = vand.u32 4294901760, %v16441_v47 }
  0x3e   :  { %v681_v61 = vsub.f32 %v16420_v11, %v19742_v42  ;;  %v691_v54 = vsub.f32 %v16423_v44, %v19743_v46  ;;  %v672_v32 = vand.u32 4294901760, %v671_v53  ;;  %v237_v11 = vsel %vm121_vm1, %v83_v48, 0  ;;  %v85_v46 = vld [vmem:[%s19193_s0 + $0x140] sm:$0xff] }
  0x3f   :  { %19744 = vst [vmem:[#allocation81_spill] sm:$0xff] %v16477_v39  ;;  %19745 = vst [vmem:[#allocation82_spill] sm:$0xff] %v16481_v1  ;;  %v16495_v53 = vsub.f32 %v228_v55, %v16465_v6  ;;  %v16497_v2 = vand.u32 4294901760, %v234_v10  ;;  %v19749_v63 = vand.u32 4294901760, %v16455_v25  ;;  %v16505_v37 = vsub.f32 %v231_v41, %v16481_v1 }
  0x40   :  { %12985 = vmatmul.mubr.f32.gmra.mrb[24].mxu0 %v642_v0  ;;  %v84_v0 = vld [vmem:[%s19193_s0 + $0x138] sm:$0xff]  ;;  %v682_v52 = vand.u32 4294901760, %v681_v61  ;;  %v692_v44 = vand.u32 4294901760, %v691_v54  ;;  %v243_v55 = vsel %vm121_vm1, %v85_v46, 0  ;;  %v19752_v61 = vand.u32 4294901760, %v16461_v4 }
  0x41   :  { %12987 = vmatprep.mubr.f32.mxu0 %v652_v29  ;;  %v701_v29 = vsub.f32 %v16441_v47, %v19746_v5  ;;  %19747 = vst [vmem:[#allocation83_spill] sm:$0xff] %v16495_v53  ;;  %19748 = vst [vmem:[#allocation84_spill] sm:$0xff] %v16497_v2  ;;  %v240_v48 = vsel %vm121_vm1, %v84_v0, 0  ;;  %v711_v19 = vsub.f32 %v16455_v25, %v19749_v63  ;;  %v16507_v5 = vand.u32 4294901760, %v237_v11 }
  0x42   :  { %19750 = vst [vmem:[#allocation85_spill] sm:$0xff] %v16505_v37  ;;  %v721_v54 = vsub.f32 %v16461_v4, %v19752_v61  ;;  %v16521_v41 = vsub.f32 %v15974_v9, %v15988_v14  ;;  %v16525_v46 = vsub.f32 %v234_v10, %v16497_v2  ;;  %v16527_v42 = vand.u32 4294901760, %v240_v48 }
  0x43   :  { %19751 = vst [vmem:[#allocation86_spill] sm:$0xff] %v16507_v5  ;;  %v702_v63 = vand.u32 4294901760, %v701_v29  ;;  %v19755_v25 = vand.u32 4294901760, %v16477_v39  ;;  %v16532_v4 = vand.u32 4294901760, %v243_v55  ;;  %v712_v29 = vand.u32 4294901760, %v711_v19 }
  0x44   :  { %12988 = vmatmul.mubr.f32.gmra.mrb[26].mxu0 %v662_v28  ;;  %v86_v28 = vld [vmem:[%s19193_s0 + $0x148] sm:$0xff]  ;;  %19753 = vst [vmem:[#allocation87_spill] sm:$0xff] %v16525_v46  ;;  %19754 = vst [vmem:[#allocation88_spill] sm:$0xff] %v16527_v42  ;;  %v16536_v9 = vand.u32 4294901760, %v16521_v41  ;;  %v16540_v10 = vsub.f32 %v237_v11, %v16507_v5  ;;  %v19759_v14 = vand.u32 4294901760, %v16495_v53  ;;  %v16553_v0 = vsub.f32 %v240_v48, %v16527_v42 }
  0x45   :  { %12990 = vmatprep.mubr.f32.mxu0 %v672_v32  ;;  %v87_v32 = vld [vmem:[%s19193_s0 + $0x150] sm:$0xff]  ;;  %v731_v61 = vsub.f32 %v16477_v39, %v19755_v25  ;;  %19756 = vst [vmem:[#allocation89_spill] sm:$0xff] %v16532_v4  ;;  %v246_v47 = vsel %vm121_vm1, %v86_v28, 0  ;;  %v88_v25 = vld [vmem:[%s19193_s0 + $0x158] sm:$0xff]  ;;  %v722_v39 = vand.u32 4294901760, %v721_v54  ;;  %v16561_v54 = vsub.f32 %v243_v55, %v16532_v4 }
  0x46   :  { %19757 = vst [vmem:[#allocation90_spill] sm:$0xff] %v16536_v9  ;;  %19758 = vst [vmem:[#allocation91_spill] sm:$0xff] %v16540_v10  ;;  %v1060_v28 = vsub.f32 %v16521_v41, %v16536_v9  ;;  %v16555_v11 = vand.u32 4294901760, %v246_v47  ;;  %v252_v5 = vsel %vm121_vm1, %v88_v25, 0  ;;  %v19764_v48 = vand.u32 4294901760, %v16505_v37 }
  0x47   :  { %19760 = vst [vmem:[#allocation92_spill] sm:$0xff] %v16553_v0  ;;  %19762 = vst [vmem:[#allocation94_spill] sm:$0xff] %v16561_v54  ;;  %v732_v19 = vand.u32 4294901760, %v731_v61  ;;  %v19765_v2 = vand.u32 4294901760, %v16525_v46  ;;  %v19769_v61 = vand.u32 4294901760, %v16540_v10  ;;  %vm15875_vm3 = vmmov 0  }
  0x48   :  { %12991 = vmatmul.mubr.f32.gmra.mrb[28].mxu0 %v682_v52  ;;  %v249_v52 = vsel %vm121_vm1, %v87_v32, 0  ;;  %19761 = vst [vmem:[#allocation93_spill] sm:$0xff] %v16555_v11  ;;  %v89_v32 = vld [vmem:[%s19193_s0 + $0x160] sm:$0xff]  ;;  %v16585_v42 = vsub.f32 %v246_v47, %v16555_v11  ;;  %vm11125_vm4 = vcmask 1040384   ;;  %vm11127_vm5 = vcmask 1041408  }
  0x49   :  { %12993 = vmatprep.mubr.f32.mxu0 %v692_v44  ;;  %v741_v44 = vsub.f32 %v16495_v53, %v19759_v14  ;;  %v16563_v9 = vand.u32 4294901760, %v249_v52  ;;  %v1061_v14 = vand.u32 4294901760, %v1060_v28  ;;  %v751_v53 = vsub.f32 %v16505_v37, %v19764_v48  ;;  %v91_v28 = vld [vmem:[%s19193_s0 + $0x170] sm:$0xff] }
  0x4a   :  { %v255_v55 = vsel %vm121_vm1, %v89_v32, 0  ;;  %v761_v25 = vsub.f32 %v16525_v46, %v19765_v2  ;;  %19767 = vst [vmem:[#allocation97_spill] sm:$0xff] %v16585_v42  ;;  %v261_v47 = vsel %vm121_vm1, %v91_v28, 0  ;;  %vm11129_vm6 = vcmask 1042432  }
  0x4b   :  { %19763 = vst [vmem:[#allocation95_spill] sm:$0xff] %v16563_v9  ;;  %13052 = vmatprep.subr.mxu0 %v1061_v14  ;;  %v742_v4 = vand.u32 4294901760, %v741_v44  ;;  %v16588_v44 = vsub.f32 %v249_v52, %v16563_v9  ;;  %v752_v32 = vand.u32 4294901760, %v751_v53  ;;  %v16594_v46 = vand.u32 4294901760, %v255_v55 }
  0x4c   :  { %12994 = vmatmul.mubr.f32.gmra.mrb[30].mxu0 %v702_v63  ;;  %v90_v63 = vld [vmem:[%s19193_s0 + $0x168] sm:$0xff]  ;;  %v762_v48 = vand.u32 4294901760, %v761_v25  ;;  %v19771_v52 = vand.u32 4294901760, %v16553_v0  ;;  %v19345_v25 = vand.u32 4294901760, %v16585_v42  ;;  %vm11132_vm7 = vcmask 1044480  }
  0x4d   :  { %12996 = vmatprep.mubr.f32.mxu0 %v712_v29  ;;  %v16578_v29 = vand.u32 4294901760, %v252_v5  ;;  %13053 = vmatpush3.msra.mxu0 %v1061_v14  ;;  %19768 = vst [vmem:[#allocation98_spill] sm:$0xff] %v16588_v44  ;;  %v258_v2 = vsel %vm121_vm1, %v90_v63, 0  ;;  %v771_v14 = vsub.f32 %v16540_v10, %v19769_v61  ;;  %19770 = vst [vmem:[#allocation99_spill] sm:$0xff] %v16594_v46  ;;  %v93_v63 = vld [vmem:[%s19193_s0 + $0x180] sm:$0xff]  ;;  %v19774_v61 = vand.u32 4294901760, %v16561_v54 }
  0x4e   :  { %v781_v37 = vsub.f32 %v16553_v0, %v19771_v52  ;;  %v16606_v53 = vand.u32 4294901760, %v258_v2  ;;  %v16618_v0 = vsub.f32 %v255_v55, %v16594_v46  ;;  %v267_v9 = vsel %vm121_vm1, %v93_v63, 0 }
  0x4f   :  { %19766 = vst [vmem:[#allocation96_spill] sm:$0xff] %v16578_v29  ;;  %v791_v10 = vsub.f32 %v16561_v54, %v19774_v61  ;;  %v95_v61 = vld [vmem:[%s19193_s0 + $0x190] sm:$0xff]  ;;  %v801_v54 = vsub.f32 %v16585_v42, %v19345_v25  ;;  %v19779_v63 = vand.u32 4294901760, %v16588_v44  ;;  %vm11134_vm8 = vcmask 1045504  }
  0x50   :  { %12997 = vmatmul.mubr.f32.gmra.mrb[32].mxu0 %v722_v39  ;;  %v92_v39 = vld [vmem:[%s19193_s0 + $0x178] sm:$0xff]  ;;  %19773 = vst [vmem:[#allocation101_spill] sm:$0xff] %v16606_v53  ;;  %19775 = vst [vmem:[#allocation102_spill] sm:$0xff] %v16618_v0  ;;  %v782_v28 = vand.u32 4294901760, %v781_v37  ;;  %vm11136_vm9 = vcmask 1046528  }
  0x51   :  { %12999 = vmatprep.mubr.f32.mxu0 %v732_v19  ;;  %v16604_v19 = vsub.f32 %v252_v5, %v16578_v29  ;;  %v264_v52 = vsel %vm121_vm1, %v92_v39, 0  ;;  %v772_v5 = vand.u32 4294901760, %v771_v14  ;;  %v16620_v29 = vand.u32 4294901760, %v261_v47 }
  0x52   :  { %v16633_v55 = vand.u32 4294901760, %v264_v52  ;;  %v792_v14 = vand.u32 4294901760, %v791_v10  ;;  %v811_v46 = vsub.f32 %v16588_v44, %v19779_v63  ;;  %v16646_v39 = vand.u32 4294901760, %v267_v9 }
  0x53   :  { %19772 = vst [vmem:[#allocation100_spill] sm:$0xff] %v16604_v19  ;;  %19776 = vst [vmem:[#allocation103_spill] sm:$0xff] %v16620_v29  ;;  %v273_v10 = vsel %vm121_vm1, %v95_v61, 0  ;;  %v19782_v25 = vand.u32 4294901760, %v16604_v19  ;;  %v802_v61 = vand.u32 4294901760, %v801_v54 }
  0x54   :  { %13000 = vmatmul.mubr.f32.gmra.mrb[34].mxu0 %v742_v4  ;;  %v94_v4 = vld [vmem:[%s19193_s0 + $0x188] sm:$0xff]  ;;  %19778 = vst [vmem:[#allocation105_spill] sm:$0xff] %v16633_v55  ;;  %19781 = vst [vmem:[#allocation107_spill] sm:$0xff] %v16646_v39  ;;  %v812_v44 = vand.u32 4294901760, %v811_v46  ;;  %v16664_v42 = vand.u32 4294901760, %v273_v10  ;;  %v99_v46 = vld [vmem:[%s19193_s0 + $0x1b0] sm:$0xff] }
  0x55   :  { %13002 = vmatprep.mubr.f32.mxu0 %v752_v32  ;;  %v16631_v32 = vsub.f32 %v258_v2, %v16606_v53  ;;  %v270_v11 = vsel %vm121_vm1, %v94_v4, 0  ;;  %v16644_v2 = vsub.f32 %v261_v47, %v16620_v29  ;;  %v821_v63 = vsub.f32 %v16604_v19, %v19782_v25  ;;  %v97_v47 = vld [vmem:[%s19193_s0 + $0x1a0] sm:$0xff] }
  0x56   :  { %v16659_v37 = vand.u32 4294901760, %v270_v11  ;;  %19785 = vst [vmem:[#allocation110_spill] sm:$0xff] %v16664_v42  ;;  %v19786_v29 = vand.u32 4294901760, %v16618_v0  ;;  %v279_v54 = vsel %vm121_vm1, %v97_v47, 0  ;;  %v285_v47 = vsel %vm121_vm1, %v99_v46, 0 }
  0x57   :  { %19777 = vst [vmem:[#allocation104_spill] sm:$0xff] %v16631_v32  ;;  %19780 = vst [vmem:[#allocation106_spill] sm:$0xff] %v16644_v2  ;;  %v19792_v53 = vand.u32 4294901760, %v16644_v2 }
  0x58   :  { %13003 = vmatmul.mubr.f32.gmra.mrb[36].mxu0 %v762_v48  ;;  %v96_v48 = vld [vmem:[%s19193_s0 + $0x198] sm:$0xff]  ;;  %19784 = vst [vmem:[#allocation109_spill] sm:$0xff] %v16659_v37  ;;  %v831_v25 = vsub.f32 %v16618_v0, %v19786_v29  ;;  %v19788_v29 = vand.u32 4294901760, %v16631_v32  ;;  %v16686_v0 = vsub.f32 %v270_v11, %v16659_v37  ;;  %v16699_v11 = vand.u32 4294901760, %v279_v54 }
  0x59   :  { %13005 = vmatprep.mubr.f32.mxu0 %v772_v5  ;;  %v16657_v5 = vsub.f32 %v264_v52, %v16633_v55  ;;  %v16671_v52 = vsub.f32 %v267_v9, %v16646_v39  ;;  %v276_v19 = vsel %vm121_vm1, %v96_v48, 0  ;;  %v16689_v48 = vsub.f32 %v273_v10, %v16664_v42  ;;  %v100_v10 = vld [vmem:[%s19193_s0 + $0x1b8] sm:$0xff] }
  0x5a   :  { %v841_v4 = vsub.f32 %v16631_v32, %v19788_v29  ;;  %19789 = vst [vmem:[#allocation112_spill] sm:$0xff] %v16686_v0  ;;  %v16691_v39 = vand.u32 4294901760, %v276_v19  ;;  %v851_v29 = vsub.f32 %v16644_v2, %v19792_v53  ;;  %19793 = vst [vmem:[#allocation115_spill] sm:$0xff] %v16699_v11  ;;  %v101_v53 = vld [vmem:[%s19193_s0 + $0x1c0] sm:$0xff]  ;;  %v288_v37 = vsel %vm121_vm1, %v100_v10, 0 }
  0x5b   :  { %19783 = vst [vmem:[#allocation108_spill] sm:$0xff] %v16657_v5  ;;  %19787 = vst [vmem:[#allocation111_spill] sm:$0xff] %v16671_v52  ;;  %v19800_v10 = vand.u32 4294901760, %v16686_v0 }
  0x5c   :  { %13006 = vmatmul.mubr.f32.gmra.mrb[38].mxu0 %v782_v28  ;;  %v98_v28 = vld [vmem:[%s19193_s0 + $0x1a8] sm:$0xff]  ;;  %19790 = vst [vmem:[#allocation113_spill] sm:$0xff] %v16689_v48  ;;  %19791 = vst [vmem:[#allocation114_spill] sm:$0xff] %v16691_v39  ;;  %v842_v9 = vand.u32 4294901760, %v841_v4  ;;  %v16717_v32 = vsub.f32 %v276_v19, %v16691_v39  ;;  %v852_v42 = vand.u32 4294901760, %v851_v29  ;;  %v103_v19 = vld [vmem:[%s19193_s0 + $0x1d0] sm:$0xff] }
  0x5d   :  { %13008 = vmatprep.mubr.f32.mxu0 %v792_v14  ;;  %v822_v14 = vand.u32 4294901760, %v821_v63  ;;  %v282_v55 = vsel %vm121_vm1, %v98_v28, 0  ;;  %v832_v63 = vand.u32 4294901760, %v831_v25  ;;  %v16710_v25 = vand.u32 4294901760, %v285_v47  ;;  %v102_v4 = vld [vmem:[%s19193_s0 + $0x1c8] sm:$0xff] }
  0x5e   :  { %19797 = vst [vmem:[#allocation118_spill] sm:$0xff] %v16717_v32 }
  0x5f   :  { %19796 = vst [vmem:[#allocation117_spill] sm:$0xff] %v16710_v25 }
  0x60   :  { %13009 = vmatmul.mubr.f32.gmra.mrb[40].mxu0 %v802_v61  ;;  %v19794_v61 = vand.u32 4294901760, %v16657_v5 }
  0x61   :  { %13011 = vmatprep.mubr.f32.mxu0 %v812_v44  ;;  %v16708_v44 = vand.u32 4294901760, %v282_v55 }
  0x62   :  { %v861_v28 = vsub.f32 %v16657_v5, %v19794_v61  ;;  %v19798_v61 = vand.u32 4294901760, %v16671_v52  ;;  %v16723_v5 = vsub.f32 %v279_v54, %v16699_v11  ;;  %v16739_v54 = vpack.c.bf16 %v16296_v49, %v16291_v26 }
  0x63   :  { %19795 = vst [vmem:[#allocation116_spill] sm:$0xff] %v16708_v44  ;;  %v16745_v2 = vsub.f32 %v282_v55, %v16708_v44  ;;  %v16754_v49 = vand.u32 4294901760, %v288_v37 }
  0x64   :  { %13012 = vmatmul.mubr.f32.gmra.mrb[42].mxu0 %v822_v14  ;;  %v871_v46 = vsub.f32 %v16671_v52, %v19798_v61  ;;  %19799 = vst [vmem:[#allocation119_spill] sm:$0xff] %v16723_v5  ;;  %v291_v14 = vsel %vm121_vm1, %v101_v53, 0  ;;  %v862_v29 = vand.u32 4294901760, %v861_v28  ;;  %v881_v61 = vsub.f32 %v16686_v0, %v19800_v10 }
  0x65   :  { %13014 = vmatprep.mubr.f32.mxu0 %v832_v63  ;;  %v16735_v63 = vpack.c.bf16 %v16014_v24, %v16008_v22  ;;  %19801 = vst [vmem:[#allocation120_spill] sm:$0xff] %v16745_v2  ;;  %v16748_v53 = vsub.f32 %v285_v47, %v16710_v25  ;;  %v19803_v52 = vand.u32 4294901760, %v16689_v48  ;;  %19804 = vst [vmem:[#allocation122_spill] sm:$0xff] %v16754_v49  ;;  %v294_v28 = vsel %vm121_vm1, %v102_v4, 0 }
  0x66   :  { %v872_v10 = vand.u32 4294901760, %v871_v46  ;;  %v16759_v26 = vand.u32 4294901760, %v291_v14  ;;  %v882_v46 = vand.u32 4294901760, %v881_v61  ;;  %v19807_v4 = vand.u32 4294901760, %v16717_v32 }
  0x67   :  { %19802 = vst [vmem:[#allocation121_spill] sm:$0xff] %v16748_v53  ;;  %v891_v24 = vsub.f32 %v16689_v48, %v19803_v52  ;;  %14383 = vmatprep.subr.bf16.mxu0 %v16735_v63  ;;  %v104_v52 = vld [vmem:[%s19193_s0 + $0x1d8] sm:$0xff]  ;;  %v16767_v48 = vand.u32 4294901760, %v294_v28  ;;  %v16776_v55 = vsub.f32 %v288_v37, %v16754_v49  ;;  %v19810_v22 = vand.u32 4294901760, %v16723_v5  ;;  %v106_v37 = vld [vmem:[%s19193_s0 + $0x1e8] sm:$0xff] }
  0x68   :  { %13015 = vmatmul.mubr.f32.gmra.mrb[44].mxu0 %v842_v9  ;;  %19805 = vst [vmem:[#allocation123_spill] sm:$0xff] %v16759_v26  ;;  %v297_v9 = vsel %vm121_vm1, %v103_v19, 0  ;;  %v901_v19 = vsub.f32 %v16717_v32, %v19807_v4  ;;  %v16784_v44 = vsub.f32 %v291_v14, %v16759_v26  ;;  %v19812_v4 = vand.u32 4294901760, %v16745_v2  ;;  %v107_v14 = vld [vmem:[%s19193_s0 + $0x1f0] sm:$0xff] }
  0x69   :  { %13017 = vmatprep.mubr.f32.mxu0 %v852_v42  ;;  %19806 = vst [vmem:[#allocation124_spill] sm:$0xff] %v16767_v48  ;;  %v105_v42 = vld [vmem:[%s19193_s0 + $0x1e0] sm:$0xff]  ;;  %19808 = vst [vmem:[#allocation125_spill] sm:$0xff] %v16776_v55  ;;  %v16778_v0 = vand.u32 4294901760, %v297_v9  ;;  %v892_v47 = vand.u32 4294901760, %v891_v24  ;;  %v911_v25 = vsub.f32 %v16723_v5, %v19810_v22  ;;  %v19813_v24 = vand.u32 4294901760, %v16748_v53 }
  0x6a   :  { %19811 = vst [vmem:[#allocation127_spill] sm:$0xff] %v16784_v44  ;;  %v303_v61 = vsel %vm121_vm1, %v105_v42, 0  ;;  %v16798_v22 = vsub.f32 %v294_v28, %v16767_v48  ;;  %v306_v28 = vsel %vm121_vm1, %v106_v37, 0 }
  0x6b   :  { %19809 = vst [vmem:[#allocation126_spill] sm:$0xff] %v16778_v0  ;;  %v931_v32 = vsub.f32 %v16748_v53, %v19813_v24  ;;  %v16805_v5 = vsub.f32 %v297_v9, %v16778_v0  ;;  %v16810_v53 = vand.u32 4294901760, %v303_v61  ;;  %v16825_v37 = vand.u32 4294901760, %v306_v28 }
  0x6c   :  { %13018 = vmatmul.mubr.f32.gmra.mrb[46].mxu0 %v862_v29  ;;  %v300_v29 = vsel %vm121_vm1, %v104_v52, 0  ;;  %19814 = vst [vmem:[#allocation128_spill] sm:$0xff] %v16798_v22  ;;  %v902_v52 = vand.u32 4294901760, %v901_v19 }
  0x6d   :  { %13020 = vmatprep.mubr.f32.mxu0 %v872_v10  ;;  %v921_v10 = vsub.f32 %v16745_v2, %v19812_v4  ;;  %19815 = vst [vmem:[#allocation129_spill] sm:$0xff] %v16805_v5  ;;  %v16807_v26 = vand.u32 4294901760, %v300_v29  ;;  %v912_v4 = vand.u32 4294901760, %v911_v25  ;;  %19817 = vst [vmem:[#allocation131_spill] sm:$0xff] %v16810_v53  ;;  %v309_v2 = vsel %vm121_vm1, %v107_v14, 0 }
  0x6e   :  { %v932_v42 = vand.u32 4294901760, %v931_v32  ;;  %19819 = vst [vmem:[#allocation132_spill] sm:$0xff] %v16825_v37  ;;  %v19820_v14 = vand.u32 4294901760, %v16784_v44  ;;  %v16831_v32 = vsub.f32 %v303_v61, %v16810_v53 }
  0x6f   :  { %19816 = vst [vmem:[#allocation130_spill] sm:$0xff] %v16807_v26  ;;  %v922_v19 = vand.u32 4294901760, %v921_v10  ;;  %v16823_v0 = vsub.f32 %v300_v29, %v16807_v26 }
  0x70   :  { %13021 = vmatmul.mubr.f32.gmra.mrb[48].mxu0 %v882_v46  ;;  %v108_v46 = vld [vmem:[%s19193_s0 + $0x1f8] sm:$0xff]  ;;  %v951_v10 = vsub.f32 %v16784_v44, %v19820_v14  ;;  %19821 = vst [vmem:[#allocation133_spill] sm:$0xff] %v16831_v32  ;;  %v19825_v14 = vand.u32 4294901760, %v16805_v5 }
  0x71   :  { %13023 = vmatprep.mubr.f32.mxu0 %v892_v47  ;;  %v19818_v47 = vand.u32 4294901760, %v16776_v55  ;;  %v312_v9 = vsel %vm121_vm1, %v108_v46, 0  ;;  %v19410_v46 = vand.u32 4294901760, %v16831_v32 }
  0x72   :  { %v16843_v26 = vand.u32 4294901760, %v312_v9  ;;  %v952_v61 = vand.u32 4294901760, %v951_v10  ;;  %v971_v44 = vsub.f32 %v16805_v5, %v19825_v14 }
  0x73   :  { %v941_v25 = vsub.f32 %v16776_v55, %v19818_v47  ;;  %v19823_v47 = vand.u32 4294901760, %v16798_v22  ;;  %v19406_v55 = vand.u32 4294901760, %v16823_v0 }
  0x74   :  { %13024 = vmatmul.mubr.f32.gmra.mrb[50].mxu0 %v902_v52  ;;  %v16833_v52 = vand.u32 4294901760, %v309_v2  ;;  %19824 = vst [vmem:[#allocation135_spill] sm:$0xff] %v16843_v26  ;;  %v972_v10 = vand.u32 4294901760, %v971_v44 }
  0x75   :  { %13026 = vmatprep.mubr.f32.mxu0 %v912_v4  ;;  %v961_v24 = vsub.f32 %v16798_v22, %v19823_v47  ;;  %v942_v29 = vand.u32 4294901760, %v941_v25  ;;  %v16841_v4 = vsub.f32 %v306_v28, %v16825_v37  ;;  %v981_v28 = vsub.f32 %v16823_v0, %v19406_v55 }
  0x76   :  { %19822 = vst [vmem:[#allocation134_spill] sm:$0xff] %v16833_v52  ;;  %v16850_v53 = vsub.f32 %v309_v2, %v16833_v52  ;;  %v991_v47 = vsub.f32 %v16831_v32, %v19410_v46  ;;  %v19843_v46 = vld [vmem:[#allocation107_spill] sm:$0xff] }
  0x77   :  { %v19409_v25 = vand.u32 4294901760, %v16841_v4 }
  0x78   :  { %13027 = vmatmul.mubr.f32.gmra.mrb[52].mxu0 %v922_v19  ;;  %19826 = vst [vmem:[#allocation136_spill] sm:$0xff] %v16850_v53  ;;  %v962_v19 = vand.u32 4294901760, %v961_v24  ;;  %v19408_v2 = vand.u32 4294901760, %v16850_v53  ;;  %v992_v55 = vand.u32 4294901760, %v991_v47  ;;  %v19832_v47 = vld [vmem:[#allocation84_spill] sm:$0xff] }
  0x79   :  { %13029 = vmatprep.mubr.f32.mxu0 %v932_v42  ;;  %v16857_v42 = vsub.f32 %v312_v9, %v16843_v26  ;;  %v1001_v24 = vsub.f32 %v16841_v4, %v19409_v25  ;;  %v19842_v25 = vld [vmem:[#allocation105_spill] sm:$0xff] }
  0x7a   :  { %v1011_v44 = vsub.f32 %v16850_v53, %v19408_v2  ;;  %v19841_v2 = vld [vmem:[#allocation103_spill] sm:$0xff] }
  0x7b   :  { %v19407_v14 = vand.u32 4294901760, %v16857_v42  ;;  %v1002_v9 = vand.u32 4294901760, %v1001_v24  ;;  %v19834_v24 = vld [vmem:[#allocation88_spill] sm:$0xff] }
  0x7c   :  { %13030 = vmatmul.mubr.f32.gmra.mrb[54].mxu0 %v942_v29  ;;  %v982_v29 = vand.u32 4294901760, %v981_v28 }
  0x7d   :  { %13032 = vmatprep.mubr.f32.mxu0 %v952_v61  ;;  %v1021_v61 = vsub.f32 %v16857_v42, %v19407_v14  ;;  %v19840_v14 = vld [vmem:[#allocation101_spill] sm:$0xff] }
  0x7f   :  { %v1022_v28 = vand.u32 4294901760, %v1021_v61  ;;  %v19837_v61 = vld [vmem:[#allocation95_spill] sm:$0xff] }
  0x80   :  { %13033 = vmatmul.mubr.f32.gmra.mrb[56].mxu0 %v962_v19  ;;  %v1012_v19 = vand.u32 4294901760, %v1011_v44  ;;  %v19835_v44 = vld [vmem:[#allocation89_spill] sm:$0xff] }
  0x81   :  { %13035 = vmatprep.mubr.f32.mxu0 %v972_v10  ;;  %v19831_v10 = vld [vmem:[#allocation77_spill] sm:$0xff] }
  0x84   :  { %13036 = vmatmul.mubr.f32.gmra.mrb[58].mxu0 %v982_v29  ;;  %v19833_v29 = vld [vmem:[#allocation86_spill] sm:$0xff] }
  0x85   :  { %13038 = vmatprep.mubr.f32.mxu0 %v992_v55  ;;  %v19830_v55 = vld [vmem:[#allocation75_spill] sm:$0xff] }
  0x88   :  { %13039 = vmatmul.mubr.f32.gmra.mrb[60].mxu0 %v1002_v9  ;;  %v19836_v9 = vld [vmem:[#allocation93_spill] sm:$0xff] }
  0x89   :  { %13041 = vmatprep.mubr.f32.mxu0 %v1012_v19  ;;  %v19838_v19 = vld [vmem:[#allocation96_spill] sm:$0xff] }
  0x8c   :  { %13042 = vmatmul.mubr.f32.gmra.mrb[62].mxu0 %v1022_v28  ;;  %v19839_v28 = vld [vmem:[#allocation99_spill] sm:$0xff] }
  0x8d   :  { %13054 = vmatprep.mubr.f32.mxu0 %v16004_v20  ;;  %v19912_v20 = vld [vmem:[#allocation121_spill] sm:$0xff] }
  0x90   :  { %13055 = vmatmul.mubr.f32.vlgmr.msra.gmra.mrb[0].mxu0 %v16006_v21  ;;  %v19911_v21 = vld [vmem:[#allocation120_spill] sm:$0xff] }
  0x91   :  { %14385 = vmatpush3.bf16.msra.mxu0 %v16735_v63  ;;  %13057 = vmatprep.mubr.f32.mxu0 %v16027_v31  ;;  %v19828_v63 = vld [vmem:[#allocation71_spill] sm:$0xff] }
  0x92   :  { %14387 = vmatprep.subr.bf16.mxu0 %v16739_v54  ;;  %v19910_v31 = vld [vmem:[#allocation119_spill] sm:$0xff] }
  0x94   :  { %13058 = vmatmul.mubr.f32.gmra.mrb[2].mxu0 %v16031_v33  ;;  %v19908_v33 = vld [vmem:[#allocation113_spill] sm:$0xff] }
  0x95   :  { %13060 = vmatprep.mubr.f32.mxu0 %v16033_v34  ;;  %14389 = vmatpush3.bf16.msra.mxu0 %v16739_v54  ;;  %v19829_v54 = vld [vmem:[#allocation74_spill] sm:$0xff]  ;;  %v19907_v34 = vld [vmem:[#allocation112_spill] sm:$0xff] }
  0x96   :  { %13158 = vmatprep.subr.mxu0 %v16521_v41 }
  0x98   :  { %13061 = vmatmul.mubr.f32.gmra.mrb[4].mxu0 %v16053_v43  ;;  %v19905_v43 = vld [vmem:[#allocation108_spill] sm:$0xff] }
  0x99   :  { %13063 = vmatprep.mubr.f32.mxu0 %v16096_v3  ;;  %13159 = vmatpush3.msra.mxu0 %v16521_v41  ;;  %v19827_v41 = vld [vmem:[#allocation69_spill] sm:$0xff]  ;;  %v19904_v3 = vld [vmem:[#allocation106_spill] sm:$0xff] }
  0x9a   :  { %14391 = vmatprep.subr.bf16.mxu0 %v15985_v13 }
  0x9c   :  { %13064 = vmatmul.mubr.f32.gmra.mrb[6].mxu0 %v16103_v15  ;;  %v19903_v15 = vld [vmem:[#allocation104_spill] sm:$0xff] }
  0x9d   :  { %13066 = vmatprep.mubr.f32.mxu0 %v16114_v23  ;;  %v19902_v23 = vld [vmem:[#allocation102_spill] sm:$0xff] }
  0xa0   :  { %13067 = vmatmul.mubr.f32.gmra.mrb[8].mxu0 %v16121_v38  ;;  %v19901_v38 = vld [vmem:[#allocation100_spill] sm:$0xff] }
  0xa1   :  { %13069 = vmatprep.mubr.f32.mxu0 %v16123_v40  ;;  %v19900_v40 = vld [vmem:[#allocation98_spill] sm:$0xff] }
  0xa4   :  { %13070 = vmatmul.mubr.f32.gmra.mrb[10].mxu0 %v16141_v56  ;;  %v19899_v56 = vld [vmem:[#allocation97_spill] sm:$0xff] }
  0xa5   :  { %13072 = vmatprep.mubr.f32.mxu0 %v16147_v59  ;;  %v19898_v59 = vld [vmem:[#allocation94_spill] sm:$0xff] }
  0xa8   :  { %13073 = vmatmul.mubr.f32.gmra.mrb[12].mxu0 %v16167_v12  ;;  %v19897_v12 = vld [vmem:[#allocation92_spill] sm:$0xff] }
  0xa9   :  { %13075 = vmatprep.mubr.f32.mxu0 %v16190_v58  ;;  %v19896_v58 = vld [vmem:[#allocation91_spill] sm:$0xff] }
  0xac   :  { %13076 = vmatmul.mubr.f32.gmra.mrb[14].mxu0 %v16207_v62  ;;  %v19895_v62 = vld [vmem:[#allocation87_spill] sm:$0xff] }
  0xad   :  { %13078 = vmatprep.mubr.f32.mxu0 %v16209_v51  ;;  %v19894_v51 = vld [vmem:[#allocation85_spill] sm:$0xff] }
  0xb0   :  { %13079 = vmatmul.mubr.f32.gmra.mrb[16].mxu0 %v16226_v36  ;;  %v19893_v36 = vld [vmem:[#allocation83_spill] sm:$0xff] }
  0xb1   :  { %13081 = vmatprep.mubr.f32.mxu0 %v16234_v7  ;;  %v19892_v7 = vld [vmem:[#allocation81_spill] sm:$0xff] }
  0xb4   :  { %13082 = vmatmul.mubr.f32.gmra.mrb[18].mxu0 %v16249_v8  ;;  %v19891_v8 = vld [vmem:[#allocation79_spill] sm:$0xff] }
  0xb5   :  { %13084 = vmatprep.mubr.f32.mxu0 %v16251_v50  ;;  %v19890_v50 = vld [vmem:[#allocation78_spill] sm:$0xff] }
  0xb8   :  { %13085 = vmatmul.mubr.f32.gmra.mrb[20].mxu0 %v16268_v27  ;;  %v19889_v27 = vld [vmem:[#allocation76_spill] sm:$0xff] }
  0xb9   :  { %13087 = vmatprep.mubr.f32.mxu0 %v16286_v60  ;;  %v19888_v60 = vld [vmem:[#allocation73_spill] sm:$0xff] }
  0xbc   :  { %13088 = vmatmul.mubr.f32.gmra.mrb[22].mxu0 %v16312_v30  ;;  %v19887_v30 = vld [vmem:[#allocation72_spill] sm:$0xff] }
  0xbd   :  { %13090 = vmatprep.mubr.f32.mxu0 %v16334_v45  ;;  %v19886_v45 = vld [vmem:[#allocation70_spill] sm:$0xff] }
  0xc0   :  { %13091 = vmatmul.mubr.f32.gmra.mrb[24].mxu0 %v16340_v35  ;;  %v19885_v35 = vld [vmem:[#allocation67_spill] sm:$0xff] }
  0xc1   :  { %13093 = vmatprep.mubr.f32.mxu0 %v16354_v57  ;;  %v19884_v57 = vld [vmem:[#allocation65_spill] sm:$0xff] }
  0xc4   :  { %13094 = vmatmul.mubr.f32.gmra.mrb[26].mxu0 %v16363_v18  ;;  %v19883_v18 = vld [vmem:[#allocation63_spill] sm:$0xff] }
  0xc5   :  { %13096 = vmatprep.mubr.f32.mxu0 %v16376_v16  ;;  %v19882_v16 = vld [vmem:[#allocation61_spill] sm:$0xff] }
  0xc8   :  { %13097 = vmatmul.mubr.f32.gmra.mrb[28].mxu0 %v16396_v17  ;;  %v19881_v17 = vld [vmem:[#allocation58_spill] sm:$0xff] }
  0xc9   :  { %13099 = vmatprep.mubr.f32.mxu0 %v19827_v41  ;;  %v19880_v41 = vld [vmem:[#allocation56_spill] sm:$0xff] }
  0xcc   :  { %13100 = vmatmul.mubr.f32.gmra.mrb[30].mxu0 %v19828_v63  ;;  %v19879_v63 = vld [vmem:[#allocation52_spill] sm:$0xff] }
  0xcd   :  { %13102 = vmatprep.mubr.f32.mxu0 %v19829_v54  ;;  %v19878_v54 = vld [vmem:[#allocation51_spill] sm:$0xff] }
  0xd0   :  { %13103 = vmatmul.mubr.f32.gmra.mrb[32].mxu0 %v19830_v55  ;;  %v19877_v55 = vld [vmem:[#allocation49_spill] sm:$0xff] }
  0xd1   :  { %13105 = vmatprep.mubr.f32.mxu0 %v19831_v10  ;;  %v19876_v10 = vld [vmem:[#allocation46_spill] sm:$0xff] }
  0xd4   :  { %13106 = vmatmul.mubr.f32.gmra.mrb[34].mxu0 %v16465_v6  ;;  %v19875_v6 = vld [vmem:[#allocation45_spill] sm:$0xff] }
  0xd5   :  { %13108 = vmatprep.mubr.f32.mxu0 %v16481_v1  ;;  %v19874_v1 = vld [vmem:[#allocation42_spill] sm:$0xff] }
  0xd8   :  { %13109 = vmatmul.mubr.f32.gmra.mrb[36].mxu0 %v19832_v47  ;;  %v19873_v47 = vld [vmem:[#allocation41_spill] sm:$0xff] }
  0xd9   :  { %13111 = vmatprep.mubr.f32.mxu0 %v19833_v29  ;;  %v19844_v29 = vld [vmem:[#allocation109_spill] sm:$0xff] }
  0xdc   :  { %13112 = vmatmul.mubr.f32.gmra.mrb[38].mxu0 %v19834_v24  ;;  %v19845_v24 = vld [vmem:[#allocation110_spill] sm:$0xff] }
  0xdd   :  { %13114 = vmatprep.mubr.f32.mxu0 %v19835_v44  ;;  %v19868_v44 = vld [vmem:[#allocation30_spill] sm:$0xff] }
  0xe0   :  { %13115 = vmatmul.mubr.f32.gmra.mrb[40].mxu0 %v19836_v9  ;;  %v19867_v9 = vld [vmem:[#allocation29_spill] sm:$0xff] }
  0xe1   :  { %13117 = vmatprep.mubr.f32.mxu0 %v19837_v61  ;;  %v19846_v61 = vld [vmem:[#allocation116_spill] sm:$0xff] }
  0xe4   :  { %13118 = vmatmul.mubr.f32.gmra.mrb[42].mxu0 %v19838_v19  ;;  %v19847_v19 = vld [vmem:[#allocation117_spill] sm:$0xff] }
  0xe5   :  { %13120 = vmatprep.mubr.f32.mxu0 %v19839_v28  ;;  %v19866_v28 = vld [vmem:[#allocation28_spill] sm:$0xff] }
  0xe8   :  { %13121 = vmatmul.mubr.f32.gmra.mrb[44].mxu0 %v19840_v14  ;;  %v19848_v14 = vld [vmem:[#allocation123_spill] sm:$0xff] }
  0xe9   :  { %13123 = vmatprep.mubr.f32.mxu0 %v19841_v2  ;;  %v19865_v2 = vld [vmem:[#allocation25_spill] sm:$0xff] }
  0xec   :  { %13124 = vmatmul.mubr.f32.gmra.mrb[46].mxu0 %v19842_v25  ;;  %v19849_v25 = vld [vmem:[#allocation126_spill] sm:$0xff] }
  0xed   :  { %13126 = vmatprep.mubr.f32.mxu0 %v19843_v46  ;;  %v19850_v46 = vld [vmem:[#allocation130_spill] sm:$0xff] }
  0xf0   :  { %13127 = vmatmul.mubr.f32.gmra.mrb[48].mxu0 %v19844_v29  ;;  %v19851_v29 = vld [vmem:[#allocation131_spill] sm:$0xff] }
  0xf1   :  { %13129 = vmatprep.mubr.f32.mxu0 %v19845_v24  ;;  %v19864_v24 = vld [vmem:[#allocation23_spill] sm:$0xff] }
  0xf4   :  { %13130 = vmatmul.mubr.f32.gmra.mrb[50].mxu0 %v16691_v39  ;;  %v19863_v39 = vld [vmem:[#allocation20_spill] sm:$0xff] }
  0xf5   :  { %13132 = vmatprep.mubr.f32.mxu0 %v16699_v11 }
  0xf8   :  { %13133 = vmatmul.mubr.f32.gmra.mrb[52].mxu0 %v19846_v61  ;;  %v19852_v61 = vld [vmem:[#allocation11_spill] sm:$0xff] }
  0xf9   :  { %13135 = vmatprep.mubr.f32.mxu0 %v19847_v19  ;;  %v19853_v19 = vld [vmem:[#allocation12_spill] sm:$0xff] }
  0xfc   :  { %13136 = vmatmul.mubr.f32.gmra.mrb[54].mxu0 %v16754_v49 }
  0xfd   :  { %13138 = vmatprep.mubr.f32.mxu0 %v19848_v14  ;;  %v19854_v14 = vld [vmem:[#allocation16_spill] sm:$0xff] }
 0x100   :  { %13139 = vmatmul.mubr.f32.gmra.mrb[56].mxu0 %v16767_v48  ;;  %v19855_v48 = vld [vmem:[#allocation6_spill] sm:$0xff] }
 0x101   :  { %13141 = vmatprep.mubr.f32.mxu0 %v19849_v25  ;;  %v19856_v25 = vld [vmem:[#allocation17_spill] sm:$0xff] }
 0x104   :  { %13142 = vmatmul.mubr.f32.gmra.mrb[58].mxu0 %v19850_v46  ;;  %v19857_v46 = vld [vmem:[#allocation18_spill] sm:$0xff] }
 0x105   :  { %13144 = vmatprep.mubr.f32.mxu0 %v19851_v29  ;;  %v19861_v29 = vld [vmem:[#allocation10_spill] sm:$0xff] }
 0x106   :  { %v19862_v49 = vand.u32 4294901760, %v19861_v29  ;;  %v19872_v29 = vld [vmem:[#allocation38_spill] sm:$0xff] }
 0x108   :  { %13145 = vmatmul.mubr.f32.gmra.mrb[60].mxu0 %v16825_v37  ;;  %v19858_v37 = vld [vmem:[#allocation5_spill] sm:$0xff] }
 0x109   :  { %13147 = vmatprep.mubr.f32.mxu0 %v16833_v52  ;;  %v19859_v52 = vld [vmem:[#allocation9_spill] sm:$0xff] }
 0x10c   :  { %13148 = vmatmul.mubr.f32.gmra.mrb[62].mxu0 %v16843_v26  ;;  %v19860_v26 = vand.u32 4294901760, %v19859_v52  ;;  %v19869_v52 = vld [vmem:[#allocation33_spill] sm:$0xff] }
 0x10d   :  { %13160 = vmatprep.mubr.f32.mxu0 %v19852_v61 }
 0x10e   :  { %v16956_v11 = vpack.c.bf16 %v19862_v49, %v19860_v26  ;;  %v19870_v26 = vld [vmem:[#allocation34_spill] sm:$0xff]  ;;  %v19871_v49 = vld [vmem:[#allocation36_spill] sm:$0xff] }
 0x110   :  { %13161 = vmatmul.mubr.f32.vlgmr.msra.gmra.mrb[0].mxu0 %v19853_v19 }
 0x111   :  { %14393 = vmatpush3.bf16.msra.mxu0 %v15985_v13  ;;  %13163 = vmatprep.mubr.f32.mxu0 %v19854_v14 }
 0x112   :  { %14395 = vmatprep.subr.bf16.mxu0 %v19855_v48 }
 0x114   :  { %13164 = vmatmul.mubr.f32.gmra.mrb[2].mxu0 %v19856_v25 }
 0x115   :  { %13166 = vmatprep.mubr.f32.mxu0 %v19857_v46  ;;  %14397 = vmatpush3.bf16.msra.mxu0 %v19855_v48  ;;  %v19909_v48 = vld [vmem:[#allocation118_spill] sm:$0xff] }
 0x116   :  { %13264 = vmatprep.subr.mxu0 %v19858_v37 }
 0x118   :  { %13167 = vmatmul.mubr.f32.gmra.mrb[4].mxu0 %v19863_v39 }
 0x119   :  { %13169 = vmatprep.mubr.f32.mxu0 %v19864_v24  ;;  %13265 = vmatpush3.msra.mxu0 %v19858_v37  ;;  %v19906_v37 = vld [vmem:[#allocation111_spill] sm:$0xff] }
 0x11a   :  { %14399 = vmatprep.subr.bf16.mxu0 %v16956_v11 }
 0x11c   :  { %13170 = vmatmul.mubr.f32.gmra.mrb[6].mxu0 %v19865_v2 }
 0x11d   :  { %13172 = vmatprep.mubr.f32.mxu0 %v19866_v28 }
 0x120   :  { %13173 = vmatmul.mubr.f32.gmra.mrb[8].mxu0 %v19867_v9 }
 0x121   :  { %13175 = vmatprep.mubr.f32.mxu0 %v19868_v44 }
 0x124   :  { %13176 = vmatmul.mubr.f32.gmra.mrb[10].mxu0 %v19869_v52 }
 0x125   :  { %13178 = vmatprep.mubr.f32.mxu0 %v19870_v26 }
 0x128   :  { %13179 = vmatmul.mubr.f32.gmra.mrb[12].mxu0 %v19871_v49 }
 0x129   :  { %13181 = vmatprep.mubr.f32.mxu0 %v19872_v29 }
 0x12c   :  { %13182 = vmatmul.mubr.f32.gmra.mrb[14].mxu0 %v19873_v47 }
 0x12d   :  { %13184 = vmatprep.mubr.f32.mxu0 %v19874_v1 }
 0x130   :  { %13185 = vmatmul.mubr.f32.gmra.mrb[16].mxu0 %v19875_v6 }
 0x131   :  { %13187 = vmatprep.mubr.f32.mxu0 %v19876_v10 }
 0x134   :  { %13188 = vmatmul.mubr.f32.gmra.mrb[18].mxu0 %v19877_v55 }
 0x135   :  { %13190 = vmatprep.mubr.f32.mxu0 %v19878_v54 }
 0x138   :  { %13191 = vmatmul.mubr.f32.gmra.mrb[20].mxu0 %v19879_v63 }
 0x139   :  { %13193 = vmatprep.mubr.f32.mxu0 %v19880_v41 }
 0x13c   :  { %13194 = vmatmul.mubr.f32.gmra.mrb[22].mxu0 %v19881_v17 }
 0x13d   :  { %13196 = vmatprep.mubr.f32.mxu0 %v19882_v16 }
 0x140   :  { %13197 = vmatmul.mubr.f32.gmra.mrb[24].mxu0 %v19883_v18 }
 0x141   :  { %13199 = vmatprep.mubr.f32.mxu0 %v19884_v57 }
 0x144   :  { %13200 = vmatmul.mubr.f32.gmra.mrb[26].mxu0 %v19885_v35 }
 0x145   :  { %13202 = vmatprep.mubr.f32.mxu0 %v19886_v45 }
 0x148   :  { %13203 = vmatmul.mubr.f32.gmra.mrb[28].mxu0 %v19887_v30 }
 0x149   :  { %13205 = vmatprep.mubr.f32.mxu0 %v19888_v60 }
 0x14c   :  { %13206 = vmatmul.mubr.f32.gmra.mrb[30].mxu0 %v19889_v27 }
 0x14d   :  { %13208 = vmatprep.mubr.f32.mxu0 %v19890_v50 }
 0x150   :  { %13209 = vmatmul.mubr.f32.gmra.mrb[32].mxu0 %v19891_v8 }
 0x151   :  { %13211 = vmatprep.mubr.f32.mxu0 %v19892_v7 }
 0x154   :  { %13212 = vmatmul.mubr.f32.gmra.mrb[34].mxu0 %v19893_v36 }
 0x155   :  { %13214 = vmatprep.mubr.f32.mxu0 %v19894_v51 }
 0x158   :  { %13215 = vmatmul.mubr.f32.gmra.mrb[36].mxu0 %v19895_v62 }
 0x159   :  { %13217 = vmatprep.mubr.f32.mxu0 %v19896_v58 }
 0x15c   :  { %13218 = vmatmul.mubr.f32.gmra.mrb[38].mxu0 %v19897_v12 }
 0x15d   :  { %13220 = vmatprep.mubr.f32.mxu0 %v19898_v59 }
 0x160   :  { %13221 = vmatmul.mubr.f32.gmra.mrb[40].mxu0 %v19899_v56 }
 0x161   :  { %13223 = vmatprep.mubr.f32.mxu0 %v19900_v40 }
 0x164   :  { %13224 = vmatmul.mubr.f32.gmra.mrb[42].mxu0 %v19901_v38 }
 0x165   :  { %13226 = vmatprep.mubr.f32.mxu0 %v19902_v23  ;;  %v19913_v23 = vld [vmem:[#allocation125_spill] sm:$0xff] }
 0x168   :  { %13227 = vmatmul.mubr.f32.gmra.mrb[44].mxu0 %v19903_v15  ;;  %v19914_v15 = vld [vmem:[#allocation127_spill] sm:$0xff] }
 0x169   :  { %13229 = vmatprep.mubr.f32.mxu0 %v19904_v3 }
 0x16c   :  { %13230 = vmatmul.mubr.f32.gmra.mrb[46].mxu0 %v19905_v43 }
 0x16d   :  { %13232 = vmatprep.mubr.f32.mxu0 %v19906_v37 }
 0x170   :  { %13233 = vmatmul.mubr.f32.gmra.mrb[48].mxu0 %v19907_v34 }
 0x171   :  { %13235 = vmatprep.mubr.f32.mxu0 %v19908_v33 }
 0x174   :  { %13236 = vmatmul.mubr.f32.gmra.mrb[50].mxu0 %v19909_v48 }
 0x175   :  { %13238 = vmatprep.mubr.f32.mxu0 %v19910_v31 }
 0x178   :  { %13239 = vmatmul.mubr.f32.gmra.mrb[52].mxu0 %v19911_v21 }
 0x179   :  { %13241 = vmatprep.mubr.f32.mxu0 %v19912_v20  ;;  %v19915_v20 = vand.u32 4294901760, %v19852_v61  ;;  %v19923_v61 = vand.u32 4294901760, %v19857_v46  ;;  %v19935_v46 = vand.u32 4294901760, %v19873_v47  ;;  %v19942_v47 = vand.u32 4294901760, %v19880_v41 }
 0x17a   :  { %v19949_v41 = vand.u32 4294901760, %v19887_v30  ;;  %v19956_v30 = vand.u32 4294901760, %v19894_v51  ;;  %v19963_v51 = vand.u32 4294901760, %v19901_v38  ;;  %v19972_v38 = vand.u32 4294901760, %v19908_v33  ;;  %v19984_v33 = vld [vmem:[#allocation128_spill] sm:$0xff] }
 0x17c   :  { %13242 = vmatmul.mubr.f32.gmra.mrb[54].mxu0 %v19913_v23  ;;  %v19916_v23 = vld [vmem:[#allocation54_spill] sm:$0xff] }
 0x17d   :  { %13244 = vmatprep.mubr.f32.mxu0 %v19914_v15  ;;  %v19917_v21 = vand.u32 4294901760, %v19916_v23  ;;  %v19918_v15 = vld [vmem:[#allocation55_spill] sm:$0xff]  ;;  %v19928_v23 = vand.u32 4294901760, %v19866_v28 }
 0x17e   :  { %v19919_v31 = vand.u32 4294901760, %v19918_v15  ;;  %v19927_v15 = vand.u32 4294901760, %v19865_v2  ;;  %v19937_v2 = vand.u32 4294901760, %v19875_v6  ;;  %v19944_v6 = vand.u32 4294901760, %v19882_v16 }
 0x17f   :  { %v19951_v16 = vand.u32 4294901760, %v19889_v27  ;;  %v19958_v27 = vand.u32 4294901760, %v19896_v58  ;;  %v19966_v58 = vld [vmem:[#allocation104_spill] sm:$0xff] }
 0x180   :  { %13245 = vmatmul.mubr.f32.gmra.mrb[56].mxu0 %v16798_v22  ;;  %v14402_v22 = vpack.c.bf16 %v19919_v31, %v19917_v21  ;;  %v19925_v21 = vand.u32 4294901760, %v19863_v39  ;;  %v19926_v31 = vand.u32 4294901760, %v19864_v24  ;;  %v19931_v39 = vand.u32 4294901760, %v19869_v52 }
 0x181   :  { %13247 = vmatprep.mubr.f32.mxu0 %v16805_v5  ;;  %v19920_v5 = vand.u32 4294901760, %v19853_v19  ;;  %v19939_v24 = vand.u32 4294901760, %v19877_v55  ;;  %v19946_v55 = vand.u32 4294901760, %v19884_v57  ;;  %v19953_v57 = vand.u32 4294901760, %v19891_v8 }
 0x182   :  { %v19960_v8 = vand.u32 4294901760, %v19898_v59  ;;  %v19967_v28 = vand.u32 4294901760, %v19966_v58  ;;  %v19969_v59 = vand.u32 4294901760, %v19905_v43  ;;  %v19973_v52 = vand.u32 4294901760, %v19909_v48  ;;  %v19978_v43 = vld [vmem:[#allocation121_spill] sm:$0xff]  ;;  %v20030_v58 = vld [vmem:[#allocation75_spill] sm:$0xff] }
 0x183   :  { %v19986_v48 = vld [vmem:[#allocation129_spill] sm:$0xff] }
 0x184   :  { %13248 = vmatmul.mubr.f32.gmra.mrb[58].mxu0 %v16823_v0 }
 0x185   :  { %13250 = vmatprep.mubr.f32.mxu0 %v16831_v32  ;;  %v19921_v32 = vand.u32 4294901760, %v19854_v14  ;;  %v19938_v14 = vand.u32 4294901760, %v19876_v10  ;;  %v19945_v10 = vand.u32 4294901760, %v19883_v18  ;;  %v19952_v18 = vand.u32 4294901760, %v19890_v50 }
 0x186   :  { %v19959_v50 = vand.u32 4294901760, %v19897_v12  ;;  %v19968_v12 = vand.u32 4294901760, %v19904_v3  ;;  %v19976_v3 = vld [vmem:[#allocation120_spill] sm:$0xff] }
 0x188   :  { %13251 = vmatmul.mubr.f32.gmra.mrb[60].mxu0 %v16841_v4 }
 0x189   :  { %13253 = vmatprep.mubr.f32.mxu0 %v16850_v53  ;;  %v19922_v53 = vand.u32 4294901760, %v19856_v25  ;;  %v19936_v25 = vand.u32 4294901760, %v19874_v1  ;;  %v19943_v1 = vand.u32 4294901760, %v19881_v17  ;;  %v19950_v17 = vand.u32 4294901760, %v19888_v60 }
 0x18a   :  { %v19957_v60 = vand.u32 4294901760, %v19895_v62  ;;  %v19964_v62 = vld [vmem:[#allocation102_spill] sm:$0xff] }
 0x18b   :  { %v19965_v19 = vand.u32 4294901760, %v19964_v62  ;;  %v20028_v62 = vld [vmem:[#allocation71_spill] sm:$0xff] }
 0x18c   :  { %13254 = vmatmul.mubr.f32.gmra.mrb[62].mxu0 %v16857_v42 }
 0x18d   :  { %13266 = vmatprep.mubr.f32.mxu0 %v19915_v20  ;;  %v19924_v20 = vld [vmem:[#allocation90_spill] sm:$0xff] }
 0x190   :  { %13267 = vmatmul.mubr.f32.vlgmr.msra.gmra.mrb[0].mxu0 %v19920_v5  ;;  %v19929_v5 = vand.u32 4294901760, %v19867_v9  ;;  %v19941_v9 = vand.u32 4294901760, %v19879_v63  ;;  %v19948_v63 = vand.u32 4294901760, %v19886_v45  ;;  %v19955_v45 = vand.u32 4294901760, %v19893_v36 }
 0x191   :  { %14401 = vmatpush3.bf16.msra.mxu0 %v16956_v11  ;;  %13269 = vmatprep.mubr.f32.mxu0 %v19921_v32  ;;  %v19930_v11 = vand.u32 4294901760, %v19868_v44  ;;  %v19934_v32 = vand.u32 4294901760, %v19872_v29  ;;  %v19940_v44 = vand.u32 4294901760, %v19878_v54  ;;  %v19947_v54 = vand.u32 4294901760, %v19885_v35 }
 0x192   :  { %14403 = vmatprep.subr.bf16.mxu0 %v14402_v22  ;;  %v19954_v35 = vand.u32 4294901760, %v19892_v7  ;;  %v19961_v7 = vand.u32 4294901760, %v19899_v56  ;;  %v19962_v36 = vand.u32 4294901760, %v19900_v40  ;;  %v19970_v56 = vand.u32 4294901760, %v19906_v37  ;;  %v19980_v37 = vld [vmem:[#allocation125_spill] sm:$0xff] }
 0x193   :  { %v19971_v40 = vand.u32 4294901760, %v19907_v34  ;;  %v19977_v29 = vand.u32 4294901760, %v19976_v3  ;;  %v19982_v34 = vld [vmem:[#allocation127_spill] sm:$0xff]  ;;  %v20040_v3 = vld [vmem:[#allocation96_spill] sm:$0xff] }
 0x194   :  { %13270 = vmatmul.mubr.f32.gmra.mrb[2].mxu0 %v19922_v53  ;;  %v19932_v53 = vand.u32 4294901760, %v19870_v26  ;;  %v19974_v26 = vld [vmem:[#allocation119_spill] sm:$0xff] }
 0x195   :  { %13272 = vmatprep.mubr.f32.mxu0 %v19923_v61  ;;  %14405 = vmatpush3.bf16.msra.mxu0 %v14402_v22  ;;  %v19933_v22 = vand.u32 4294901760, %v19871_v49  ;;  %v19975_v49 = vand.u32 4294901760, %v19974_v26  ;;  %v19979_v61 = vand.u32 4294901760, %v19978_v43  ;;  %v20038_v26 = vld [vmem:[#allocation93_spill] sm:$0xff] }
 0x196   :  { %13370 = vmatprep.subr.mxu0 %v19924_v20  ;;  %v20042_v43 = vld [vmem:[#allocation101_spill] sm:$0xff] }
 0x198   :  { %13273 = vmatmul.mubr.f32.gmra.mrb[4].mxu0 %v19925_v21  ;;  %v19983_v21 = vand.u32 4294901760, %v19982_v34  ;;  %v20046_v34 = vld [vmem:[#allocation109_spill] sm:$0xff] }
 0x199   :  { %13275 = vmatprep.mubr.f32.mxu0 %v19926_v31  ;;  %13371 = vmatpush3.msra.mxu0 %v19924_v20  ;;  %v19981_v20 = vand.u32 4294901760, %v19980_v37  ;;  %v19985_v31 = vand.u32 4294901760, %v19984_v33  ;;  %v20044_v37 = vld [vmem:[#allocation105_spill] sm:$0xff]  ;;  %v20048_v33 = vld [vmem:[#allocation114_spill] sm:$0xff] }
 0x19a   :  { %14407 = vmatprep.subr.bf16.mxu0 %v15985_v13 }
 0x19c   :  { %13276 = vmatmul.mubr.f32.gmra.mrb[6].mxu0 %v19927_v15  ;;  %v19987_v15 = vand.u32 4294901760, %v19986_v48  ;;  %v20050_v48 = vld [vmem:[#allocation116_spill] sm:$0xff] }
 0x19d   :  { %13278 = vmatprep.mubr.f32.mxu0 %v19928_v23  ;;  %v19988_v23 = vand.u32 4294901760, %v16823_v0  ;;  %v19997_v0 = vld [vmem:[#allocation13_spill] sm:$0xff] }
 0x1a0   :  { %13279 = vmatmul.mubr.f32.gmra.mrb[8].mxu0 %v19929_v5  ;;  %v19989_v5 = vld [vmem:[#allocation133_spill] sm:$0xff] }
 0x1a1   :  { %13281 = vmatprep.mubr.f32.mxu0 %v19930_v11  ;;  %v19990_v11 = vand.u32 4294901760, %v19989_v5  ;;  %v20053_v5 = vld [vmem:[#allocation123_spill] sm:$0xff] }
 0x1a4   :  { %13282 = vmatmul.mubr.f32.gmra.mrb[10].mxu0 %v19931_v39  ;;  %v19991_v39 = vand.u32 4294901760, %v16841_v4  ;;  %v20000_v4 = vld [vmem:[#allocation15_spill] sm:$0xff] }
 0x1a5   :  { %13284 = vmatprep.mubr.f32.mxu0 %v19932_v53  ;;  %v19992_v53 = vld [vmem:[#allocation136_spill] sm:$0xff] }
 0x1a8   :  { %13285 = vmatmul.mubr.f32.gmra.mrb[12].mxu0 %v19933_v22  ;;  %v19993_v22 = vand.u32 4294901760, %v19992_v53  ;;  %v20056_v53 = vld [vmem:[#allocation130_spill] sm:$0xff] }
 0x1a9   :  { %13287 = vmatprep.mubr.f32.mxu0 %v19934_v32  ;;  %v19994_v32 = vand.u32 4294901760, %v16857_v42  ;;  %v20002_v42 = vld [vmem:[#allocation19_spill] sm:$0xff] }
 0x1ac   :  { %13288 = vmatmul.mubr.f32.gmra.mrb[14].mxu0 %v19935_v46  ;;  %v19995_v46 = vld [vmem:[#allocation7_spill] sm:$0xff] }
 0x1ad   :  { %13290 = vmatprep.mubr.f32.mxu0 %v19936_v25  ;;  %v19996_v25 = vld [vmem:[#allocation8_spill] sm:$0xff] }
 0x1b0   :  { %13291 = vmatmul.mubr.f32.gmra.mrb[16].mxu0 %v19937_v2  ;;  %v19998_v2 = vld [vmem:[#allocation6_spill] sm:$0xff] }
 0x1b1   :  { %13293 = vmatprep.mubr.f32.mxu0 %v19938_v14  ;;  %v19999_v14 = vld [vmem:[#allocation14_spill] sm:$0xff] }
 0x1b4   :  { %13294 = vmatmul.mubr.f32.gmra.mrb[18].mxu0 %v19939_v24  ;;  %v20001_v24 = vld [vmem:[#allocation5_spill] sm:$0xff] }
 0x1b5   :  { %13296 = vmatprep.mubr.f32.mxu0 %v19940_v44  ;;  %v20003_v44 = vld [vmem:[#allocation21_spill] sm:$0xff] }
 0x1b8   :  { %13297 = vmatmul.mubr.f32.gmra.mrb[20].mxu0 %v19941_v9  ;;  %v20004_v9 = vld [vmem:[#allocation22_spill] sm:$0xff] }
 0x1b9   :  { %13299 = vmatprep.mubr.f32.mxu0 %v19942_v47  ;;  %v20006_v47 = vld [vmem:[#allocation26_spill] sm:$0xff] }
 0x1bc   :  { %13300 = vmatmul.mubr.f32.gmra.mrb[22].mxu0 %v19943_v1  ;;  %v20007_v1 = vld [vmem:[#allocation27_spill] sm:$0xff] }
 0x1bd   :  { %13302 = vmatprep.mubr.f32.mxu0 %v19944_v6  ;;  %v20008_v6 = vld [vmem:[#allocation31_spill] sm:$0xff] }
 0x1c0   :  { %13303 = vmatmul.mubr.f32.gmra.mrb[24].mxu0 %v19945_v10  ;;  %v20009_v10 = vld [vmem:[#allocation32_spill] sm:$0xff] }
 0x1c1   :  { %13305 = vmatprep.mubr.f32.mxu0 %v19946_v55  ;;  %v20010_v55 = vld [vmem:[#allocation35_spill] sm:$0xff] }
 0x1c4   :  { %13306 = vmatmul.mubr.f32.gmra.mrb[26].mxu0 %v19947_v54  ;;  %v20011_v54 = vld [vmem:[#allocation37_spill] sm:$0xff] }
 0x1c5   :  { %13308 = vmatprep.mubr.f32.mxu0 %v19948_v63  ;;  %v20012_v63 = vld [vmem:[#allocation39_spill] sm:$0xff] }
 0x1c8   :  { %13309 = vmatmul.mubr.f32.gmra.mrb[28].mxu0 %v19949_v41  ;;  %v20013_v41 = vld [vmem:[#allocation40_spill] sm:$0xff] }
 0x1c9   :  { %13311 = vmatprep.mubr.f32.mxu0 %v19950_v17  ;;  %v20014_v17 = vld [vmem:[#allocation43_spill] sm:$0xff] }
 0x1cc   :  { %13312 = vmatmul.mubr.f32.gmra.mrb[30].mxu0 %v19951_v16  ;;  %v20015_v16 = vld [vmem:[#allocation44_spill] sm:$0xff] }
 0x1cd   :  { %13314 = vmatprep.mubr.f32.mxu0 %v19952_v18  ;;  %v20016_v18 = vld [vmem:[#allocation47_spill] sm:$0xff] }
 0x1d0   :  { %13315 = vmatmul.mubr.f32.gmra.mrb[32].mxu0 %v19953_v57  ;;  %v20017_v57 = vld [vmem:[#allocation48_spill] sm:$0xff] }
 0x1d1   :  { %13317 = vmatprep.mubr.f32.mxu0 %v19954_v35  ;;  %v20018_v35 = vld [vmem:[#allocation50_spill] sm:$0xff] }
 0x1d4   :  { %13318 = vmatmul.mubr.f32.gmra.mrb[34].mxu0 %v19955_v45  ;;  %v20019_v45 = vld [vmem:[#allocation53_spill] sm:$0xff] }
 0x1d5   :  { %13320 = vmatprep.mubr.f32.mxu0 %v19956_v30  ;;  %v20020_v30 = vld [vmem:[#allocation57_spill] sm:$0xff] }
 0x1d8   :  { %13321 = vmatmul.mubr.f32.gmra.mrb[36].mxu0 %v19957_v60  ;;  %v20021_v60 = vld [vmem:[#allocation59_spill] sm:$0xff] }
 0x1d9   :  { %13323 = vmatprep.mubr.f32.mxu0 %v19958_v27  ;;  %v20022_v27 = vld [vmem:[#allocation60_spill] sm:$0xff] }
 0x1dc   :  { %13324 = vmatmul.mubr.f32.gmra.mrb[38].mxu0 %v19959_v50  ;;  %v20023_v50 = vld [vmem:[#allocation62_spill] sm:$0xff] }
 0x1dd   :  { %13326 = vmatprep.mubr.f32.mxu0 %v19960_v8  ;;  %v20024_v8 = vld [vmem:[#allocation64_spill] sm:$0xff] }
 0x1e0   :  { %13327 = vmatmul.mubr.f32.gmra.mrb[40].mxu0 %v19961_v7  ;;  %v20025_v7 = vld [vmem:[#allocation66_spill] sm:$0xff] }
 0x1e1   :  { %13329 = vmatprep.mubr.f32.mxu0 %v19962_v36  ;;  %v20026_v36 = vld [vmem:[#allocation68_spill] sm:$0xff] }
 0x1e4   :  { %13330 = vmatmul.mubr.f32.gmra.mrb[42].mxu0 %v19963_v51  ;;  %v20027_v51 = vld [vmem:[#allocation69_spill] sm:$0xff] }
 0x1e5   :  { %13332 = vmatprep.mubr.f32.mxu0 %v19965_v19  ;;  %v20029_v19 = vld [vmem:[#allocation74_spill] sm:$0xff] }
 0x1e8   :  { %13333 = vmatmul.mubr.f32.gmra.mrb[44].mxu0 %v19967_v28  ;;  %v20031_v28 = vld [vmem:[#allocation77_spill] sm:$0xff] }
 0x1e9   :  { %13335 = vmatprep.mubr.f32.mxu0 %v19968_v12  ;;  %v20032_v12 = vld [vmem:[#allocation80_spill] sm:$0xff] }
 0x1ec   :  { %13336 = vmatmul.mubr.f32.gmra.mrb[46].mxu0 %v19969_v59  ;;  %v20033_v59 = vld [vmem:[#allocation82_spill] sm:$0xff] }
 0x1ed   :  { %13338 = vmatprep.mubr.f32.mxu0 %v19970_v56  ;;  %v20034_v56 = vld [vmem:[#allocation84_spill] sm:$0xff] }
 0x1f0   :  { %13339 = vmatmul.mubr.f32.gmra.mrb[48].mxu0 %v19971_v40  ;;  %v20035_v40 = vld [vmem:[#allocation86_spill] sm:$0xff] }
 0x1f1   :  { %13341 = vmatprep.mubr.f32.mxu0 %v19972_v38  ;;  %v20036_v38 = vld [vmem:[#allocation88_spill] sm:$0xff] }
 0x1f4   :  { %13342 = vmatmul.mubr.f32.gmra.mrb[50].mxu0 %v19973_v52  ;;  %v20037_v52 = vld [vmem:[#allocation89_spill] sm:$0xff] }
 0x1f5   :  { %13344 = vmatprep.mubr.f32.mxu0 %v19975_v49  ;;  %v20039_v49 = vld [vmem:[#allocation95_spill] sm:$0xff] }
 0x1f8   :  { %13345 = vmatmul.mubr.f32.gmra.mrb[52].mxu0 %v19977_v29  ;;  %v20041_v29 = vld [vmem:[#allocation99_spill] sm:$0xff] }
 0x1f9   :  { %13347 = vmatprep.mubr.f32.mxu0 %v19979_v61  ;;  %v20043_v61 = vld [vmem:[#allocation103_spill] sm:$0xff] }
 0x1fc   :  { %13348 = vmatmul.mubr.f32.gmra.mrb[54].mxu0 %v19981_v20  ;;  %v20045_v20 = vld [vmem:[#allocation107_spill] sm:$0xff] }
 0x1fd   :  { %13350 = vmatprep.mubr.f32.mxu0 %v19983_v21  ;;  %v20047_v21 = vld [vmem:[#allocation110_spill] sm:$0xff] }
 0x200   :  { %13351 = vmatmul.mubr.f32.gmra.mrb[56].mxu0 %v19985_v31  ;;  %v20049_v31 = vld [vmem:[#allocation115_spill] sm:$0xff] }
 0x201   :  { %13353 = vmatprep.mubr.f32.mxu0 %v19987_v15  ;;  %v20051_v15 = vld [vmem:[#allocation117_spill] sm:$0xff] }
 0x204   :  { %13354 = vmatmul.mubr.f32.gmra.mrb[58].mxu0 %v19988_v23  ;;  %v20052_v23 = vld [vmem:[#allocation122_spill] sm:$0xff] }
 0x205   :  { %13356 = vmatprep.mubr.f32.mxu0 %v19990_v11  ;;  %v20054_v11 = vld [vmem:[#allocation124_spill] sm:$0xff] }
 0x208   :  { %13357 = vmatmul.mubr.f32.gmra.mrb[60].mxu0 %v19991_v39  ;;  %v20055_v39 = vld [vmem:[#allocation126_spill] sm:$0xff] }
 0x209   :  { %13359 = vmatprep.mubr.f32.mxu0 %v19993_v22  ;;  %v20057_v22 = vld [vmem:[#allocation131_spill] sm:$0xff] }
 0x20c   :  { %13360 = vmatmul.mubr.f32.gmra.mrb[62].mxu0 %v19994_v32  ;;  %v20058_v32 = vld [vmem:[#allocation132_spill] sm:$0xff] }
 0x20d   :  { %13372 = vmatprep.mubr.f32.mxu0 %v19995_v46 }
 0x210   :  { %13373 = vmatmul.mubr.f32.vlgmr.msra.gmra.mrb[0].mxu0 %v19996_v25 }
 0x211   :  { %14409 = vmatpush3.bf16.msra.mxu0 %v15985_v13  ;;  %13375 = vmatprep.mubr.f32.mxu0 %v19997_v0  ;;  %v20005_v13 = vld [vmem:[#allocation24_spill] sm:$0xff] }
 0x212   :  { %14411 = vmatprep.subr.bf16.mxu0 %v19998_v2 }
 0x214   :  { %13376 = vmatmul.mubr.f32.gmra.mrb[2].mxu0 %v19999_v14 }
 0x215   :  { %13378 = vmatprep.mubr.f32.mxu0 %v20000_v4  ;;  %14413 = vmatpush3.bf16.msra.mxu0 %v19998_v2  ;;  %v20059_v2 = vld [vmem:[#allocation134_spill] sm:$0xff] }
 0x216   :  { %13476 = vmatprep.subr.mxu0 %v20001_v24 }
 0x218   :  { %13379 = vmatmul.mubr.f32.gmra.mrb[4].mxu0 %v20002_v42 }
 0x219   :  { %13381 = vmatprep.mubr.f32.mxu0 %v20003_v44  ;;  %13477 = vmatpush3.msra.mxu0 %v20001_v24  ;;  %v20060_v24 = vld [vmem:[#allocation135_spill] sm:$0xff] }
 0x21c   :  { %13382 = vmatmul.mubr.f32.gmra.mrb[6].mxu0 %v20004_v9 }
 0x21d   :  { %13384 = vmatprep.mubr.f32.mxu0 %v20005_v13 }
 0x220   :  { %13385 = vmatmul.mubr.f32.gmra.mrb[8].mxu0 %v20006_v47 }
 0x221   :  { %13387 = vmatprep.mubr.f32.mxu0 %v20007_v1 }
 0x224   :  { %13388 = vmatmul.mubr.f32.gmra.mrb[10].mxu0 %v20008_v6 }
 0x225   :  { %13390 = vmatprep.mubr.f32.mxu0 %v20009_v10 }
 0x228   :  { %13391 = vmatmul.mubr.f32.gmra.mrb[12].mxu0 %v20010_v55 }
 0x229   :  { %13393 = vmatprep.mubr.f32.mxu0 %v20011_v54 }
 0x22c   :  { %13394 = vmatmul.mubr.f32.gmra.mrb[14].mxu0 %v20012_v63 }
 0x22d   :  { %13396 = vmatprep.mubr.f32.mxu0 %v20013_v41 }
 0x230   :  { %13397 = vmatmul.mubr.f32.gmra.mrb[16].mxu0 %v20014_v17 }
 0x231   :  { %13399 = vmatprep.mubr.f32.mxu0 %v20015_v16 }
 0x234   :  { %13400 = vmatmul.mubr.f32.gmra.mrb[18].mxu0 %v20016_v18 }
 0x235   :  { %13402 = vmatprep.mubr.f32.mxu0 %v20017_v57 }
 0x238   :  { %13403 = vmatmul.mubr.f32.gmra.mrb[20].mxu0 %v20018_v35 }
 0x239   :  { %13405 = vmatprep.mubr.f32.mxu0 %v20019_v45 }
 0x23c   :  { %13406 = vmatmul.mubr.f32.gmra.mrb[22].mxu0 %v20020_v30 }
 0x23d   :  { %13408 = vmatprep.mubr.f32.mxu0 %v20021_v60 }
 0x240   :  { %13409 = vmatmul.mubr.f32.gmra.mrb[24].mxu0 %v20022_v27 }
 0x241   :  { %13411 = vmatprep.mubr.f32.mxu0 %v20023_v50 }
 0x244   :  { %13412 = vmatmul.mubr.f32.gmra.mrb[26].mxu0 %v20024_v8 }
 0x245   :  { %13414 = vmatprep.mubr.f32.mxu0 %v20025_v7 }
 0x248   :  { %13415 = vmatmul.mubr.f32.gmra.mrb[28].mxu0 %v20026_v36 }
 0x249   :  { %13417 = vmatprep.mubr.f32.mxu0 %v20027_v51 }
 0x24c   :  { %13418 = vmatmul.mubr.f32.gmra.mrb[30].mxu0 %v20028_v62 }
 0x24d   :  { %13420 = vmatprep.mubr.f32.mxu0 %v20029_v19 }
 0x250   :  { %13421 = vmatmul.mubr.f32.gmra.mrb[32].mxu0 %v20030_v58 }
 0x251   :  { %13423 = vmatprep.mubr.f32.mxu0 %v20031_v28 }
 0x254   :  { %13424 = vmatmul.mubr.f32.gmra.mrb[34].mxu0 %v20032_v12 }
 0x255   :  { %13426 = vmatprep.mubr.f32.mxu0 %v20033_v59 }
 0x258   :  { %13427 = vmatmul.mubr.f32.gmra.mrb[36].mxu0 %v20034_v56 }
 0x259   :  { %13429 = vmatprep.mubr.f32.mxu0 %v20035_v40 }
 0x25c   :  { %13430 = vmatmul.mubr.f32.gmra.mrb[38].mxu0 %v20036_v38 }
 0x25d   :  { %13432 = vmatprep.mubr.f32.mxu0 %v20037_v52 }
 0x260   :  { %13433 = vmatmul.mubr.f32.gmra.mrb[40].mxu0 %v20038_v26 }
 0x261   :  { %13435 = vmatprep.mubr.f32.mxu0 %v20039_v49 }
 0x264   :  { %13436 = vmatmul.mubr.f32.gmra.mrb[42].mxu0 %v20040_v3 }
 0x265   :  { %13438 = vmatprep.mubr.f32.mxu0 %v20041_v29 }
 0x268   :  { %13439 = vmatmul.mubr.f32.gmra.mrb[44].mxu0 %v20042_v43 }
 0x269   :  { %13441 = vmatprep.mubr.f32.mxu0 %v20043_v61 }
 0x26c   :  { %13442 = vmatmul.mubr.f32.gmra.mrb[46].mxu0 %v20044_v37 }
 0x26d   :  { %13444 = vmatprep.mubr.f32.mxu0 %v20045_v20 }
 0x270   :  { %13445 = vmatmul.mubr.f32.gmra.mrb[48].mxu0 %v20046_v34 }
 0x271   :  { %13447 = vmatprep.mubr.f32.mxu0 %v20047_v21 }
 0x274   :  { %13448 = vmatmul.mubr.f32.gmra.mrb[50].mxu0 %v20048_v33 }
 0x275   :  { %13450 = vmatprep.mubr.f32.mxu0 %v20049_v31 }
 0x278   :  { %13451 = vmatmul.mubr.f32.gmra.mrb[52].mxu0 %v20050_v48 }
 0x279   :  { %13453 = vmatprep.mubr.f32.mxu0 %v20051_v15 }
 0x27c   :  { %13454 = vmatmul.mubr.f32.gmra.mrb[54].mxu0 %v20052_v23 }
 0x27d   :  { %13456 = vmatprep.mubr.f32.mxu0 %v20053_v5 }
 0x280   :  { %13457 = vmatmul.mubr.f32.gmra.mrb[56].mxu0 %v20054_v11 }
 0x281   :  { %13459 = vmatprep.mubr.f32.mxu0 %v20055_v39 }
 0x284   :  { %13460 = vmatmul.mubr.f32.gmra.mrb[58].mxu0 %v20056_v53 }
 0x285   :  { %13462 = vmatprep.mubr.f32.mxu0 %v20057_v22 }
 0x288   :  { %13463 = vmatmul.mubr.f32.gmra.mrb[60].mxu0 %v20058_v32 }
 0x289   :  { %13465 = vmatprep.mubr.f32.mxu0 %v20059_v2 }
 0x28c   :  { %13466 = vmatmul.mubr.f32.gmra.mrb[62].mxu0 %v20060_v24 }
 0x28d   :  { %13478 = vmatprep.mubr.f32.mxu0 %v19995_v46  ;;  %v15873_v46 = vmov 1983009808  }
 0x290   :  { %13479 = vmatmul.mubr.f32.vlgmr.msra.gmra.mrb[0].mxu0 %v19996_v25  ;;  %v3593_v25 = vunpack.c.l.s4 %v15873_v46 }
 0x291   :  { %13481 = vmatprep.mubr.f32.mxu0 %v19997_v0  ;;  %v3595_v0 = vlaneseq }
 0x294   :  { %13482 = vmatmul.mubr.f32.gmra.mrb[2].mxu0 %v19999_v14  ;;  %v3594_v14 = vunpack.c.0.s8 %v3593_v25 }
 0x295   :  { %13484 = vmatprep.mubr.f32.mxu0 %v20000_v4  ;;  %v3596_v4 = vshrl.u32 %v3595_v0, 7 }
 0x298   :  { %13485 = vmatmul.mubr.f32.gmra.mrb[4].mxu0 %v20002_v42  ;;  %v17288_v42 = vsub.s32 %v3594_v14, %v3596_v4 }
 0x299   :  { %13487 = vmatprep.mubr.f32.mxu0 %v20003_v44  ;;  %v15848_v44 = vld.sshfl [vmem:[%s19194_s1] sm:$0xff pattern:$0x76325410] }
 0x29a   :  { %20061 = vst [vmem:[#allocation11_spill] sm:$0xff] %v17288_v42 }
 0x29c   :  { %13488 = vmatmul.mubr.f32.gmra.mrb[6].mxu0 %v20004_v9  ;;  %v3606_v9 = vcombine.high %v15848_v44, %v15848_v44 }
 0x29d   :  { %13490 = vmatprep.mubr.f32.mxu0 %v20005_v13 }
 0x29e   :  { %v17293_v13 = vand.u32 4294901760, %v3606_v9 }
 0x2a0   :  { %13491 = vmatmul.mubr.f32.gmra.mrb[8].mxu0 %v20006_v47  ;;  %20062 = vst [vmem:[#allocation12_spill] sm:$0xff] %v17293_v13  ;;  %v17296_v47 = vsub.f32 %v3606_v9, %v17293_v13 }
 0x2a1   :  { %13493 = vmatprep.mubr.f32.mxu0 %v20007_v1 }
 0x2a2   :  { %20063 = vst [vmem:[#allocation16_spill] sm:$0xff] %v17296_v47  ;;  %v19511_v1 = vand.u32 4294901760, %v17296_v47 }
 0x2a4   :  { %13494 = vmatmul.mubr.f32.gmra.mrb[10].mxu0 %v20008_v6  ;;  %v3711_v6 = vsub.f32 %v17296_v47, %v19511_v1 }
 0x2a5   :  { %13496 = vmatprep.mubr.f32.mxu0 %v20009_v10 }
 0x2a6   :  { %v3712_v10 = vand.u32 4294901760, %v3711_v6 }
 0x2a8   :  { %13497 = vmatmul.mubr.f32.gmra.mrb[12].mxu0 %v20010_v55  ;;  %3713 = vmatprep.mubr.f32.mxu1 %v3712_v10  ;;  %v17302_v55 = vand.u32 4294901760, %v15848_v44 }
 0x2a9   :  { %13499 = vmatprep.mubr.f32.mxu0 %v20011_v54  ;;  %v17307_v54 = vld [vmem:[%s19196_s3] ss:$0 sm:$0xff] }
 0x2aa   :  { %20064 = vst [vmem:[#allocation17_spill] sm:$0xff] %v17302_v55 }
 0x2ac   :  { %13500 = vmatmul.mubr.f32.gmra.mrb[14].mxu0 %v20012_v63  ;;  %v17310_v63 = vsub.f32 %v15848_v44, %v17302_v55 }
 0x2ad   :  { %13502 = vmatprep.mubr.f32.mxu0 %v20013_v41 }
 0x2ae   :  { %20065 = vst [vmem:[#allocation18_spill] sm:$0xff] %v17310_v63 }
 0x2b0   :  { %13503 = vmatmul.mubr.f32.gmra.mrb[16].mxu0 %v20014_v17 }
 0x2b1   :  { %13505 = vmatprep.mubr.f32.mxu0 %v20015_v16 }
 0x2b4   :  { %13506 = vmatmul.mubr.f32.gmra.mrb[18].mxu0 %v20016_v18 }
 0x2b5   :  { %13508 = vmatprep.mubr.f32.mxu0 %v20017_v57 }
 0x2b8   :  { %13509 = vmatmul.mubr.f32.gmra.mrb[20].mxu0 %v20018_v35  ;;  %v19507_v35 = vand.u32 4294901760, %v17310_v63 }
 0x2b9   :  { %13511 = vmatprep.mubr.f32.mxu0 %v20019_v45 }
 0x2bc   :  { %13512 = vmatmul.mubr.f32.gmra.mrb[22].mxu0 %v20020_v30 }
 0x2bd   :  { %13514 = vmatprep.mubr.f32.mxu0 %v20021_v60 }
 0x2c0   :  { %13515 = vmatmul.mubr.f32.gmra.mrb[24].mxu0 %v20022_v27 }
 0x2c1   :  { %13517 = vmatprep.mubr.f32.mxu0 %v20023_v50 }
 0x2c4   :  { %13518 = vmatmul.mubr.f32.gmra.mrb[26].mxu0 %v20024_v8 }
 0x2c5   :  { %13520 = vmatprep.mubr.f32.mxu0 %v20025_v7 }
 0x2c8   :  { %13521 = vmatmul.mubr.f32.gmra.mrb[28].mxu0 %v20026_v36 }
 0x2c9   :  { %13523 = vmatprep.mubr.f32.mxu0 %v20027_v51 }
 0x2cc   :  { %13524 = vmatmul.mubr.f32.gmra.mrb[30].mxu0 %v20028_v62  ;;  %v17322_v62 = vsub.f32 %v17310_v63, %v19507_v35 }
 0x2cd   :  { %13526 = vmatprep.mubr.f32.mxu0 %v20029_v19 }
 0x2d0   :  { %13527 = vmatmul.mubr.f32.gmra.mrb[32].mxu0 %v20030_v58 }
 0x2d1   :  { %13529 = vmatprep.mubr.f32.mxu0 %v20031_v28 }
 0x2d4   :  { %13530 = vmatmul.mubr.f32.gmra.mrb[34].mxu0 %v20032_v12 }
 0x2d5   :  { %13532 = vmatprep.mubr.f32.mxu0 %v20033_v59 }
 0x2d8   :  { %13533 = vmatmul.mubr.f32.gmra.mrb[36].mxu0 %v20034_v56 }
 0x2d9   :  { %13535 = vmatprep.mubr.f32.mxu0 %v20035_v40 }
 0x2dc   :  { %13536 = vmatmul.mubr.f32.gmra.mrb[38].mxu0 %v20036_v38 }
 0x2dd   :  { %13538 = vmatprep.mubr.f32.mxu0 %v20037_v52 }
 0x2e0   :  { %13539 = vmatmul.mubr.f32.gmra.mrb[40].mxu0 %v20038_v26 }
 0x2e1   :  { %13541 = vmatprep.mubr.f32.mxu0 %v20039_v49 }
 0x2e4   :  { %13542 = vmatmul.mubr.f32.gmra.mrb[42].mxu0 %v20040_v3 }
 0x2e5   :  { %13544 = vmatprep.mubr.f32.mxu0 %v20041_v29 }
 0x2e8   :  { %13545 = vmatmul.mubr.f32.gmra.mrb[44].mxu0 %v20042_v43 }
 0x2e9   :  { %13547 = vmatprep.mubr.f32.mxu0 %v20043_v61 }
 0x2ec   :  { %13548 = vmatmul.mubr.f32.gmra.mrb[46].mxu0 %v20044_v37 }
 0x2ed   :  { %13550 = vmatprep.mubr.f32.mxu0 %v20045_v20 }
 0x2f0   :  { %13551 = vmatmul.mubr.f32.gmra.mrb[48].mxu0 %v20046_v34 }
 0x2f1   :  { %13553 = vmatprep.mubr.f32.mxu0 %v20047_v21 }
 0x2f4   :  { %13554 = vmatmul.mubr.f32.gmra.mrb[50].mxu0 %v20048_v33 }
 0x2f5   :  { %13556 = vmatprep.mubr.f32.mxu0 %v20049_v31 }
 0x2f8   :  { %13557 = vmatmul.mubr.f32.gmra.mrb[52].mxu0 %v20050_v48 }
 0x2f9   :  { %13559 = vmatprep.mubr.f32.mxu0 %v20051_v15 }
 0x2fc   :  { %13560 = vmatmul.mubr.f32.gmra.mrb[54].mxu0 %v20052_v23 }
 0x2fd   :  { %13562 = vmatprep.mubr.f32.mxu0 %v20053_v5 }
 0x300   :  { %13563 = vmatmul.mubr.f32.gmra.mrb[56].mxu0 %v20054_v11 }
 0x301   :  { %13565 = vmatprep.mubr.f32.mxu0 %v20055_v39 }
 0x304   :  { %13566 = vmatmul.mubr.f32.gmra.mrb[58].mxu0 %v20056_v53 }
 0x305   :  { %13568 = vmatprep.mubr.f32.mxu0 %v20057_v22 }
 0x308   :  { %13569 = vmatmul.mubr.f32.gmra.mrb[60].mxu0 %v20058_v32 }
 0x309   :  { %13571 = vmatprep.mubr.f32.mxu0 %v20059_v2 }
 0x30c   :  { %13572 = vmatmul.mubr.f32.gmra.mrb[62].mxu0 %v20060_v24 }
 0x363   :  { %v13480_v41 = vpop.f32.mrb[0].mxu0 }
 0x364   :  { %v15266_v17 = vadd.f32 %v13480_v41, %v17307_v54  ;;  %v3143_v16 = vpop.f32.mrb[1].mxu0 }
 0x365   :  { %v15267_v18 = vadd.f32 %v17307_v54, %v3143_v16 }
 0x366   :  { %v3526_v57 = vmax.f32 %v15266_v17, 0.0 }
 0x367   :  { %v3525_v45 = vmax.f32 %v15267_v18, 0.0  ;;  %v13483_v30 = vpop.f32.mrb[2].mxu0 }
 0x368   :  { %v3616_v60 = vand.u32 4294901760, %v3526_v57  ;;  %v15268_v27 = vadd.f32 %v13483_v30, %v17307_v54  ;;  %v3155_v50 = vpop.f32.mrb[3].mxu0 }
 0x369   :  { %v3613_v8 = vand.u32 4294901760, %v3525_v45  ;;  %v15269_v7 = vadd.f32 %v17307_v54, %v3155_v50 }
 0x36a   :  { %v17317_v36 = vsub.f32 %v3526_v57, %v3616_v60  ;;  %v3528_v51 = vmax.f32 %v15268_v27, 0.0 }
 0x36b   :  { %v17324_v19 = vsub.f32 %v3525_v45, %v3613_v8  ;;  %v3527_v58 = vmax.f32 %v15269_v7, 0.0  ;;  %v13486_v28 = vpop.f32.mrb[4].mxu0  ;;  %v17326_v12 = vpack.c.bf16 %v3616_v60, %v3613_v8 }
 0x36c   :  { %20066 = vst [vmem:[#allocation9_spill] sm:$0xff] %v17317_v36  ;;  %v19508_v59 = vand.u32 4294901760, %v17317_v36  ;;  %v3622_v56 = vand.u32 4294901760, %v3528_v51  ;;  %v15270_v40 = vadd.f32 %v13486_v28, %v17307_v54  ;;  %v3167_v38 = vpop.f32.mrb[5].mxu0 }
 0x36d   :  { %20067 = vst [vmem:[#allocation10_spill] sm:$0xff] %v17324_v19  ;;  %20068 = vst [vmem:[#allocation20_spill] sm:$0xff] %v17326_v12  ;;  %v19509_v52 = vand.u32 4294901760, %v17324_v19  ;;  %v3619_v26 = vand.u32 4294901760, %v3527_v58  ;;  %v15271_v49 = vadd.f32 %v17307_v54, %v3167_v38 }
 0x36e   :  { %v3735_v29 = vsub.f32 %v17317_v36, %v19508_v59  ;;  %v17337_v43 = vsub.f32 %v3528_v51, %v3622_v56  ;;  %v3530_v61 = vmax.f32 %v15270_v40, 0.0 }
 0x36f   :  { %v3728_v20 = vsub.f32 %v17324_v19, %v19509_v52  ;;  %v17343_v34 = vsub.f32 %v3527_v58, %v3619_v26  ;;  %v3529_v21 = vmax.f32 %v15271_v49, 0.0  ;;  %v13489_v33 = vpop.f32.mrb[6].mxu0  ;;  %v17345_v31 = vpack.c.bf16 %v3622_v56, %v3619_v26 }
 0x370   :  { %20069 = vst [vmem:[#allocation23_spill] sm:$0xff] %v17337_v43  ;;  %v3736_v48 = vand.u32 4294901760, %v3735_v29  ;;  %v19503_v15 = vand.u32 4294901760, %v17337_v43  ;;  %v3628_v23 = vand.u32 4294901760, %v3530_v61  ;;  %v15272_v5 = vadd.f32 %v13489_v33, %v17307_v54  ;;  %v3179_v11 = vpop.f32.mrb[7].mxu0 }
 0x371   :  { %20070 = vst [vmem:[#allocation25_spill] sm:$0xff] %v17343_v34  ;;  %20071 = vst [vmem:[#allocation28_spill] sm:$0xff] %v17345_v31  ;;  %v3729_v39 = vand.u32 4294901760, %v3728_v20  ;;  %v19505_v53 = vand.u32 4294901760, %v17343_v34  ;;  %v3625_v22 = vand.u32 4294901760, %v3529_v21  ;;  %v15273_v32 = vadd.f32 %v17307_v54, %v3179_v11 }
 0x372   :  { %v3749_v2 = vsub.f32 %v17337_v43, %v19503_v15  ;;  %v17354_v24 = vsub.f32 %v3530_v61, %v3628_v23  ;;  %v3532_v46 = vmax.f32 %v15272_v5, 0.0 }
 0x373   :  { %v3742_v0 = vsub.f32 %v17343_v34, %v19505_v53  ;;  %v17361_v14 = vsub.f32 %v3529_v21, %v3625_v22  ;;  %v3531_v4 = vmax.f32 %v15273_v32, 0.0  ;;  %v13492_v44 = vpop.f32.mrb[8].mxu0  ;;  %v17363_v9 = vpack.c.bf16 %v3628_v23, %v3625_v22 }
 0x374   :  { %20072 = vst [vmem:[#allocation29_spill] sm:$0xff] %v17354_v24  ;;  %v3750_v6 = vand.u32 4294901760, %v3749_v2  ;;  %v19501_v10 = vand.u32 4294901760, %v17354_v24  ;;  %v3634_v41 = vand.u32 4294901760, %v3532_v46  ;;  %v15274_v17 = vadd.f32 %v13492_v44, %v17307_v54  ;;  %v3191_v16 = vpop.f32.mrb[9].mxu0 }
 0x375   :  { %20073 = vst [vmem:[#allocation30_spill] sm:$0xff] %v17361_v14  ;;  %20074 = vst [vmem:[#allocation33_spill] sm:$0xff] %v17363_v9  ;;  %v3743_v18 = vand.u32 4294901760, %v3742_v0  ;;  %v19502_v57 = vand.u32 4294901760, %v17361_v14  ;;  %v3631_v45 = vand.u32 4294901760, %v3531_v4  ;;  %v15275_v30 = vadd.f32 %v17307_v54, %v3191_v16 }
 0x376   :  { %v3763_v60 = vsub.f32 %v17354_v24, %v19501_v10  ;;  %v17372_v27 = vsub.f32 %v3532_v46, %v3634_v41  ;;  %v3534_v50 = vmax.f32 %v15274_v17, 0.0  ;;  %v17374_v8 = vpack.c.bf16 %v3736_v48, %v3729_v39 }
 0x377   :  { %v3756_v7 = vsub.f32 %v17361_v14, %v19502_v57  ;;  %v17379_v51 = vsub.f32 %v3531_v4, %v3631_v45  ;;  %v3533_v58 = vmax.f32 %v15275_v30, 0.0  ;;  %v13495_v28 = vpop.f32.mrb[10].mxu0  ;;  %v17381_v56 = vpack.c.bf16 %v3634_v41, %v3631_v45 }
 0x378   :  { %20075 = vst [vmem:[#allocation34_spill] sm:$0xff] %v17372_v27  ;;  %v3764_v40 = vand.u32 4294901760, %v3763_v60  ;;  %v19497_v38 = vand.u32 4294901760, %v17372_v27  ;;  %v3640_v26 = vand.u32 4294901760, %v3534_v50  ;;  %v15276_v49 = vadd.f32 %v13495_v28, %v17307_v54  ;;  %v3203_v29 = vpop.f32.mrb[11].mxu0 }
 0x379   :  { %20076 = vst [vmem:[#allocation36_spill] sm:$0xff] %v17381_v56  ;;  %v3757_v61 = vand.u32 4294901760, %v3756_v7  ;;  %v19499_v20 = vand.u32 4294901760, %v17379_v51  ;;  %v3637_v21 = vand.u32 4294901760, %v3533_v58  ;;  %v15277_v33 = vadd.f32 %v17307_v54, %v3203_v29 }
 0x37a   :  { %v3777_v48 = vsub.f32 %v17372_v27, %v19497_v38  ;;  %v17390_v23 = vsub.f32 %v3534_v50, %v3640_v26  ;;  %v3536_v5 = vmax.f32 %v15276_v49, 0.0  ;;  %v17392_v11 = vpack.c.bf16 %v3750_v6, %v3743_v18 }
 0x37b   :  { %v3770_v39 = vsub.f32 %v17379_v51, %v19499_v20  ;;  %v17397_v22 = vsub.f32 %v3533_v58, %v3637_v21  ;;  %v3535_v32 = vmax.f32 %v15277_v33, 0.0  ;;  %v13498_v2 = vpop.f32.mrb[12].mxu0  ;;  %v17399_v46 = vpack.c.bf16 %v3640_v26, %v3637_v21 }
 0x37c   :  { %v3778_v0 = vand.u32 4294901760, %v3777_v48  ;;  %v19495_v4 = vand.u32 4294901760, %v17390_v23  ;;  %v3646_v44 = vand.u32 4294901760, %v3536_v5  ;;  %v15278_v41 = vadd.f32 %v13498_v2, %v17307_v54  ;;  %v3215_v17 = vpop.f32.mrb[13].mxu0 }
 0x37d   :  { %20077 = vst [vmem:[#allocation38_spill] sm:$0xff] %v17399_v46  ;;  %v3771_v16 = vand.u32 4294901760, %v3770_v39  ;;  %v19496_v6 = vand.u32 4294901760, %v17397_v22  ;;  %v3643_v18 = vand.u32 4294901760, %v3535_v32  ;;  %v15279_v45 = vadd.f32 %v17307_v54, %v3215_v17 }
 0x37e   :  { %v3791_v30 = vsub.f32 %v17390_v23, %v19495_v4  ;;  %v17408_v60 = vsub.f32 %v3536_v5, %v3646_v44  ;;  %v3538_v50 = vmax.f32 %v15278_v41, 0.0  ;;  %v17410_v7 = vpack.c.bf16 %v3764_v40, %v3757_v61 }
 0x37f   :  { %v3784_v58 = vsub.f32 %v17397_v22, %v19496_v6  ;;  %v17415_v28 = vsub.f32 %v3535_v32, %v3643_v18  ;;  %v3537_v26 = vmax.f32 %v15279_v45, 0.0  ;;  %v13501_v49 = vpop.f32.mrb[14].mxu0  ;;  %v17417_v29 = vpack.c.bf16 %v3646_v44, %v3643_v18 }
 0x380   :  { %v3792_v21 = vand.u32 4294901760, %v3791_v30  ;;  %v19498_v33 = vand.u32 4294901760, %v17408_v60  ;;  %v3652_v48 = vand.u32 4294901760, %v3538_v50  ;;  %v15280_v5 = vadd.f32 %v13501_v49, %v17307_v54  ;;  %v3227_v39 = vpop.f32.mrb[15].mxu0 }
 0x381   :  { %20078 = vst [vmem:[#allocation41_spill] sm:$0xff] %v17417_v29  ;;  %v3785_v2 = vand.u32 4294901760, %v3784_v58  ;;  %v19500_v40 = vand.u32 4294901760, %v17415_v28  ;;  %v3649_v61 = vand.u32 4294901760, %v3537_v26  ;;  %v15281_v41 = vadd.f32 %v17307_v54, %v3227_v39 }
 0x382   :  { %v3805_v32 = vsub.f32 %v17408_v60, %v19498_v33  ;;  %v17426_v17 = vsub.f32 %v3538_v50, %v3652_v48  ;;  %v3540_v44 = vmax.f32 %v15280_v5, 0.0  ;;  %v17428_v18 = vpack.c.bf16 %v3778_v0, %v3771_v16 }
 0x383   :  { %v3798_v45 = vsub.f32 %v17415_v28, %v19500_v40  ;;  %v17433_v30 = vsub.f32 %v3537_v26, %v3649_v61  ;;  %v3539_v58 = vmax.f32 %v15281_v41, 0.0  ;;  %v13504_v49 = vpop.f32.mrb[16].mxu0  ;;  %v17435_v4 = vpack.c.bf16 %v3652_v48, %v3649_v61 }
 0x384   :  { %20079 = vst [vmem:[#allocation42_spill] sm:$0xff] %v17426_v17  ;;  %v3806_v39 = vand.u32 4294901760, %v3805_v32  ;;  %v19504_v6 = vand.u32 4294901760, %v17426_v17  ;;  %v3658_v38 = vand.u32 4294901760, %v3540_v44  ;;  %v15282_v50 = vadd.f32 %v13504_v49, %v17307_v54  ;;  %v3239_v33 = vpop.f32.mrb[17].mxu0 }
 0x385   :  { %20080 = vst [vmem:[#allocation45_spill] sm:$0xff] %v17433_v30  ;;  %20081 = vst [vmem:[#allocation46_spill] sm:$0xff] %v17435_v4  ;;  %v3799_v5 = vand.u32 4294901760, %v3798_v45  ;;  %v19506_v0 = vand.u32 4294901760, %v17433_v30  ;;  %v3655_v16 = vand.u32 4294901760, %v3539_v58  ;;  %v15283_v20 = vadd.f32 %v17307_v54, %v3239_v33 }
 0x386   :  { %v3819_v26 = vsub.f32 %v17426_v17, %v19504_v6  ;;  %v17444_v41 = vsub.f32 %v3540_v44, %v3658_v38  ;;  %v3542_v48 = vmax.f32 %v15282_v50, 0.0  ;;  %v17446_v61 = vpack.c.bf16 %v3792_v21, %v3785_v2 }
 0x387   :  { %v3812_v32 = vsub.f32 %v17433_v30, %v19506_v0  ;;  %v17451_v49 = vsub.f32 %v3539_v58, %v3655_v16  ;;  %v3541_v45 = vmax.f32 %v15283_v20, 0.0  ;;  %v13507_v40 = vpop.f32.mrb[18].mxu0  ;;  %v17453_v10 = vpack.c.bf16 %v3658_v38, %v3655_v16 }
 0x388   :  { %20082 = vst [vmem:[#allocation49_spill] sm:$0xff] %v17444_v41  ;;  %v3820_v33 = vand.u32 4294901760, %v3819_v26  ;;  %v19510_v57 = vand.u32 4294901760, %v17444_v41  ;;  %v3664_v15 = vand.u32 4294901760, %v3542_v48  ;;  %v15284_v44 = vadd.f32 %v13507_v40, %v17307_v54  ;;  %v3251_v6 = vpop.f32.mrb[19].mxu0 }
 0x389   :  { %20083 = vst [vmem:[#allocation51_spill] sm:$0xff] %v17451_v49  ;;  %20084 = vst [vmem:[#allocation52_spill] sm:$0xff] %v17453_v10  ;;  %v3813_v50 = vand.u32 4294901760, %v3812_v32  ;;  %v19512_v21 = vand.u32 4294901760, %v17451_v49  ;;  %v3661_v2 = vand.u32 4294901760, %v3541_v45  ;;  %v15285_v53 = vadd.f32 %v17307_v54, %v3251_v6 }
 0x38a   :  { %v3833_v20 = vsub.f32 %v17444_v41, %v19510_v57  ;;  %v17462_v58 = vsub.f32 %v3542_v48, %v3664_v15  ;;  %v3544_v38 = vmax.f32 %v15284_v44, 0.0  ;;  %v17464_v16 = vpack.c.bf16 %v3806_v39, %v3799_v5 }
 0x38b   :  { %v3826_v40 = vsub.f32 %v17451_v49, %v19512_v21  ;;  %v17469_v26 = vsub.f32 %v3541_v45, %v3661_v2  ;;  %v3543_v32 = vmax.f32 %v15285_v53, 0.0  ;;  %v13510_v0 = vpop.f32.mrb[20].mxu0  ;;  %v17471_v35 = vpack.c.bf16 %v3664_v15, %v3661_v2 }
 0x38c   :  { %20085 = vst [vmem:[#allocation56_spill] sm:$0xff] %v17462_v58  ;;  %v3834_v6 = vand.u32 4294901760, %v3833_v20  ;;  %v19513_v59 = vand.u32 4294901760, %v17462_v58  ;;  %v3670_v52 = vand.u32 4294901760, %v3544_v38  ;;  %v15286_v48 = vadd.f32 %v13510_v0, %v17307_v54  ;;  %v3263_v57 = vpop.f32.mrb[21].mxu0 }
 0x38d   :  { %20086 = vst [vmem:[#allocation58_spill] sm:$0xff] %v17469_v26  ;;  %20087 = vst [vmem:[#allocation61_spill] sm:$0xff] %v17471_v35  ;;  %v3827_v44 = vand.u32 4294901760, %v3826_v40  ;;  %v19514_v39 = vand.u32 4294901760, %v17469_v26  ;;  %v3667_v5 = vand.u32 4294901760, %v3543_v32  ;;  %v15287_v1 = vadd.f32 %v17307_v54, %v3263_v57  ;;  %14415 = vmatprep.subr.bf16.mxu1 %v17471_v35 }
 0x38e   :  { %v17478_v45 = vsub.f32 %v3544_v38, %v3670_v52  ;;  %v3546_v53 = vmax.f32 %v15286_v48, 0.0  ;;  %14417 = vmatpush3.bf16.msra.mxu1 %v17326_v12  ;;  %v3847_v15 = vsub.f32 %v17462_v58, %v19513_v59  ;;  %v17484_v2 = vpack.c.bf16 %v3820_v33, %v3813_v50 }
 0x38f   :  { %v17486_v0 = vsub.f32 %v3543_v32, %v3667_v5  ;;  %v3545_v20 = vmax.f32 %v15287_v1, 0.0  ;;  %v13513_v40 = vpop.f32.mrb[22].mxu0  ;;  %v17488_v21 = vpack.c.bf16 %v3670_v52, %v3667_v5  ;;  %v3840_v57 = vsub.f32 %v17469_v26, %v19514_v39 }
 0x390   :  { %20088 = vst [vmem:[#allocation63_spill] sm:$0xff] %v17478_v45  ;;  %v19519_v38 = vand.u32 4294901760, %v17478_v45  ;;  %v3676_v48 = vand.u32 4294901760, %v3546_v53  ;;  %v15288_v25 = vadd.f32 %v13513_v40, %v17307_v54  ;;  %v3275_v3 = vpop.f32.mrb[23].mxu0  ;;  %v3848_v37 = vand.u32 4294901760, %v3847_v15 }
 0x391   :  { %20089 = vst [vmem:[#allocation65_spill] sm:$0xff] %v17486_v0  ;;  %20090 = vst [vmem:[#allocation67_spill] sm:$0xff] %v17488_v21  ;;  %v3673_v50 = vand.u32 4294901760, %v3545_v20  ;;  %v15289_v32 = vadd.f32 %v17307_v54, %v3275_v3  ;;  %14419 = vmatprep.subr.bf16.mxu1 %v17488_v21  ;;  %v3841_v1 = vand.u32 4294901760, %v3840_v57  ;;  %v17504_v40 = vpack.c.bf16 %v3834_v6, %v3827_v44 }
 0x392   :  { %v17498_v52 = vsub.f32 %v3546_v53, %v3676_v48  ;;  %v3548_v5 = vmax.f32 %v15288_v25, 0.0  ;;  %14421 = vmatpush3.bf16.msra.mxu1 %v17345_v31  ;;  %v3861_v59 = vsub.f32 %v17478_v45, %v19519_v38  ;;  %v20092_v21 = vand.u32 4294901760, %v17486_v0 }
 0x393   :  { %v17506_v15 = vsub.f32 %v3545_v20, %v3673_v50  ;;  %v3547_v39 = vmax.f32 %v15289_v32, 0.0  ;;  %v13516_v33 = vpop.f32.mrb[24].mxu0  ;;  %v17508_v42 = vpack.c.bf16 %v3676_v48, %v3673_v50  ;;  %v17510_v3 = vpack.c.bf16 %v3848_v37, %v3841_v1 }
 0x394   :  { %v19526_v53 = vand.u32 4294901760, %v17498_v52  ;;  %v3682_v57 = vand.u32 4294901760, %v3548_v5  ;;  %v15290_v25 = vadd.f32 %v13516_v33, %v17307_v54  ;;  %v3287_v31 = vpop.f32.mrb[25].mxu0  ;;  %v3854_v38 = vsub.f32 %v17486_v0, %v20092_v21 }
 0x395   :  { %20091 = vst [vmem:[#allocation70_spill] sm:$0xff] %v17508_v42  ;;  %v3679_v44 = vand.u32 4294901760, %v3547_v39  ;;  %v15291_v20 = vadd.f32 %v17307_v54, %v3287_v31  ;;  %14423 = vmatprep.subr.bf16.mxu1 %v17508_v42  ;;  %v3862_v48 = vand.u32 4294901760, %v3861_v59  ;;  %v20094_v31 = vand.u32 4294901760, %v17506_v15 }
 0x396   :  { %v17520_v37 = vsub.f32 %v3548_v5, %v3682_v57  ;;  %v3550_v50 = vmax.f32 %v15290_v25, 0.0  ;;  %14425 = vmatpush3.bf16.msra.mxu1 %v17363_v9  ;;  %v3855_v32 = vand.u32 4294901760, %v3854_v38  ;;  %v3875_v33 = vsub.f32 %v17498_v52, %v19526_v53 }
 0x397   :  { %v17526_v1 = vsub.f32 %v3547_v39, %v3679_v44  ;;  %v3549_v21 = vmax.f32 %v15291_v20, 0.0  ;;  %v13519_v6 = vpop.f32.mrb[26].mxu0  ;;  %v17528_v12 = vpack.c.bf16 %v3682_v57, %v3679_v44  ;;  %v3868_v59 = vsub.f32 %v17506_v15, %v20094_v31 }
 0x398   :  { %v19535_v5 = vand.u32 4294901760, %v17520_v37  ;;  %v3688_v25 = vand.u32 4294901760, %v3550_v50  ;;  %v15292_v9 = vadd.f32 %v13519_v6, %v17307_v54  ;;  %v3299_v38 = vpop.f32.mrb[27].mxu0  ;;  %v17535_v42 = vpack.c.bf16 %v3862_v48, %v3855_v32 }
 0x399   :  { %20093 = vst [vmem:[#allocation72_spill] sm:$0xff] %v17528_v12  ;;  %v3685_v39 = vand.u32 4294901760, %v3549_v21  ;;  %v15293_v20 = vadd.f32 %v17307_v54, %v3299_v38  ;;  %14427 = vmatprep.subr.bf16.mxu1 %v17528_v12  ;;  %v3869_v57 = vand.u32 4294901760, %v3868_v59  ;;  %v3876_v31 = vand.u32 4294901760, %v3875_v33 }
 0x39a   :  { %v17540_v44 = vsub.f32 %v3550_v50, %v3688_v25  ;;  %v3552_v63 = vmax.f32 %v15292_v9, 0.0  ;;  %14429 = vmatpush3.bf16.msra.mxu1 %v17381_v56  ;;  %v3889_v6 = vsub.f32 %v17520_v37, %v19535_v5  ;;  %v20096_v38 = vand.u32 4294901760, %v17526_v1 }
 0x39b   :  { %v17546_v48 = vsub.f32 %v3549_v21, %v3685_v39  ;;  %v3551_v32 = vmax.f32 %v15293_v20, 0.0  ;;  %v13522_v53 = vpop.f32.mrb[28].mxu0  ;;  %v17548_v35 = vpack.c.bf16 %v3688_v25, %v3685_v39  ;;  %v17555_v12 = vpack.c.bf16 %v3876_v31, %v3869_v57 }
 0x39c   :  { %v3882_v59 = vsub.f32 %v17526_v1, %v20096_v38  ;;  %v19544_v50 = vand.u32 4294901760, %v17540_v44  ;;  %v3694_v9 = vand.u32 4294901760, %v3552_v63  ;;  %v15294_v56 = vadd.f32 %v13522_v53, %v17307_v54  ;;  %v3311_v33 = vpop.f32.mrb[29].mxu0 }
 0x39d   :  { %20095 = vst [vmem:[#allocation73_spill] sm:$0xff] %v17548_v35  ;;  %v3691_v21 = vand.u32 4294901760, %v3551_v32  ;;  %v15295_v20 = vadd.f32 %v17307_v54, %v3311_v33  ;;  %14431 = vmatprep.subr.bf16.mxu1 %v17548_v35  ;;  %v3890_v38 = vand.u32 4294901760, %v3889_v6  ;;  %v20098_v33 = vand.u32 4294901760, %v17546_v48 }
 0x39e   :  { %v3883_v25 = vand.u32 4294901760, %v3882_v59  ;;  %v17560_v39 = vsub.f32 %v3552_v63, %v3694_v9  ;;  %v3554_v41 = vmax.f32 %v15294_v56, 0.0  ;;  %14433 = vmatpush3.bf16.msra.mxu1 %v17399_v46  ;;  %v3903_v53 = vsub.f32 %v17540_v44, %v19544_v50 }
 0x39f   :  { %v17566_v57 = vsub.f32 %v3551_v32, %v3691_v21  ;;  %v3553_v31 = vmax.f32 %v15295_v20, 0.0  ;;  %v13525_v5 = vpop.f32.mrb[30].mxu0  ;;  %v17568_v49 = vpack.c.bf16 %v3694_v9, %v3691_v21  ;;  %v3896_v59 = vsub.f32 %v17546_v48, %v20098_v33 }
 0x3a0   :  { %v19553_v63 = vand.u32 4294901760, %v17560_v39  ;;  %v3700_v56 = vand.u32 4294901760, %v3554_v41  ;;  %v15296_v46 = vadd.f32 %v13525_v5, %v17307_v54  ;;  %v3323_v6 = vpop.f32.mrb[31].mxu0  ;;  %v17575_v35 = vpack.c.bf16 %v3890_v38, %v3883_v25 }
 0x3a1   :  { %20097 = vst [vmem:[#allocation76_spill] sm:$0xff] %v17568_v49  ;;  %v3697_v32 = vand.u32 4294901760, %v3553_v31  ;;  %v15297_v20 = vadd.f32 %v17307_v54, %v3323_v6  ;;  %14435 = vmatprep.subr.bf16.mxu1 %v17568_v49  ;;  %v3897_v9 = vand.u32 4294901760, %v3896_v59  ;;  %v3904_v33 = vand.u32 4294901760, %v3903_v53 }
 0x3a2   :  { %v17580_v21 = vsub.f32 %v3554_v41, %v3700_v56  ;;  %v3556_v34 = vmax.f32 %v15296_v46, 0.0  ;;  %14437 = vmatpush3.bf16.msra.mxu1 %v17417_v29  ;;  %v3917_v5 = vsub.f32 %v17560_v39, %v19553_v63  ;;  %v20102_v6 = vand.u32 4294901760, %v17566_v57 }
 0x3a3   :  { %v17586_v25 = vsub.f32 %v3553_v31, %v3697_v32  ;;  %v3555_v38 = vmax.f32 %v15297_v20, 0.0  ;;  %v13528_v50 = vpop.f32.mrb[32].mxu0  ;;  %v17588_v43 = vpack.c.bf16 %v3700_v56, %v3697_v32  ;;  %v17595_v49 = vpack.c.bf16 %v3904_v33, %v3897_v9 }
 0x3a4   :  { %20099 = vst [vmem:[#allocation78_spill] sm:$0xff] %v17580_v21  ;;  %v3910_v59 = vsub.f32 %v17566_v57, %v20102_v6  ;;  %v19562_v41 = vand.u32 4294901760, %v17580_v21  ;;  %v3706_v46 = vand.u32 4294901760, %v3556_v34  ;;  %v15298_v29 = vadd.f32 %v13528_v50, %v17307_v54  ;;  %v3335_v53 = vpop.f32.mrb[33].mxu0 }
 0x3a5   :  { %20100 = vst [vmem:[#allocation79_spill] sm:$0xff] %v17586_v25  ;;  %20101 = vst [vmem:[#allocation81_spill] sm:$0xff] %v17588_v43  ;;  %v3703_v31 = vand.u32 4294901760, %v3555_v38  ;;  %v15299_v20 = vadd.f32 %v17307_v54, %v3335_v53  ;;  %14439 = vmatprep.subr.bf16.mxu1 %v17588_v43  ;;  %v3918_v6 = vand.u32 4294901760, %v3917_v5  ;;  %v20105_v53 = vand.u32 4294901760, %v17586_v25 }
 0x3a6   :  { %v3911_v56 = vand.u32 4294901760, %v3910_v59  ;;  %v17600_v32 = vsub.f32 %v3556_v34, %v3706_v46  ;;  %v3558_v17 = vmax.f32 %v15298_v29, 0.0  ;;  %14441 = vmatpush3.bf16.msra.mxu1 %v17435_v4  ;;  %v3931_v50 = vsub.f32 %v17580_v21, %v19562_v41 }
 0x3a7   :  { %v17606_v9 = vsub.f32 %v3555_v38, %v3703_v31  ;;  %v3557_v33 = vmax.f32 %v15299_v20, 0.0  ;;  %v13531_v63 = vpop.f32.mrb[34].mxu0  ;;  %v17608_v30 = vpack.c.bf16 %v3706_v46, %v3703_v31  ;;  %v3924_v59 = vsub.f32 %v17586_v25, %v20105_v53 }
 0x3a8   :  { %20103 = vst [vmem:[#allocation83_spill] sm:$0xff] %v17600_v32  ;;  %v19571_v34 = vand.u32 4294901760, %v17600_v32  ;;  %v4478_v29 = vand.u32 4294901760, %v3558_v17  ;;  %v15300_v4 = vadd.f32 %v13531_v63, %v17307_v54  ;;  %v3347_v5 = vpop.f32.mrb[35].mxu0  ;;  %v17615_v43 = vpack.c.bf16 %v3918_v6, %v3911_v56 }
 0x3a9   :  { %20104 = vst [vmem:[#allocation85_spill] sm:$0xff] %v17608_v30  ;;  %v19573_v41 = vand.u32 4294901760, %v17606_v9  ;;  %v4475_v38 = vand.u32 4294901760, %v3557_v33  ;;  %v15301_v20 = vadd.f32 %v17307_v54, %v3347_v5  ;;  %14443 = vmatprep.subr.bf16.mxu1 %v17608_v30  ;;  %v3925_v46 = vand.u32 4294901760, %v3924_v59 }
 0x3aa   :  { %v3560_v31 = vmax.f32 %v15300_v4, 0.0  ;;  %14445 = vmatpush3.bf16.msra.mxu1 %v17453_v10  ;;  %v3932_v53 = vand.u32 4294901760, %v3931_v50  ;;  %v3945_v21 = vsub.f32 %v17600_v32, %v19571_v34  ;;  %v17633_v50 = vsub.f32 %v3558_v17, %v4478_v29 }
 0x3ab   :  { %v17624_v63 = vpack.c.bf16 %v4478_v29, %v4475_v38  ;;  %v3559_v56 = vmax.f32 %v15301_v20, 0.0  ;;  %v13534_v6 = vpop.f32.mrb[36].mxu0  ;;  %14447 = vmatprep.subr.bf16.mxu1 %v17510_v3  ;;  %v3938_v5 = vsub.f32 %v17606_v9, %v19573_v41  ;;  %v20108_v20 = vand.u32 4294901760, %v17322_v62 }
 0x3ac   :  { %v4484_v30 = vand.u32 4294901760, %v3560_v31  ;;  %v15302_v4 = vadd.f32 %v13534_v6, %v17307_v54  ;;  %v3359_v59 = vpop.f32.mrb[37].mxu0  ;;  %v17631_v10 = vpack.c.bf16 %v3932_v53, %v3925_v46  ;;  %20107 = vst [vmem:[#allocation91_spill] sm:$0xff] %v17633_v50  ;;  %v3946_v32 = vand.u32 4294901760, %v3945_v21 }
 0x3ad   :  { %20106 = vst [vmem:[#allocation87_spill] sm:$0xff] %v17624_v63  ;;  %v4481_v25 = vand.u32 4294901760, %v3559_v56  ;;  %v15303_v34 = vadd.f32 %v17307_v54, %v3359_v59  ;;  %3719 = vmatmul.mubr.f32.vlgmr.msra.gmra.mrb[0].mxu1 %v20108_v20  ;;  %v17638_v63 = vsub.f32 %v3557_v33, %v4475_v38  ;;  %v3939_v41 = vand.u32 4294901760, %v3938_v5 }
 0x3ae   :  { %v3562_v3 = vmax.f32 %v15302_v4, 0.0  ;;  %14449 = vmatpush3.bf16.msra.mxu1 %v17374_v8  ;;  %3949 = vmatprep.mubr.f32.mxu1 %v17293_v13  ;;  %v17642_v6 = vsub.f32 %v3560_v31, %v4484_v30  ;;  %v19576_v8 = vand.u32 4294901760, %v17633_v50 }
 0x3af   :  { %20109 = vst [vmem:[#allocation92_spill] sm:$0xff] %v17638_v63  ;;  %v17644_v46 = vpack.c.bf16 %v4484_v30, %v4481_v25  ;;  %v17646_v17 = vsub.f32 %v3559_v56, %v4481_v25  ;;  %v3561_v29 = vmax.f32 %v15303_v34, 0.0  ;;  %v13537_v53 = vpop.f32.mrb[38].mxu0  ;;  %14451 = vmatprep.subr.bf16.mxu1 %v17535_v42  ;;  %v19577_v31 = vand.u32 4294901760, %v17638_v63 }
 0x3b0   :  { %20110 = vst [vmem:[#allocation94_spill] sm:$0xff] %v17642_v6  ;;  %v4490_v62 = vand.u32 4294901760, %v3562_v3  ;;  %v15304_v33 = vadd.f32 %v13537_v53, %v17307_v54  ;;  %v3371_v38 = vpop.f32.mrb[39].mxu0  ;;  %v17654_v30 = vpack.c.bf16 %v3946_v32, %v3939_v41  ;;  %v19579_v25 = vand.u32 4294901760, %v17642_v6 }
 0x3b1   :  { %20111 = vst [vmem:[#allocation97_spill] sm:$0xff] %v17644_v46  ;;  %20112 = vst [vmem:[#allocation98_spill] sm:$0xff] %v17646_v17  ;;  %v4487_v5 = vand.u32 4294901760, %v3561_v29  ;;  %v15305_v21 = vadd.f32 %v17307_v54, %v3371_v38  ;;  %v19583_v42 = vand.u32 4294901760, %v17646_v17 }
 0x3b2   :  { %v3564_v4 = vmax.f32 %v15304_v33, 0.0  ;;  %14453 = vmatpush3.bf16.msra.mxu1 %v17392_v11  ;;  %v17665_v11 = vsub.f32 %v17633_v50, %v19576_v8  ;;  %v17671_v33 = vsub.f32 %v17638_v63, %v19577_v31  ;;  %v17681_v8 = vsub.f32 %v17642_v6, %v19579_v25  ;;  %v20157_v50 = vld [vmem:[#allocation49_spill] sm:$0xff] }
 0x3b3   :  { %v17658_v34 = vpack.c.bf16 %v4490_v62, %v4487_v5  ;;  %v3563_v56 = vmax.f32 %v15305_v21, 0.0  ;;  %v13540_v59 = vpop.f32.mrb[40].mxu0  ;;  %14455 = vmatprep.subr.bf16.mxu1 %v17555_v12  ;;  %v17673_v21 = vsub.f32 %v3562_v3, %v4490_v62 }
 0x3b4   :  { %v4496_v20 = vand.u32 4294901760, %v3564_v4  ;;  %v15306_v53 = vadd.f32 %v13540_v59, %v17307_v54  ;;  %v3383_v38 = vpop.f32.mrb[41].mxu0 }
 0x3b5   :  { %20113 = vst [vmem:[#allocation100_spill] sm:$0xff] %v17658_v34  ;;  %v4493_v41 = vand.u32 4294901760, %v3563_v56  ;;  %v15307_v32 = vadd.f32 %v17307_v54, %v3383_v38  ;;  %20114 = vst [vmem:[#allocation106_spill] sm:$0xff] %v17673_v21  ;;  %v17686_v38 = vsub.f32 %v17646_v17, %v19583_v42 }
 0x3b6   :  { %v3566_v12 = vmax.f32 %v15306_v53, 0.0  ;;  %14457 = vmatpush3.bf16.msra.mxu1 %v17410_v7  ;;  %v17691_v7 = vsub.f32 %v3561_v29, %v4487_v5  ;;  %v17707_v42 = vsub.f32 %v3564_v4, %v4496_v20 }
 0x3b7   :  { %v17688_v31 = vpack.c.bf16 %v4496_v20, %v4493_v41  ;;  %v3565_v3 = vmax.f32 %v15307_v32, 0.0  ;;  %v13543_v62 = vpop.f32.mrb[42].mxu0  ;;  %14459 = vmatprep.subr.bf16.mxu1 %v17575_v35  ;;  %v17710_v17 = vsub.f32 %v3563_v56, %v4493_v41 }
 0x3b8   :  { %20116 = vst [vmem:[#allocation111_spill] sm:$0xff] %v17691_v7  ;;  %v4502_v53 = vand.u32 4294901760, %v3566_v12  ;;  %v15308_v59 = vadd.f32 %v13543_v62, %v17307_v54  ;;  %v3395_v34 = vpop.f32.mrb[43].mxu0  ;;  %20118 = vst [vmem:[#allocation113_spill] sm:$0xff] %v17707_v42 }
 0x3b9   :  { %20115 = vst [vmem:[#allocation108_spill] sm:$0xff] %v17688_v31  ;;  %v4499_v46 = vand.u32 4294901760, %v3565_v3  ;;  %v15309_v13 = vadd.f32 %v17307_v54, %v3395_v34  ;;  %v19590_v34 = vand.u32 4294901760, %v17691_v7  ;;  %20119 = vst [vmem:[#allocation118_spill] sm:$0xff] %v17710_v17 }
 0x3ba   :  { %v3568_v31 = vmax.f32 %v15308_v59, 0.0  ;;  %14461 = vmatpush3.bf16.msra.mxu1 %v17428_v18  ;;  %v17712_v35 = vsub.f32 %v3566_v12, %v4502_v53 }
 0x3bb   :  { %v17703_v32 = vpack.c.bf16 %v4502_v53, %v4499_v46  ;;  %v3567_v62 = vmax.f32 %v15309_v13, 0.0  ;;  %v13546_v25 = vpop.f32.mrb[44].mxu0  ;;  %14463 = vmatprep.subr.bf16.mxu1 %v17595_v49  ;;  %v20121_v13 = vand.u32 4294901760, %v17673_v21  ;;  %v17720_v49 = vsub.f32 %v3565_v3, %v4499_v46 }
 0x3bc   :  { %v4508_v59 = vand.u32 4294901760, %v3568_v31  ;;  %v15310_v18 = vadd.f32 %v13546_v25, %v17307_v54  ;;  %v3407_v6 = vpop.f32.mrb[45].mxu0  ;;  %20120 = vst [vmem:[#allocation54_spill] sm:$0xff] %v17712_v35  ;;  %v17735_v46 = vsub.f32 %v17691_v7, %v19590_v34 }
 0x3bd   :  { %20117 = vst [vmem:[#allocation112_spill] sm:$0xff] %v17703_v32  ;;  %v4505_v29 = vand.u32 4294901760, %v3567_v62  ;;  %v15311_v5 = vadd.f32 %v17307_v54, %v3407_v6  ;;  %v17718_v32 = vsub.f32 %v17673_v21, %v20121_v13  ;;  %20122 = vst [vmem:[#allocation55_spill] sm:$0xff] %v17720_v49  ;;  %v20154_v21 = vld [vmem:[#allocation25_spill] sm:$0xff] }
 0x3be   :  { %v3570_v4 = vmax.f32 %v15310_v18, 0.0  ;;  %14465 = vmatpush3.bf16.msra.mxu1 %v17446_v61  ;;  %v17725_v56 = vsub.f32 %v3568_v31, %v4508_v59 }
 0x3bf   :  { %v17727_v20 = vpack.c.bf16 %v4508_v59, %v4505_v29  ;;  %v17729_v41 = vsub.f32 %v3567_v62, %v4505_v29  ;;  %v3569_v6 = vmax.f32 %v15311_v5, 0.0  ;;  %v13549_v12 = vpop.f32.mrb[46].mxu0  ;;  %14467 = vmatprep.subr.bf16.mxu1 %v17615_v43 }
 0x3c0   :  { %20123 = vst [vmem:[#allocation90_spill] sm:$0xff] %v17725_v56  ;;  %v4514_v3 = vand.u32 4294901760, %v3570_v4  ;;  %v15312_v53 = vadd.f32 %v13549_v12, %v17307_v54  ;;  %v3419_v31 = vpop.f32.mrb[47].mxu0 }
 0x3c1   :  { %20124 = vst [vmem:[#allocation102_spill] sm:$0xff] %v17727_v20  ;;  %20125 = vst [vmem:[#allocation104_spill] sm:$0xff] %v17729_v41  ;;  %v4511_v62 = vand.u32 4294901760, %v3569_v6  ;;  %v15313_v5 = vadd.f32 %v17307_v54, %v3419_v31  ;;  %v20128_v31 = vand.u32 4294901760, %v17707_v42 }
 0x3c2   :  { %v17743_v18 = vsub.f32 %v3570_v4, %v4514_v3  ;;  %v3572_v13 = vmax.f32 %v15312_v53, 0.0  ;;  %14469 = vmatpush3.bf16.msra.mxu1 %v17464_v16 }
 0x3c3   :  { %v17750_v59 = vpack.c.bf16 %v4514_v3, %v4511_v62  ;;  %v3571_v29 = vmax.f32 %v15313_v5, 0.0  ;;  %v13552_v61 = vpop.f32.mrb[48].mxu0  ;;  %14471 = vmatprep.subr.bf16.mxu1 %v17631_v10  ;;  %v17756_v4 = vsub.f32 %v17707_v42, %v20128_v31  ;;  %v17758_v53 = vsub.f32 %v3569_v6, %v4511_v62 }
 0x3c4   :  { %20126 = vst [vmem:[#allocation119_spill] sm:$0xff] %v17743_v18  ;;  %v4520_v16 = vand.u32 4294901760, %v3572_v13  ;;  %v15314_v34 = vadd.f32 %v13552_v61, %v17307_v54  ;;  %v3431_v43 = vpop.f32.mrb[49].mxu0  ;;  %v20130_v3 = vand.u32 4294901760, %v17710_v17  ;;  %v20132_v6 = vand.u32 4294901760, %v17720_v49 }
 0x3c5   :  { %20127 = vst [vmem:[#allocation120_spill] sm:$0xff] %v17750_v59  ;;  %20129 = vst [vmem:[#allocation121_spill] sm:$0xff] %v17758_v53  ;;  %v4517_v25 = vand.u32 4294901760, %v3571_v29  ;;  %v20131_v59 = vand.u32 4294901760, %v17712_v35  ;;  %v15315_v62 = vadd.f32 %v17307_v54, %v3431_v43  ;;  %v20133_v10 = vand.u32 4294901760, %v17725_v56 }
 0x3c6   :  { %v17765_v5 = vsub.f32 %v17710_v17, %v20130_v3  ;;  %v17776_v61 = vsub.f32 %v17720_v49, %v20132_v6  ;;  %14473 = vmatpush3.bf16.msra.mxu1 %v17484_v2  ;;  %v3574_v12 = vmax.f32 %v15314_v34, 0.0  ;;  %v20146_v2 = vpack.c.bf16 %v17478_v45, %v17486_v0  ;;  %v20151_v0 = vld [vmem:[#allocation83_spill] sm:$0xff] }
 0x3c7   :  { %v17771_v31 = vsub.f32 %v17712_v35, %v20131_v59  ;;  %v17786_v20 = vsub.f32 %v17725_v56, %v20133_v10  ;;  %v20135_v59 = vand.u32 4294901760, %v17729_v41  ;;  %v17793_v6 = vpack.c.bf16 %v4520_v16, %v4517_v25  ;;  %v13555_v43 = vpop.f32.mrb[50].mxu0  ;;  %14475 = vmatprep.subr.bf16.mxu1 %v17654_v30 }
 0x3c8   :  { %v15316_v49 = vadd.f32 %v13555_v43, %v17307_v54  ;;  %v3443_v42 = vpop.f32.mrb[51].mxu0  ;;  %v20138_v56 = vand.u32 4294901760, %v17743_v18  ;;  %v3573_v3 = vmax.f32 %v15315_v62, 0.0  ;;  %v20143_v62 = vand.u32 4294901760, %v17758_v53 }
 0x3c9   :  { %20134 = vst [vmem:[#allocation125_spill] sm:$0xff] %v17786_v20  ;;  %v17791_v35 = vsub.f32 %v17729_v41, %v20135_v59  ;;  %20137 = vst [vmem:[#allocation128_spill] sm:$0xff] %v17793_v6  ;;  %v17805_v41 = vsub.f32 %v3572_v13, %v4520_v16  ;;  %v15317_v6 = vadd.f32 %v17307_v54, %v3443_v42  ;;  %v17827_v30 = vand.u32 4294901760, %v3574_v12 }
 0x3ca   :  { %v17803_v59 = vsub.f32 %v17743_v18, %v20138_v56  ;;  %14477 = vmatpush3.bf16.msra.mxu1 %v17504_v40  ;;  %v17815_v56 = vsub.f32 %v3571_v29, %v4517_v25  ;;  %v20142_v42 = vpack.c.bf16 %v17462_v58, %v17469_v26  ;;  %v17825_v40 = vsub.f32 %v17758_v53, %v20143_v62  ;;  %v20150_v26 = vld [vmem:[#allocation42_spill] sm:$0xff]  ;;  %v20156_v18 = vld [vmem:[#allocation51_spill] sm:$0xff] }
 0x3cb   :  { %20136 = vst [vmem:[#allocation127_spill] sm:$0xff] %v17791_v35  ;;  %20140 = vst [vmem:[#allocation133_spill] sm:$0xff] %v17805_v41  ;;  %v13558_v13 = vpop.f32.mrb[52].mxu0  ;;  %v3576_v43 = vmax.f32 %v15316_v49, 0.0  ;;  %v3575_v34 = vmax.f32 %v15317_v6, 0.0  ;;  %v17834_v16 = vand.u32 4294901760, %v3573_v3  ;;  %v20145_v62 = vpack.c.bf16 %v17317_v36, %v17324_v19 }
 0x3cc   :  { %20139 = vst [vmem:[#allocation129_spill] sm:$0xff] %v17803_v59  ;;  %20141 = vst [vmem:[#allocation136_spill] sm:$0xff] %v17815_v56  ;;  %14479 = vmatprep.subr.bf16.mxu1 %v20142_v42  ;;  %v15318_v10 = vadd.f32 %v13558_v13, %v17307_v54  ;;  %v3455_v25 = vpop.f32.mrb[53].mxu0  ;;  %v17853_v49 = vsub.f32 %v3574_v12, %v17827_v30  ;;  %v20158_v63 = vand.u32 4294901760, %v17805_v41 }
 0x3cd   :  { %20144 = vst [vmem:[#allocation7_spill] sm:$0xff] %v17825_v40  ;;  %v15319_v42 = vadd.f32 %v17307_v54, %v3455_v25  ;;  %3951 = vmatmul.mubr.f32.vlgmr.msra.gmra.mrb[2].mxu1 %v17302_v55  ;;  %v20148_v55 = vld [vmem:[#allocation78_spill] sm:$0xff]  ;;  %v17855_v13 = vand.u32 4294901760, %v3576_v43  ;;  %v17867_v12 = vsub.f32 %v3573_v3, %v17834_v16 }
 0x3ce   :  { %v3578_v58 = vmax.f32 %v15318_v10, 0.0  ;;  %14481 = vmatpush3.bf16.msra.mxu1 %v20145_v62  ;;  %4086 = vmatprep.mubr.f32.mxu1 %v17296_v47  ;;  %v20147_v62 = vld [vmem:[#allocation79_spill] sm:$0xff] }
 0x3cf   :  { %v3577_v25 = vmax.f32 %v15319_v42, 0.0  ;;  %v13561_v29 = vpop.f32.mrb[54].mxu0  ;;  %14483 = vmatprep.subr.bf16.mxu1 %v20146_v2  ;;  %v20149_v42 = vld [vmem:[#allocation45_spill] sm:$0xff]  ;;  %v17861_v2 = vand.u32 4294901760, %v3575_v34  ;;  %20152 = vst [vmem:[#allocation8_spill] sm:$0xff] %v17867_v12  ;;  %v17891_v45 = vsub.f32 %v3576_v43, %v17855_v13  ;;  %v20163_v43 = vand.u32 4294901760, %v17498_v52 }
 0x3d0   :  { %v15320_v19 = vadd.f32 %v13561_v29, %v17307_v54  ;;  %v3467_v6 = vpop.f32.mrb[55].mxu0  ;;  %v17869_v53 = vand.u32 4294901760, %v3578_v58  ;;  %v20153_v29 = vld [vmem:[#allocation23_spill] sm:$0xff] }
 0x3d1   :  { %v15321_v10 = vadd.f32 %v17307_v54, %v3467_v6  ;;  %v20155_v7 = vpack.c.bf16 %v20153_v29, %v20154_v21  ;;  %v17879_v54 = vsub.f32 %v17805_v41, %v20158_v63  ;;  %v20159_v6 = vand.u32 4294901760, %v17815_v56  ;;  %v17896_v63 = vld [vmem:[%s19196_s3] ss:$0 sm:$0xff] }
 0x3d2   :  { %v3580_v17 = vmax.f32 %v15320_v19, 0.0  ;;  %v4535_v36 = vand.u32 4294901760, %v3577_v25  ;;  %v20161_v29 = vpack.c.bf16 %v17498_v52, %v17506_v15  ;;  %v17911_v20 = vsub.f32 %v3578_v58, %v17869_v53 }
 0x3d3   :  { %14485 = vmatpush3.bf16.msra.mxu1 %v20155_v7  ;;  %v17884_v3 = vsub.f32 %v17815_v56, %v20159_v6  ;;  %v3579_v59 = vmax.f32 %v15321_v10, 0.0  ;;  %v13564_v19 = vpop.f32.mrb[56].mxu0  ;;  %v17900_v10 = vsub.f32 %v3575_v34, %v17861_v2  ;;  %v20162_v7 = vand.u32 4294901760, %v17506_v15 }
 0x3d4   :  { %14487 = vmatprep.subr.bf16.mxu1 %v20161_v29  ;;  %v4544_v21 = vand.u32 4294901760, %v3580_v17  ;;  %v15322_v6 = vadd.f32 %v17896_v63, %v13564_v19  ;;  %v3479_v41 = vpop.f32.mrb[57].mxu0  ;;  %v20164_v19 = vpack.c.bf16 %v17354_v24, %v17361_v14  ;;  %v20165_v34 = vand.u32 4294901760, %v17526_v1 }
 0x3d5   :  { %20160 = vst [vmem:[#allocation13_spill] sm:$0xff] %v17884_v3  ;;  %v4541_v56 = vand.u32 4294901760, %v3579_v59  ;;  %v15323_v29 = vadd.f32 %v17896_v63, %v3479_v41  ;;  %v17907_v40 = vpack.c.bf16 %v20163_v43, %v20162_v7  ;;  %v20166_v41 = vand.u32 4294901760, %v17520_v37 }
 0x3d6   :  { %v3582_v35 = vmax.f32 %v15322_v6, 0.0  ;;  %v17922_v15 = vsub.f32 %v3577_v25, %v4535_v36  ;;  %v17924_v52 = vsub.f32 %v3580_v17, %v4544_v21  ;;  %v20168_v58 = vpack.c.bf16 %v17520_v37, %v17526_v1 }
 0x3d7   :  { %14489 = vmatpush3.bf16.msra.mxu1 %v20164_v19  ;;  %v17920_v3 = vpack.c.bf16 %v20166_v41, %v20165_v34  ;;  %v3581_v7 = vmax.f32 %v15323_v29, 0.0  ;;  %v13567_v43 = vpop.f32.mrb[58].mxu0  ;;  %v20169_v6 = vand.u32 4294901760, %v17546_v48  ;;  %v20170_v19 = vand.u32 4294901760, %v17540_v44 }
 0x3d8   :  { %14491 = vmatprep.subr.bf16.mxu1 %v20168_v58  ;;  %v17936_v34 = vsub.f32 %v3579_v59, %v4541_v56  ;;  %v4550_v25 = vand.u32 4294901760, %v3582_v35  ;;  %v15324_v17 = vadd.f32 %v17896_v63, %v13567_v43  ;;  %v3491_v41 = vpop.f32.mrb[59].mxu0  ;;  %v20172_v1 = vand.u32 4294901760, %v17566_v57 }
 0x3d9   :  { %20167 = vst [vmem:[#allocation6_spill] sm:$0xff] %v17920_v3  ;;  %v17933_v47 = vpack.c.bf16 %v20170_v19, %v20169_v6  ;;  %v4547_v3 = vand.u32 4294901760, %v3581_v7  ;;  %v15325_v37 = vadd.f32 %v17896_v63, %v3491_v41  ;;  %v20173_v58 = vand.u32 4294901760, %v17560_v39 }
 0x3da   :  { %v17948_v19 = vsub.f32 %v3582_v35, %v4550_v25  ;;  %v3584_v59 = vmax.f32 %v15324_v17, 0.0  ;;  %v20175_v43 = vpack.c.bf16 %v17372_v27, %v17379_v51  ;;  %v20176_v24 = vand.u32 4294901760, %v20147_v62 }
 0x3db   :  { %20171 = vst [vmem:[#allocation14_spill] sm:$0xff] %v17933_v47  ;;  %v17945_v14 = vpack.c.bf16 %v20173_v58, %v20172_v1  ;;  %v20177_v29 = vand.u32 4294901760, %v20148_v55  ;;  %v3583_v58 = vmax.f32 %v15325_v37, 0.0  ;;  %v20179_v35 = vpack.c.bf16 %v17540_v44, %v17546_v48 }
 0x3dc   :  { %14493 = vmatpush3.bf16.msra.mxu1 %v20175_v43  ;;  %v20180_v17 = vand.u32 4294901760, %v17606_v9  ;;  %v20181_v43 = vand.u32 4294901760, %v20151_v0  ;;  %v17978_v48 = vpack.c.bf16 %v17827_v30, %v17834_v16  ;;  %v20185_v30 = vpack.c.bf16 %v17560_v39, %v17566_v57 }
 0x3dd   :  { %20174 = vst [vmem:[#allocation15_spill] sm:$0xff] %v17945_v14  ;;  %v17957_v41 = vpack.c.bf16 %v20177_v29, %v20176_v24  ;;  %v13570_v14 = vpop.f32.mrb[60].mxu0  ;;  %14495 = vmatprep.subr.bf16.mxu1 %v20179_v35  ;;  %v17971_v24 = vsub.f32 %v3581_v7, %v4547_v3  ;;  %v4556_v29 = vand.u32 4294901760, %v3584_v59  ;;  %v20183_v7 = vpack.c.bf16 %v17390_v23, %v17397_v22 }
 0x3de   :  { %v17968_v6 = vpack.c.bf16 %v20181_v43, %v20180_v17  ;;  %v15326_v47 = vadd.f32 %v17896_v63, %v13570_v14  ;;  %v3503_v1 = vpop.f32.mrb[61].mxu0  ;;  %v17987_v14 = vpack.c.bf16 %v17855_v13, %v17861_v2  ;;  %v17990_v43 = vpack.c.bf16 %v17869_v53, %v4535_v36 }
 0x3df   :  { %20178 = vst [vmem:[#allocation5_spill] sm:$0xff] %v17957_v41  ;;  %v4553_v41 = vand.u32 4294901760, %v3583_v58  ;;  %v15327_v44 = vadd.f32 %v17896_v63, %v3503_v1  ;;  %v17980_v35 = vsub.f32 %v3584_v59, %v4556_v29  ;;  %v13573_v27 = vpop.f32.mrb[62].mxu0  ;;  %v17999_v16 = vpack.c.bf16 %v4550_v25, %v4547_v3 }
 0x3e0   :  { %v3586_v17 = vmax.f32 %v15326_v47, 0.0  ;;  %14497 = vmatpush3.bf16.msra.mxu1 %v20183_v7  ;;  %v17997_v47 = vpack.c.bf16 %v4544_v21, %v4541_v56  ;;  %v19638_v59 = vand.u32 4294901760, %v17971_v24  ;;  %v15328_v13 = vadd.f32 %v17896_v63, %v13573_v27  ;;  %v3515_v2 = vpop.f32.mrb[63].mxu0 }
 0x3e1   :  { %20182 = vst [vmem:[#allocation19_spill] sm:$0xff] %v17980_v35  ;;  %v17992_v37 = vsub.f32 %v3583_v58, %v4553_v41  ;;  %v3585_v1 = vmax.f32 %v15327_v44, 0.0  ;;  %14499 = vmatprep.subr.bf16.mxu1 %v20185_v30  ;;  %v18003_v36 = vpack.c.bf16 %v4556_v29, %v4553_v41  ;;  %v15329_v44 = vadd.f32 %v17896_v63, %v3515_v2 }
 0x3e2   :  { %v4562_v7 = vand.u32 4294901760, %v3586_v17  ;;  %v20186_v39 = vand.u32 4294901760, %v17867_v12  ;;  %v3588_v56 = vmax.f32 %v15328_v13, 0.0  ;;  %v20188_v3 = vpack.c.bf16 %v17408_v60, %v17415_v28 }
 0x3e3   :  { %20184 = vst [vmem:[#allocation21_spill] sm:$0xff] %v17992_v37  ;;  %v4559_v58 = vand.u32 4294901760, %v3585_v1  ;;  %v20189_v27 = vand.u32 4294901760, %v17853_v49  ;;  %v20190_v41 = vand.u32 4294901760, %v17671_v33  ;;  %v20191_v29 = vand.u32 4294901760, %v17665_v11 }
 0x3e4   :  { %v4702_v57 = vsub.f32 %v17867_v12, %v20186_v39  ;;  %v18010_v21 = vsub.f32 %v3586_v17, %v4562_v7  ;;  %14501 = vmatpush3.bf16.msra.mxu1 %v20188_v3  ;;  %v3587_v2 = vmax.f32 %v15329_v44, 0.0  ;;  %v20193_v17 = vpack.c.bf16 %v20148_v55, %v20147_v62 }
 0x3e5   :  { %v4709_v25 = vsub.f32 %v17853_v49, %v20189_v27  ;;  %v18022_v63 = vpack.c.bf16 %v20191_v29, %v20190_v41  ;;  %v18028_v13 = vpack.c.bf16 %v4562_v7, %v4559_v58  ;;  %v18030_v3 = vsub.f32 %v3585_v1, %v4559_v58  ;;  %v20226_v41 = vld [vmem:[#allocation18_spill] sm:$0xff] }
 0x3e6   :  { %20187 = vst [vmem:[#allocation22_spill] sm:$0xff] %v18010_v21  ;;  %14503 = vmatprep.subr.bf16.mxu1 %v20193_v17  ;;  %v4703_v39 = vand.u32 4294901760, %v4702_v57  ;;  %v4568_v53 = vand.u32 4294901760, %v3588_v56  ;;  %v20195_v33 = vand.u32 4294901760, %v17900_v10  ;;  %v4565_v29 = vand.u32 4294901760, %v3587_v2 }
 0x3e7   :  { %20192 = vst [vmem:[#allocation24_spill] sm:$0xff] %v18022_v63  ;;  %20194 = vst [vmem:[#allocation26_spill] sm:$0xff] %v18030_v3  ;;  %v4710_v27 = vand.u32 4294901760, %v4709_v25  ;;  %v20196_v44 = vand.u32 4294901760, %v17891_v45  ;;  %v20197_v55 = vand.u32 4294901760, %v17686_v38  ;;  %v20198_v62 = vand.u32 4294901760, %v17681_v8 }
 0x3e8   :  { %v4716_v11 = vsub.f32 %v17900_v10, %v20195_v33  ;;  %v18045_v1 = vsub.f32 %v3588_v56, %v4568_v53  ;;  %v20201_v58 = vpack.c.bf16 %v20150_v26, %v20149_v42  ;;  %v20203_v17 = vand.u32 4294901760, %v17922_v15 }
 0x3e9   :  { %v4723_v30 = vsub.f32 %v17891_v45, %v20196_v44  ;;  %v18043_v7 = vpack.c.bf16 %v20198_v62, %v20197_v55  ;;  %v18050_v57 = vpack.c.bf16 %v4710_v27, %v4703_v39  ;;  %v18055_v44 = vsub.f32 %v3587_v2, %v4565_v29  ;;  %v20233_v39 = vld [vmem:[#allocation20_spill] sm:$0xff] }
 0x3ea   :  { %20200 = vst [vmem:[#allocation31_spill] sm:$0xff] %v18045_v1  ;;  %14505 = vmatpush3.bf16.msra.mxu1 %v20201_v58  ;;  %v4717_v25 = vand.u32 4294901760, %v4716_v11  ;;  %v4730_v33 = vsub.f32 %v17922_v15, %v20203_v17  ;;  %v20205_v8 = vpack.c.bf16 %v20151_v0, %v17606_v9  ;;  %v18060_v38 = vpack.c.bf16 %v4568_v53, %v4565_v29 }
 0x3eb   :  { %20199 = vst [vmem:[#allocation27_spill] sm:$0xff] %v18043_v7  ;;  %20202 = vst [vmem:[#allocation32_spill] sm:$0xff] %v18050_v57  ;;  %v4724_v56 = vand.u32 4294901760, %v4723_v30  ;;  %v20206_v55 = vand.u32 4294901760, %v17911_v20  ;;  %v20207_v11 = vand.u32 4294901760, %v17735_v46  ;;  %v20208_v58 = vand.u32 4294901760, %v17718_v32 }
 0x3ec   :  { %20204 = vst [vmem:[#allocation35_spill] sm:$0xff] %v18055_v44  ;;  %14507 = vmatprep.subr.bf16.mxu1 %v20205_v8  ;;  %v4731_v27 = vand.u32 4294901760, %v4730_v33  ;;  %v20210_v17 = vand.u32 4294901760, %v17936_v34  ;;  %v20212_v29 = vand.u32 4294901760, %v17924_v52  ;;  %v20213_v46 = vpack.c.bf16 %v20157_v50, %v20156_v18 }
 0x3ed   :  { %v4737_v62 = vsub.f32 %v17911_v20, %v20206_v55  ;;  %v18070_v2 = vpack.c.bf16 %v20208_v58, %v20207_v11  ;;  %v18076_v53 = vpack.c.bf16 %v4724_v56, %v4717_v25  ;;  %v20214_v33 = vand.u32 4294901760, %v17765_v5 }
 0x3ee   :  { %v4744_v0 = vsub.f32 %v17936_v34, %v20210_v17  ;;  %v4751_v8 = vsub.f32 %v17924_v52, %v20212_v29  ;;  %14509 = vmatpush3.bf16.msra.mxu1 %v20213_v46  ;;  %v20215_v55 = vand.u32 4294901760, %v17756_v4  ;;  %v4758_v25 = vsub.f32 %v17971_v24, %v19638_v59  ;;  %v20218_v17 = vld [vmem:[#allocation61_spill] sm:$0xff] }
 0x3ef   :  { %20209 = vst [vmem:[#allocation37_spill] sm:$0xff] %v18070_v2  ;;  %20211 = vst [vmem:[#allocation39_spill] sm:$0xff] %v18076_v53  ;;  %v4738_v30 = vand.u32 4294901760, %v4737_v62  ;;  %v20217_v56 = vand.u32 4294901760, %v17948_v19  ;;  %14511 = vmatprep.subr.bf16.mxu1 %v20218_v17  ;;  %v20220_v5 = vand.u32 4294901760, %v17776_v61  ;;  %v20221_v4 = vand.u32 4294901760, %v17771_v31 }
 0x3f0   :  { %v4745_v32 = vand.u32 4294901760, %v4744_v0  ;;  %v18088_v11 = vpack.c.bf16 %v20215_v55, %v20214_v33  ;;  %v4752_v0 = vand.u32 4294901760, %v4751_v8  ;;  %v4759_v33 = vand.u32 4294901760, %v4758_v25  ;;  %v20228_v31 = vld [vmem:[#allocation127_spill] sm:$0xff]  ;;  %v20230_v25 = vld [vmem:[#allocation125_spill] sm:$0xff] }
 0x3f1   :  { %v4765_v62 = vsub.f32 %v17948_v19, %v20217_v56  ;;  %v18098_v29 = vpack.c.bf16 %v4738_v30, %v4731_v27  ;;  %v18104_v46 = vpack.c.bf16 %v20221_v4, %v20220_v5  ;;  %v20223_v59 = vand.u32 4294901760, %v17992_v37  ;;  %v20225_v30 = vld [vmem:[#allocation13_spill] sm:$0xff]  ;;  %4089 = vmatmul.mubr.f32.vlgmr.msra.gmra.mrb[4].mxu1 %v20226_v41 }
 0x3f2   :  { %20216 = vst [vmem:[#allocation40_spill] sm:$0xff] %v18088_v11  ;;  %v20224_v56 = vand.u32 4294901760, %v17980_v35  ;;  %v4696_v27 = vand.u32 4294901760, %v17879_v54  ;;  %v4689_v8 = vand.u32 4294901760, %v20225_v30  ;;  %v18115_v61 = vpack.c.bf16 %v4752_v0, %v4745_v32  ;;  %14513 = vmatpush3.bf16.msra.mxu1 %v20233_v39  ;;  %v20238_v0 = vld [vmem:[#allocation67_spill] sm:$0xff] }
 0x3f3   :  { %20219 = vst [vmem:[#allocation43_spill] sm:$0xff] %v18098_v29  ;;  %20222 = vst [vmem:[#allocation44_spill] sm:$0xff] %v18104_v46  ;;  %v4766_v55 = vand.u32 4294901760, %v4765_v62  ;;  %v4772_v9 = vsub.f32 %v17992_v37, %v20223_v59  ;;  %v20229_v5 = vand.u32 4294901760, %v20228_v31  ;;  %v20231_v62 = vand.u32 4294901760, %v20230_v25  ;;  %v20234_v59 = vld [vmem:[#allocation16_spill] sm:$0xff]  ;;  %14515 = vmatprep.subr.bf16.mxu1 %v20238_v0 }
 0x3f4   :  { %v4779_v58 = vsub.f32 %v17980_v35, %v20224_v56  ;;  %20227 = vst [vmem:[#allocation47_spill] sm:$0xff] %v18115_v61  ;;  %v20235_v46 = vand.u32 4294901760, %v20234_v59  ;;  %v20237_v30 = vand.u32 4294901760, %v18030_v3  ;;  %v20239_v31 = vand.u32 4294901760, %v18010_v21  ;;  %v20240_v25 = vld [vmem:[#allocation7_spill] sm:$0xff] }
 0x3f5   :  { %v18121_v4 = vpack.c.bf16 %v20231_v62, %v20229_v5  ;;  %v18126_v56 = vpack.c.bf16 %v4766_v55, %v4759_v33  ;;  %v4773_v54 = vand.u32 4294901760, %v4772_v9  ;;  %v20241_v62 = vand.u32 4294901760, %v20240_v25 }
 0x3f6   :  { %4193 = vmatprep.mubr.f32.mxu1 %v20235_v46  ;;  %v4780_v11 = vand.u32 4294901760, %v4779_v58  ;;  %v4786_v32 = vsub.f32 %v18030_v3, %v20237_v30  ;;  %v4793_v5 = vsub.f32 %v18010_v21, %v20239_v31  ;;  %v20246_v58 = vand.u32 4294901760, %v18055_v44  ;;  %v20249_v31 = vld [vmem:[#allocation28_spill] sm:$0xff] }
 0x3f7   :  { %20232 = vst [vmem:[#allocation48_spill] sm:$0xff] %v18121_v4  ;;  %20236 = vst [vmem:[#allocation50_spill] sm:$0xff] %v18126_v56  ;;  %v20242_v4 = vld [vmem:[#allocation129_spill] sm:$0xff]  ;;  %v20247_v55 = vand.u32 4294901760, %v18045_v1  ;;  %v18149_v2 = vpack.c.bf16 %v4696_v27, %v4689_v8  ;;  %14517 = vmatpush3.bf16.msra.mxu1 %v20249_v31  ;;  %v20264_v27 = vld [vmem:[#allocation104_spill] sm:$0xff]  ;;  %v20271_v29 = vand.u32 4294901760, %v17867_v12 }
 0x3f8   :  { %v20243_v61 = vand.u32 4294901760, %v20242_v4  ;;  %v18141_v46 = vpack.c.bf16 %v4780_v11, %v4773_v54  ;;  %v4787_v9 = vand.u32 4294901760, %v4786_v32  ;;  %v4800_v33 = vsub.f32 %v18055_v44, %v20246_v58  ;;  %v20261_v54 = vld [vmem:[#allocation33_spill] sm:$0xff]  ;;  %v20265_v8 = vld [vmem:[#allocation90_spill] sm:$0xff]  ;;  %v20268_v11 = vld [vmem:[#allocation119_spill] sm:$0xff] }
 0x3f9   :  { %v4807_v30 = vsub.f32 %v18045_v1, %v20247_v55  ;;  %v4794_v56 = vand.u32 4294901760, %v4793_v5  ;;  %20248 = vst [vmem:[#allocation59_spill] sm:$0xff] %v18149_v2  ;;  %v20263_v55 = vld [vmem:[#allocation54_spill] sm:$0xff]  ;;  %v20275_v53 = vand.u32 4294901760, %v17891_v45  ;;  %v20278_v63 = vand.u32 4294901760, %v17911_v20 }
 0x3fa   :  { %v18139_v59 = vpack.c.bf16 %v20243_v61, %v20241_v62  ;;  %20245 = vst [vmem:[#allocation57_spill] sm:$0xff] %v18141_v46  ;;  %v4801_v25 = vand.u32 4294901760, %v4800_v33  ;;  %v20252_v62 = vld [vmem:[#allocation70_spill] sm:$0xff]  ;;  %v20270_v46 = vld [vmem:[#allocation133_spill] sm:$0xff]  ;;  %v20272_v33 = vand.u32 4294901760, %v17853_v49  ;;  %v20280_v2 = vand.u32 4294901760, %v17936_v34 }
 0x3fb   :  { %v4808_v4 = vand.u32 4294901760, %v4807_v30  ;;  %14519 = vmatprep.subr.bf16.mxu1 %v20252_v62  ;;  %v18157_v58 = vpack.c.bf16 %v4794_v56, %v4787_v9  ;;  %v20259_v61 = vld [vmem:[#allocation118_spill] sm:$0xff]  ;;  %v20260_v56 = vld [vmem:[#allocation113_spill] sm:$0xff]  ;;  %v20266_v30 = vld [vmem:[#allocation72_spill] sm:$0xff]  ;;  %v20281_v12 = vand.u32 4294901760, %v17924_v52 }
 0x3fc   :  { %20244 = vst [vmem:[#allocation53_spill] sm:$0xff] %v18139_v59  ;;  %14521 = vmatpush3.bf16.msra.mxu1 %v20261_v54  ;;  %v20267_v9 = vld [vmem:[#allocation121_spill] sm:$0xff]  ;;  %v18195_v7 = vpack.c.bf16 %v20272_v33, %v20271_v29  ;;  %v20274_v59 = vand.u32 4294901760, %v17900_v10  ;;  %v20283_v29 = vld [vmem:[#allocation36_spill] sm:$0xff]  ;;  %v20284_v33 = vand.u32 4294901760, %v20259_v61 }
 0x3fd   :  { %20253 = vst [vmem:[#allocation60_spill] sm:$0xff] %v18157_v58  ;;  %v18161_v5 = vpack.c.bf16 %v4808_v4, %v4801_v25  ;;  %v20262_v4 = vld [vmem:[#allocation55_spill] sm:$0xff]  ;;  %14523 = vmatprep.subr.bf16.mxu1 %v20266_v30  ;;  %v20269_v58 = vld [vmem:[#allocation136_spill] sm:$0xff]  ;;  %v18213_v57 = vpack.c.bf16 %v20281_v12, %v20280_v2  ;;  %v20293_v2 = vand.u32 4294901760, %v17992_v37 }
 0x3fe   :  { %20273 = vst [vmem:[#allocation64_spill] sm:$0xff] %v18195_v7  ;;  %v18201_v32 = vpack.c.bf16 %v20275_v53, %v20274_v59  ;;  %v20285_v7 = vand.u32 4294901760, %v20260_v56  ;;  %v20287_v59 = vand.u32 4294901760, %v17971_v24 }
 0x3ff   :  { %20254 = vst [vmem:[#allocation62_spill] sm:$0xff] %v18161_v5  ;;  %v20277_v5 = vand.u32 4294901760, %v17922_v15  ;;  %20282 = vst [vmem:[#allocation69_spill] sm:$0xff] %v18213_v57  ;;  %v20294_v57 = vand.u32 4294901760, %v17980_v35 }
 0x400   :  { %20276 = vst [vmem:[#allocation66_spill] sm:$0xff] %v18201_v32  ;;  %14525 = vmatpush3.bf16.msra.mxu1 %v20283_v29  ;;  %v18220_v53 = vpack.c.bf16 %v20285_v7, %v20284_v33  ;;  %v20288_v32 = vand.u32 4294901760, %v17948_v19  ;;  %v20296_v7 = vld [vmem:[#allocation73_spill] sm:$0xff]  ;;  %v20297_v33 = vand.u32 4294901760, %v20264_v27 }
 0x401   :  { %v18207_v25 = vpack.c.bf16 %v20278_v63, %v20277_v5  ;;  %v20290_v5 = vand.u32 4294901760, %v20262_v4  ;;  %v18238_v61 = vpack.c.bf16 %v20294_v57, %v20293_v2  ;;  %14527 = vmatprep.subr.bf16.mxu1 %v20296_v7  ;;  %v20306_v2 = vand.u32 4294901760, %v18055_v44 }
 0x402   :  { %20286 = vst [vmem:[#allocation71_spill] sm:$0xff] %v18220_v53  ;;  %v18226_v63 = vpack.c.bf16 %v20288_v32, %v20287_v59  ;;  %v20298_v53 = vand.u32 4294901760, %v20265_v8  ;;  %v20300_v59 = vand.u32 4294901760, %v18030_v3  ;;  %v20328_v3 = vld [vmem:[#allocation65_spill] sm:$0xff]  ;;  %v20330_v8 = vld [vmem:[#allocation63_spill] sm:$0xff] }
 0x403   :  { %20279 = vst [vmem:[#allocation68_spill] sm:$0xff] %v18207_v25  ;;  %v20291_v25 = vand.u32 4294901760, %v20263_v55  ;;  %20295 = vst [vmem:[#allocation77_spill] sm:$0xff] %v18238_v61  ;;  %v20307_v61 = vand.u32 4294901760, %v18045_v1  ;;  %v20331_v37 = vand.u32 4294901760, %v20330_v8  ;;  %v20341_v8 = vld [vmem:[#allocation6_spill] sm:$0xff] }
 0x404   :  { %20289 = vst [vmem:[#allocation74_spill] sm:$0xff] %v18226_v63  ;;  %v18245_v32 = vpack.c.bf16 %v20298_v53, %v20297_v33  ;;  %v20301_v63 = vand.u32 4294901760, %v18010_v21  ;;  %v20309_v53 = vand.u32 4294901760, %v20269_v58  ;;  %v20310_v33 = vand.u32 4294901760, %v20270_v46  ;;  %v20322_v46 = vld [vmem:[#allocation52_spill] sm:$0xff] }
 0x405   :  { %v18232_v12 = vpack.c.bf16 %v20291_v25, %v20290_v5  ;;  %v20303_v5 = vand.u32 4294901760, %v20267_v9  ;;  %v18263_v27 = vpack.c.bf16 %v20307_v61, %v20306_v2  ;;  %v20318_v61 = vld [vmem:[#allocation58_spill] sm:$0xff]  ;;  %v20329_v21 = vand.u32 4294901760, %v20328_v3 }
 0x406   :  { %20299 = vst [vmem:[#allocation80_spill] sm:$0xff] %v18245_v32  ;;  %v18251_v25 = vpack.c.bf16 %v20301_v63, %v20300_v59  ;;  %v18269_v32 = vpack.c.bf16 %v20310_v33, %v20309_v53  ;;  %v20312_v63 = vld [vmem:[#allocation38_spill] sm:$0xff]  ;;  %v20313_v59 = vld [vmem:[#allocation76_spill] sm:$0xff]  ;;  %v20319_v2 = vand.u32 4294901760, %v20318_v61 }
 0x407   :  { %20292 = vst [vmem:[#allocation75_spill] sm:$0xff] %v18232_v12  ;;  %v20304_v12 = vand.u32 4294901760, %v20268_v11  ;;  %20308 = vst [vmem:[#allocation86_spill] sm:$0xff] %v18263_v27  ;;  %14529 = vmatpush3.bf16.msra.mxu1 %v20312_v63  ;;  %v20320_v27 = vld [vmem:[#allocation56_spill] sm:$0xff]  ;;  %v20323_v53 = vld [vmem:[#allocation10_spill] sm:$0xff]  ;;  %v20327_v11 = vand.u32 4294901760, %v20226_v41  ;;  %v14546_v35 = vpack.c.bf16 %v20331_v37, %v20329_v21 }
 0x408   :  { %20302 = vst [vmem:[#allocation82_spill] sm:$0xff] %v18251_v25  ;;  %20311 = vst [vmem:[#allocation88_spill] sm:$0xff] %v18269_v32  ;;  %14531 = vmatprep.subr.bf16.mxu1 %v20313_v59  ;;  %v20314_v25 = vld [vmem:[#allocation41_spill] sm:$0xff]  ;;  %v20321_v58 = vand.u32 4294901760, %v20320_v27  ;;  %v20324_v33 = vand.u32 4294901760, %v20323_v53  ;;  %v20332_v61 = vld [vmem:[#allocation12_spill] sm:$0xff] }
 0x409   :  { %v18257_v57 = vpack.c.bf16 %v20304_v12, %v20303_v5  ;;  %v20315_v12 = vld [vmem:[#allocation81_spill] sm:$0xff]  ;;  %v20316_v5 = vld [vmem:[#allocation46_spill] sm:$0xff]  ;;  %v20342_v37 = vand.u32 4294901760, %v17379_v51 }
 0x40a   :  { %v14542_v44 = vpack.c.bf16 %v20321_v58, %v20319_v2  ;;  %v20325_v32 = vld [vmem:[#allocation9_spill] sm:$0xff]  ;;  %v20343_v21 = vld [vmem:[#allocation34_spill] sm:$0xff] }
 0x40b   :  { %20305 = vst [vmem:[#allocation84_spill] sm:$0xff] %v18257_v57  ;;  %14533 = vmatpush3.bf16.msra.mxu1 %v20314_v25  ;;  %v20317_v57 = vld [vmem:[#allocation85_spill] sm:$0xff]  ;;  %v20326_v1 = vand.u32 4294901760, %v20325_v32 }
 0x40c   :  { %14535 = vmatprep.subr.bf16.mxu1 %v20315_v12  ;;  %v20333_v58 = vld [vmem:[#allocation25_spill] sm:$0xff] }
 0x40d   :  { %v14544_v9 = vpack.c.bf16 %v20326_v1, %v20324_v33  ;;  %v20334_v27 = vand.u32 4294901760, %v20333_v58  ;;  %v20337_v1 = vld [vmem:[#allocation30_spill] sm:$0xff]  ;;  %v20346_v58 = vand.u32 4294901760, %v17397_v22  ;;  %v20351_v51 = vld [vmem:[#allocation5_spill] sm:$0xff]  ;;  %v20355_v22 = vand.u32 4294901760, %v20157_v50 }
 0x40e   :  { %v20338_v41 = vand.u32 4294901760, %v20337_v1  ;;  %v20345_v33 = vld [vmem:[#allocation14_spill] sm:$0xff] }
 0x40f   :  { %14537 = vmatpush3.bf16.msra.mxu1 %v20316_v5 }
 0x410   :  { %14539 = vmatprep.subr.bf16.mxu1 %v20317_v57 }
 0x413   :  { %14541 = vmatpush3.bf16.msra.mxu1 %v20322_v46 }
 0x414   :  { %14543 = vmatprep.subr.bf16.mxu1 %v14542_v44  ;;  %v20335_v44 = vld [vmem:[#allocation23_spill] sm:$0xff] }
 0x415   :  { %v20336_v2 = vand.u32 4294901760, %v20335_v44  ;;  %v20348_v44 = vld [vmem:[#allocation15_spill] sm:$0xff] }
 0x416   :  { %4197 = vmatmul.mubr.f32.vlgmr.msra.gmra.mrb[6].mxu1 %v20327_v11  ;;  %v20339_v11 = vld [vmem:[#allocation29_spill] sm:$0xff] }
 0x417   :  { %14545 = vmatpush3.bf16.msra.mxu1 %v14544_v9  ;;  %4363 = vmatprep.mubr.f32.mxu1 %v20332_v61  ;;  %v14548_v53 = vpack.c.bf16 %v20336_v2, %v20334_v27  ;;  %v20340_v32 = vand.u32 4294901760, %v20339_v11  ;;  %v20349_v2 = vand.u32 4294901760, %v17415_v28  ;;  %v20353_v11 = vand.u32 4294901760, %v20150_v26  ;;  %v15847_v28 = vld [vmem:[%s19194_s1] sm:$0xff] }
 0x418   :  { %14547 = vmatprep.subr.bf16.mxu1 %v14546_v35  ;;  %v20344_v35 = vand.u32 4294901760, %v20343_v21  ;;  %v20357_v26 = vld [vmem:[#allocation11_spill] sm:$0xff] }
 0x419   :  { %v14552_v3 = vpack.c.bf16 %v20340_v32, %v20338_v41  ;;  %v20352_v41 = vand.u32 4294901760, %v20149_v42  ;;  %v3591_v42 = vcombine.high %v15847_v28, %v15847_v28  ;;  %v20368_v21 = vld [vmem:[#allocation39_spill] sm:$0xff] }
 0x41a   :  { %v14556_v9 = vpack.c.bf16 %v20344_v35, %v20342_v37  ;;  %v20367_v37 = vld [vmem:[#allocation24_spill] sm:$0xff]  ;;  %v20369_v35 = vld [vmem:[#allocation27_spill] sm:$0xff] }
 0x41b   :  { %14549 = vmatpush3.bf16.msra.mxu1 %v14548_v53  ;;  %v20350_v53 = vand.u32 4294901760, %v17408_v60  ;;  %v14568_v32 = vpack.c.bf16 %v20353_v11, %v20352_v41  ;;  %v20356_v60 = vld [vmem:[#allocation17_spill] sm:$0xff]  ;;  %v3605_v50 = vrot.slane %v3591_v42, %v20357_v26  ;;  %v20377_v41 = vld [vmem:[#allocation48_spill] sm:$0xff]  ;;  %v20384_v28 = vld [vmem:[#allocation91_spill] sm:$0xff] }
 0x41c   :  { %14551 = vmatprep.subr.bf16.mxu1 %v17907_v40  ;;  %v20347_v40 = vand.u32 4294901760, %v17390_v23  ;;  %v20354_v23 = vand.u32 4294901760, %v20156_v18  ;;  %v20378_v11 = vld [vmem:[#allocation60_spill] sm:$0xff] }
 0x41d   :  { %v14564_v1 = vpack.c.bf16 %v20350_v53, %v20349_v2  ;;  %v3607_v18 = vcombine.high %v3605_v50, %v3605_v50  ;;  %v20376_v2 = vld [vmem:[#allocation57_spill] sm:$0xff]  ;;  %v20385_v42 = vld [vmem:[#allocation92_spill] sm:$0xff] }
 0x41e   :  { %v14560_v27 = vpack.c.bf16 %v20347_v40, %v20346_v58  ;;  %v20372_v58 = vld [vmem:[#allocation47_spill] sm:$0xff]  ;;  %v20373_v40 = vld [vmem:[#allocation40_spill] sm:$0xff]  ;;  %v20386_v26 = vpack.c.bf16 %v20384_v28, %v20385_v42 }
 0x41f   :  { %14553 = vmatpush3.bf16.msra.mxu1 %v14552_v3  ;;  %v14572_v3 = vpack.c.bf16 %v20355_v22, %v20354_v23  ;;  %v20380_v23 = vld [vmem:[#allocation62_spill] sm:$0xff]  ;;  %v20381_v22 = vld [vmem:[#allocation59_spill] sm:$0xff] }
 0x420   :  { %14555 = vmatprep.subr.bf16.mxu1 %v20341_v8  ;;  %v20366_v8 = vld [vmem:[#allocation32_spill] sm:$0xff] }
 0x423   :  { %14557 = vmatpush3.bf16.msra.mxu1 %v14556_v9  ;;  %v20370_v9 = vld [vmem:[#allocation43_spill] sm:$0xff] }
 0x424   :  { %14559 = vmatprep.subr.bf16.mxu1 %v20345_v33  ;;  %v20371_v33 = vld [vmem:[#allocation37_spill] sm:$0xff] }
 0x427   :  { %14561 = vmatpush3.bf16.msra.mxu1 %v14560_v27  ;;  %v20374_v27 = vld [vmem:[#allocation50_spill] sm:$0xff] }
 0x428   :  { %14563 = vmatprep.subr.bf16.mxu1 %v20348_v44  ;;  %v20375_v44 = vld [vmem:[#allocation44_spill] sm:$0xff] }
 0x42b   :  { %14565 = vmatpush3.bf16.msra.mxu1 %v14564_v1 }
 0x42c   :  { %14567 = vmatprep.subr.bf16.mxu1 %v20351_v51 }
 0x42f   :  { %14569 = vmatpush3.bf16.msra.mxu1 %v14568_v32  ;;  %v20379_v32 = vld [vmem:[#allocation53_spill] sm:$0xff] }
 0x430   :  { %14571 = vmatprep.subr.bf16.mxu1 %v17968_v6  ;;  %v18341_v6 = vand.u32 4294901760, %v3607_v18 }
 0x433   :  { %14573 = vmatpush3.bf16.msra.mxu1 %v14572_v3  ;;  %v20382_v3 = vld [vmem:[#allocation8_spill] sm:$0xff] }
 0x434   :  { %14575 = vmatprep.subr.bf16.mxu1 %v20218_v17 }
 0x436   :  { %4365 = vmatmul.mubr.f32.vlgmr.msra.gmra.mrb[8].mxu1 %v20356_v60 }
 0x437   :  { %14577 = vmatpush3.bf16.msra.mxu1 %v20233_v39  ;;  %4467 = vmatprep.mubr.f32.mxu1 %v20332_v61  ;;  %v18346_v39 = vsub.f32 %v3607_v18, %v18341_v6  ;;  %v20365_v61 = vld [vmem:[#allocation128_spill] sm:$0xff]  ;;  %v20388_v18 = vld [vmem:[#allocation94_spill] sm:$0xff] }
 0x438   :  { %14579 = vmatprep.subr.bf16.mxu1 %v20238_v0 }
 0x439   :  { %v4572_v17 = vand.u32 4294901760, %v18346_v39 }
 0x43b   :  { %14581 = vmatpush3.bf16.msra.mxu1 %v20249_v31  ;;  %v4573_v0 = vsub.f32 %v18346_v39, %v4572_v17 }
 0x43c   :  { %14583 = vmatprep.subr.bf16.mxu1 %v20252_v62  ;;  %v20359_v62 = vld [vmem:[#allocation97_spill] sm:$0xff] }
 0x43d   :  { %v4574_v31 = vand.u32 4294901760, %v4573_v0  ;;  %v20389_v0 = vld [vmem:[#allocation98_spill] sm:$0xff] }
 0x43f   :  { %14585 = vmatpush3.bf16.msra.mxu1 %v20261_v54  ;;  %v20358_v54 = vld [vmem:[#allocation87_spill] sm:$0xff] }
 0x440   :  { %14587 = vmatprep.subr.bf16.mxu1 %v20266_v30  ;;  %v20360_v30 = vld [vmem:[#allocation100_spill] sm:$0xff] }
 0x443   :  { %14589 = vmatpush3.bf16.msra.mxu1 %v20283_v29  ;;  %v18366_v29 = vand.u32 4294901760, %v3605_v50 }
 0x444   :  { %14591 = vmatprep.subr.bf16.mxu1 %v20296_v7 }
 0x445   :  { %v18371_v7 = vsub.f32 %v3605_v50, %v18366_v29  ;;  %v20387_v50 = vpack.c.bf16 %v17891_v45, %v17900_v10  ;;  %v20398_v10 = vpack.c.bf16 %v17948_v19, %v17971_v24  ;;  %v20409_v24 = vld [vmem:[#allocation119_spill] sm:$0xff] }
 0x447   :  { %14593 = vmatpush3.bf16.msra.mxu1 %v20312_v63  ;;  %v20363_v63 = vld [vmem:[#allocation102_spill] sm:$0xff] }
 0x448   :  { %14595 = vmatprep.subr.bf16.mxu1 %v20313_v59 }
 0x44b   :  { %14597 = vmatpush3.bf16.msra.mxu1 %v20314_v25  ;;  %v20362_v25 = vld [vmem:[#allocation112_spill] sm:$0xff] }
 0x44c   :  { %14599 = vmatprep.subr.bf16.mxu1 %v20315_v12  ;;  %v20364_v12 = vld [vmem:[#allocation120_spill] sm:$0xff] }
 0x44f   :  { %14601 = vmatpush3.bf16.msra.mxu1 %v20316_v5 }
 0x450   :  { %14603 = vmatprep.subr.bf16.mxu1 %v20317_v57  ;;  %v4578_v57 = vand.u32 4294901760, %v18371_v7 }
 0x452   :  { %v4579_v59 = vsub.f32 %v18371_v7, %v4578_v57 }
 0x453   :  { %14605 = vmatpush3.bf16.msra.mxu1 %v20322_v46  ;;  %v20361_v46 = vld [vmem:[#allocation108_spill] sm:$0xff] }
 0x454   :  { %14607 = vmatprep.subr.bf16.mxu1 %v17978_v48  ;;  %v4580_v5 = vand.u32 4294901760, %v4579_v59  ;;  %v20392_v59 = vld [vmem:[#allocation106_spill] sm:$0xff] }
 0x456   :  { %4469 = vmatmul.mubr.f32.vlgmr.msra.gmra.mrb[10].mxu1 %v20356_v60  ;;  %v20383_v60 = vpack.c.bf16 %v17853_v49, %v20382_v3  ;;  %v20391_v49 = vpack.c.bf16 %v17911_v20, %v17922_v15  ;;  %v20399_v20 = vpack.c.bf16 %v20263_v55, %v20262_v4  ;;  %v20400_v15 = vld [vmem:[#allocation19_spill] sm:$0xff]  ;;  %v20418_v3 = vld [vmem:[#allocation64_spill] sm:$0xff] }
 0x457   :  { %14609 = vmatpush3.bf16.msra.mxu1 %v20358_v54  ;;  %4575 = vmatprep.mubr.f32.mxu1 %v4574_v31  ;;  %v20390_v31 = vpack.c.bf16 %v20388_v18, %v20389_v0  ;;  %v20412_v4 = vld [vmem:[#allocation31_spill] sm:$0xff] }
 0x458   :  { %14611 = vmatprep.subr.bf16.mxu1 %v17987_v14 }
 0x45b   :  { %14613 = vmatpush3.bf16.msra.mxu1 %v20359_v62 }
 0x45c   :  { %14615 = vmatprep.subr.bf16.mxu1 %v17990_v43 }
 0x45f   :  { %14617 = vmatpush3.bf16.msra.mxu1 %v20360_v30 }
 0x460   :  { %14619 = vmatprep.subr.bf16.mxu1 %v17997_v47 }
 0x463   :  { %14621 = vmatpush3.bf16.msra.mxu1 %v20361_v46 }
 0x464   :  { %14623 = vmatprep.subr.bf16.mxu1 %v17999_v16 }
 0x467   :  { %14625 = vmatpush3.bf16.msra.mxu1 %v20362_v25 }
 0x468   :  { %14627 = vmatprep.subr.bf16.mxu1 %v18003_v36 }
 0x46b   :  { %14629 = vmatpush3.bf16.msra.mxu1 %v20363_v63 }
 0x46c   :  { %14631 = vmatprep.subr.bf16.mxu1 %v18028_v13 }
 0x46f   :  { %14633 = vmatpush3.bf16.msra.mxu1 %v20364_v12 }
 0x470   :  { %14635 = vmatprep.subr.bf16.mxu1 %v18060_v38 }
 0x473   :  { %14637 = vmatpush3.bf16.msra.mxu1 %v20365_v61 }
 0x474   :  { %14639 = vmatprep.subr.bf16.mxu1 %v20366_v8 }
 0x476   :  { %4581 = vmatmul.mubr.f32.vlgmr.msra.gmra.mrb[12].mxu1 %v4580_v5  ;;  %v20393_v5 = vld [vmem:[#allocation111_spill] sm:$0xff] }
 0x477   :  { %14641 = vmatpush3.bf16.msra.mxu1 %v20367_v37  ;;  %4811 = vmatprep.mubr.f32.mxu1 %v18341_v6  ;;  %v20394_v8 = vpack.c.bf16 %v20392_v59, %v20393_v5  ;;  %v20395_v37 = vpack.c.bf16 %v17924_v52, %v17936_v34  ;;  %v20403_v34 = vld [vmem:[#allocation90_spill] sm:$0xff] }
 0x478   :  { %14643 = vmatprep.subr.bf16.mxu1 %v20368_v21  ;;  %v20396_v21 = vld [vmem:[#allocation118_spill] sm:$0xff] }
 0x479   :  { %v20397_v45 = vpack.c.bf16 %v20260_v56, %v20396_v21  ;;  %v20406_v56 = vld [vmem:[#allocation22_spill] sm:$0xff]  ;;  %v20424_v21 = vld [vmem:[#allocation68_spill] sm:$0xff] }
 0x47b   :  { %14645 = vmatpush3.bf16.msra.mxu1 %v20369_v35  ;;  %v20401_v35 = vld [vmem:[#allocation21_spill] sm:$0xff] }
 0x47c   :  { %14647 = vmatprep.subr.bf16.mxu1 %v20370_v9  ;;  %v20402_v9 = vpack.c.bf16 %v20400_v15, %v20401_v35 }
 0x47f   :  { %14649 = vmatpush3.bf16.msra.mxu1 %v20371_v33 }
 0x480   :  { %14651 = vmatprep.subr.bf16.mxu1 %v20372_v58  ;;  %v12172_v53 = vpop.f32.mrb[0].mxu1 }
 0x481   :  { %v12173_v1 = vpop.f32.mrb[1].mxu1 }
 0x482   :  { %v12174_v51 = vadd.f32 %v12173_v1, %v12172_v53  ;;  %v20410_v53 = vld [vmem:[#allocation121_spill] sm:$0xff]  ;;  %v20413_v1 = vld [vmem:[#allocation35_spill] sm:$0xff] }
 0x483   :  { %14653 = vmatpush3.bf16.msra.mxu1 %v20373_v40  ;;  %v20404_v40 = vld [vmem:[#allocation104_spill] sm:$0xff]  ;;  %v20411_v55 = vpack.c.bf16 %v20409_v24, %v20410_v53 }
 0x484   :  { %14655 = vmatprep.subr.bf16.mxu1 %v20374_v27  ;;  %v20405_v27 = vpack.c.bf16 %v20403_v34, %v20404_v40  ;;  %v5336_v34 = vld [vmem:[%s19197_s4] sm:$0xff]  ;;  %v5341_v40 = vld [vmem:[%s19198_s5 + $0x18] sm:$0xff] }
 0x487   :  { %14657 = vmatpush3.bf16.msra.mxu1 %v20375_v44  ;;  %v20407_v44 = vld [vmem:[#allocation26_spill] sm:$0xff] }
 0x488   :  { %14659 = vmatprep.subr.bf16.mxu1 %v20376_v2  ;;  %v20408_v2 = vpack.c.bf16 %v20406_v56, %v20407_v44  ;;  %v5366_v56 = vand.u32 4294901760, %v5341_v40 }
 0x48b   :  { %14661 = vmatpush3.bf16.msra.mxu1 %v20377_v41  ;;  %v20414_v41 = vpack.c.bf16 %v20412_v4, %v20413_v1 }
 0x48c   :  { %14663 = vmatprep.subr.bf16.mxu1 %v20378_v11  ;;  %v20415_v11 = vld [vmem:[#allocation133_spill] sm:$0xff] }
 0x48f   :  { %14665 = vmatpush3.bf16.msra.mxu1 %v20379_v32  ;;  %v20416_v32 = vld [vmem:[#allocation136_spill] sm:$0xff] }
 0x490   :  { %14667 = vmatprep.subr.bf16.mxu1 %v20380_v23  ;;  %v20417_v23 = vpack.c.bf16 %v20415_v11, %v20416_v32 }
 0x493   :  { %14669 = vmatpush3.bf16.msra.mxu1 %v20381_v22 }
 0x494   :  { %14671 = vmatprep.subr.bf16.mxu1 %v20383_v60  ;;  %v20419_v60 = vand.u32 4294901760, %v20385_v42  ;;  %v20425_v42 = vand.u32 4294901760, %v20393_v5  ;;  %v20433_v5 = vld [vmem:[#allocation82_spill] sm:$0xff] }
 0x496   :  { %4813 = vmatmul.mubr.f32.vlgmr.msra.gmra.mrb[14].mxu1 %v18366_v29 }
 0x497   :  { %14673 = vmatpush3.bf16.msra.mxu1 %v20386_v26  ;;  %4948 = vmatprep.mubr.f32.mxu1 %v18346_v39  ;;  %v20420_v26 = vand.u32 4294901760, %v20384_v28  ;;  %v20426_v28 = vand.u32 4294901760, %v20392_v59 }
 0x498   :  { %14675 = vmatprep.subr.bf16.mxu1 %v20387_v50 }
 0x499   :  { %v14736_v50 = vpack.c.bf16 %v20420_v26, %v20419_v60 }
 0x49b   :  { %14677 = vmatpush3.bf16.msra.mxu1 %v20390_v31  ;;  %v20421_v31 = vld [vmem:[#allocation66_spill] sm:$0xff] }
 0x49c   :  { %14679 = vmatprep.subr.bf16.mxu1 %v20391_v49  ;;  %v20422_v49 = vand.u32 4294901760, %v20389_v0  ;;  %v20431_v0 = vld [vmem:[#allocation77_spill] sm:$0xff] }
 0x49f   :  { %14681 = vmatpush3.bf16.msra.mxu1 %v20394_v8  ;;  %v20423_v8 = vand.u32 4294901760, %v20388_v18 }
 0x4a0   :  { %14683 = vmatprep.subr.bf16.mxu1 %v20395_v37  ;;  %v12207_v33 = vpop.f32.mrb[2].mxu1 }
 0x4a1   :  { %v12208_v58 = vpop.f32.mrb[3].mxu1  ;;  %v14740_v37 = vpack.c.bf16 %v20423_v8, %v20422_v49 }
 0x4a2   :  { %v12209_v52 = vadd.f32 %v12208_v58, %v12207_v33  ;;  %v20434_v33 = vld [vmem:[#allocation84_spill] sm:$0xff]  ;;  %v20435_v58 = vld [vmem:[#allocation86_spill] sm:$0xff] }
 0x4a3   :  { %14685 = vmatpush3.bf16.msra.mxu1 %v20397_v45  ;;  %v14744_v45 = vpack.c.bf16 %v20426_v28, %v20425_v42 }
 0x4a4   :  { %14687 = vmatprep.subr.bf16.mxu1 %v20398_v10  ;;  %v3953_v19 = vadd.f32 %v12209_v52, %v12174_v51  ;;  %v20429_v10 = vld [vmem:[#allocation74_spill] sm:$0xff]  ;;  %v20436_v52 = vld [vmem:[#allocation88_spill] sm:$0xff] }
 0x4a7   :  { %14689 = vmatpush3.bf16.msra.mxu1 %v20399_v20  ;;  %v20430_v20 = vld [vmem:[#allocation75_spill] sm:$0xff] }
 0x4a8   :  { %14691 = vmatprep.subr.bf16.mxu1 %v20402_v9  ;;  %v20432_v9 = vld [vmem:[#allocation80_spill] sm:$0xff] }
 0x4ab   :  { %14693 = vmatpush3.bf16.msra.mxu1 %v20405_v27 }
 0x4ac   :  { %14695 = vmatprep.subr.bf16.mxu1 %v20408_v2 }
 0x4af   :  { %14697 = vmatpush3.bf16.msra.mxu1 %v20411_v55 }
 0x4b0   :  { %14699 = vmatprep.subr.bf16.mxu1 %v20414_v41  ;;  %v5468_v41 = vsub.f32 %v5341_v40, %v5366_v56 }
 0x4b3   :  { %14701 = vmatpush3.bf16.msra.mxu1 %v20417_v23 }
 0x4b4   :  { %14703 = vmatprep.subr.bf16.mxu1 %v17978_v48 }
 0x4b6   :  { %4951 = vmatmul.mubr.f32.vlgmr.msra.gmra.mrb[16].mxu1 %v18371_v7  ;;  %v20427_v7 = vld [vmem:[#allocation69_spill] sm:$0xff] }
 0x4b7   :  { %14705 = vmatpush3.bf16.msra.mxu1 %v20358_v54  ;;  %5055 = vmatprep.mubr.f32.mxu1 %v4572_v17 }
 0x4b8   :  { %14707 = vmatprep.subr.bf16.mxu1 %v17987_v14 }
 0x4bb   :  { %14709 = vmatpush3.bf16.msra.mxu1 %v20359_v62 }
 0x4bc   :  { %14711 = vmatprep.subr.bf16.mxu1 %v17990_v43 }
 0x4bf   :  { %14713 = vmatpush3.bf16.msra.mxu1 %v20360_v30 }
 0x4c0   :  { %14715 = vmatprep.subr.bf16.mxu1 %v17997_v47 }
 0x4c3   :  { %14717 = vmatpush3.bf16.msra.mxu1 %v20361_v46 }
 0x4c4   :  { %14719 = vmatprep.subr.bf16.mxu1 %v17999_v16  ;;  %v12242_v39 = vpop.f32.mrb[4].mxu1 }
 0x4c5   :  { %v12243_v17 = vpop.f32.mrb[5].mxu1 }
 0x4c6   :  { %v12244_v51 = vadd.f32 %v12243_v17, %v12242_v39 }
 0x4c7   :  { %14721 = vmatpush3.bf16.msra.mxu1 %v20362_v25 }
 0x4c8   :  { %14723 = vmatprep.subr.bf16.mxu1 %v18003_v36  ;;  %v4091_v22 = vadd.f32 %v12244_v51, %v3953_v19  ;;  %v5469_v51 = vand.u32 4294901760, %v5468_v41 }
 0x4cb   :  { %14725 = vmatpush3.bf16.msra.mxu1 %v20363_v63 }
 0x4cc   :  { %14727 = vmatprep.subr.bf16.mxu1 %v18028_v13 }
 0x4cf   :  { %14729 = vmatpush3.bf16.msra.mxu1 %v20364_v12 }
 0x4d0   :  { %14731 = vmatprep.subr.bf16.mxu1 %v18060_v38 }
 0x4d3   :  { %14733 = vmatpush3.bf16.msra.mxu1 %v20365_v61 }
 0x4d4   :  { %14735 = vmatprep.subr.bf16.mxu1 %v20418_v3 }
 0x4d6   :  { %5059 = vmatmul.mubr.f32.vlgmr.msra.gmra.mrb[18].mxu1 %v4578_v57  ;;  %v20428_v57 = vld [vmem:[#allocation71_spill] sm:$0xff] }
 0x4d7   :  { %14737 = vmatpush3.bf16.msra.mxu1 %v14736_v50  ;;  %5225 = vmatprep.mubr.f32.mxu1 %v18341_v6 }
 0x4d8   :  { %14739 = vmatprep.subr.bf16.mxu1 %v20421_v31  ;;  %v5470_v31 = vsub.f32 %v5468_v41, %v5469_v51 }
 0x4db   :  { %14741 = vmatpush3.bf16.msra.mxu1 %v14740_v37  ;;  %v5471_v37 = vand.u32 4294901760, %v5470_v31 }
 0x4dc   :  { %14743 = vmatprep.subr.bf16.mxu1 %v20424_v21 }
 0x4df   :  { %14745 = vmatpush3.bf16.msra.mxu1 %v14744_v45 }
 0x4e0   :  { %14747 = vmatprep.subr.bf16.mxu1 %v20427_v7 }
 0x4e3   :  { %14749 = vmatpush3.bf16.msra.mxu1 %v20428_v57 }
 0x4e4   :  { %14751 = vmatprep.subr.bf16.mxu1 %v20429_v10 }
 0x4e7   :  { %14753 = vmatpush3.bf16.msra.mxu1 %v20430_v20 }
 0x4e8   :  { %14755 = vmatprep.subr.bf16.mxu1 %v20431_v0 }
 0x4e9   :  { %v12277_v18 = vpop.f32.mrb[6].mxu1 }
 0x4ea   :  { %v12278_v15 = vpop.f32.mrb[7].mxu1 }
 0x4eb   :  { %v12279_v35 = vadd.f32 %v12278_v15, %v12277_v18  ;;  %14757 = vmatpush3.bf16.msra.mxu1 %v20432_v9 }
 0x4ec   :  { %14759 = vmatprep.subr.bf16.mxu1 %v20433_v5 }
 0x4ed   :  { %v4199_v59 = vadd.f32 %v12279_v35, %v4091_v22 }
 0x4ef   :  { %14761 = vmatpush3.bf16.msra.mxu1 %v20434_v33 }
 0x4f0   :  { %14763 = vmatprep.subr.bf16.mxu1 %v20435_v58 }
 0x4f3   :  { %14765 = vmatpush3.bf16.msra.mxu1 %v20436_v52 }
 0x4f4   :  { %14767 = vmatprep.subr.bf16.mxu1 %v17978_v48  ;;  %v5351_v48 = vsel %vm5349_vm2, %v5336_v34, 0 }
 0x4f6   :  { %5227 = vmatmul.mubr.f32.vlgmr.msra.gmra.mrb[20].mxu1 %v18366_v29 }
 0x4f7   :  { %14769 = vmatpush3.bf16.msra.mxu1 %v20358_v54  ;;  %5329 = vmatprep.mubr.f32.mxu1 %v18341_v6  ;;  %v5338_v6 = vld [vmem:[%s19198_s5] sm:$0xff] }
 0x4f8   :  { %14771 = vmatprep.subr.bf16.mxu1 %v17987_v14  ;;  %v5339_v14 = vld [vmem:[%s19198_s5 + $0x8] sm:$0xff]  ;;  %v5357_v54 = vand.u32 4294901760, %v5338_v6 }
 0x4fa   :  { %v18536_v44 = vsub.f32 %v5338_v6, %v5357_v54  ;;  %v5886_v6 = vld [vmem:[%s19200_s7] sm:$0xff] }
 0x4fb   :  { %14773 = vmatpush3.bf16.msra.mxu1 %v20359_v62  ;;  %v5360_v62 = vand.u32 4294901760, %v5339_v14 }
 0x4fc   :  { %14775 = vmatprep.subr.bf16.mxu1 %v17990_v43  ;;  %v18518_v43 = vand.u32 4294901760, %v5351_v48  ;;  %v5448_v4 = vand.u32 4294901760, %v18536_v44 }
 0x4fd   :  { %v18538_v2 = vsub.f32 %v5339_v14, %v5360_v62  ;;  %v14798_v23 = vpack.c.bf16 %v5360_v62, %v5357_v54  ;;  %v5887_v14 = vld [vmem:[%s19200_s7 + $0x8] sm:$0xff]  ;;  %v5904_v62 = vand.u32 4294901760, %v5886_v6 }
 0x4ff   :  { %14777 = vmatpush3.bf16.msra.mxu1 %v20360_v30  ;;  %v5340_v30 = vld [vmem:[%s19198_s5 + $0x10] sm:$0xff]  ;;  %v14814_v42 = vpack.c.bf16 %v18538_v2, %v18536_v44 }
 0x500   :  { %14779 = vmatprep.subr.bf16.mxu1 %v17997_v47  ;;  %v5337_v47 = vld [vmem:[%s19197_s4 + $0x8] sm:$0xff]  ;;  %v5363_v27 = vand.u32 4294901760, %v5340_v30 }
 0x502   :  { %v5461_v1 = vsub.f32 %v5340_v30, %v5363_v27  ;;  %v14802_v3 = vpack.c.bf16 %v5366_v56, %v5363_v27  ;;  %v5889_v30 = vld [vmem:[%s19200_s7 + $0x18] sm:$0xff] }
 0x503   :  { %14781 = vmatpush3.bf16.msra.mxu1 %v20361_v46  ;;  %v18532_v46 = vsub.f32 %v5351_v48, %v18518_v43 }
 0x504   :  { %14783 = vmatprep.subr.bf16.mxu1 %v17999_v16  ;;  %v5354_v16 = vsel %vm5349_vm2, %v5337_v47, 0  ;;  %v5462_v17 = vand.u32 4294901760, %v5461_v1  ;;  %v5907_v47 = vand.u32 4294901760, %v5887_v14 }
 0x505   :  { %v18540_v53 = vand.u32 4294901760, %v5354_v16 }
 0x506   :  { %v14834_v20 = vpack.c.bf16 %v5469_v51, %v5462_v17  ;;  %v18576_v56 = vpack.c.bf16 %v5907_v47, %v5904_v62 }
 0x507   :  { %14785 = vmatpush3.bf16.msra.mxu1 %v20362_v25  ;;  %v5427_v25 = vand.u32 4294901760, %v18532_v46  ;;  %v5436_v32 = vsub.f32 %v5354_v16, %v18540_v53  ;;  %v5913_v16 = vand.u32 4294901760, %v5889_v30 }
 0x508   :  { %14787 = vmatprep.subr.bf16.mxu1 %v18003_v36  ;;  %v5455_v36 = vand.u32 4294901760, %v18538_v2 }
 0x509   :  { %v12312_v19 = vpop.f32.mrb[8].mxu1  ;;  %v5428_v39 = vsub.f32 %v18532_v46, %v5427_v25  ;;  %v5437_v22 = vand.u32 4294901760, %v5436_v32 }
 0x50a   :  { %v12313_v24 = vpop.f32.mrb[9].mxu1  ;;  %v14830_v10 = vpack.c.bf16 %v5455_v36, %v5448_v4 }
 0x50b   :  { %v12314_v55 = vadd.f32 %v12313_v24, %v12312_v19  ;;  %14789 = vmatpush3.bf16.msra.mxu1 %v20363_v63  ;;  %v5449_v63 = vsub.f32 %v18536_v44, %v5448_v4  ;;  %v5429_v60 = vand.u32 4294901760, %v5428_v39  ;;  %v5438_v49 = vsub.f32 %v5436_v32, %v5437_v22 }
 0x50c   :  { %14791 = vmatprep.subr.bf16.mxu1 %v18028_v13  ;;  %v5456_v13 = vsub.f32 %v18538_v2, %v5455_v36  ;;  %v5994_v19 = vsub.f32 %v5886_v6, %v5904_v62  ;;  %v6001_v24 = vsub.f32 %v5887_v14, %v5907_v47  ;;  %v6015_v4 = vsub.f32 %v5889_v30, %v5913_v16 }
 0x50d   :  { %v4367_v11 = vadd.f32 %v12314_v55, %v4199_v59  ;;  %v5450_v26 = vand.u32 4294901760, %v5449_v63  ;;  %v5439_v21 = vand.u32 4294901760, %v5438_v49 }
 0x50e   :  { %v5457_v50 = vand.u32 4294901760, %v5456_v13  ;;  %v6002_v55 = vand.u32 4294901760, %v6001_v24  ;;  %v18584_v13 = vpack.c.bf16 %v6001_v24, %v5994_v19 }
 0x50f   :  { %14793 = vmatpush3.bf16.msra.mxu1 %v20364_v12  ;;  %v5463_v12 = vsub.f32 %v5461_v1, %v5462_v17 }
 0x510   :  { %14795 = vmatprep.subr.bf16.mxu1 %v18060_v38  ;;  %v14806_v38 = vpack.c.bf16 %v5457_v50, %v5450_v26 }
 0x511   :  { %v5464_v8 = vand.u32 4294901760, %v5463_v12 }
 0x513   :  { %14797 = vmatpush3.bf16.msra.mxu1 %v20365_v61  ;;  %v14810_v61 = vpack.c.bf16 %v5471_v37, %v5464_v8  ;;  %v15874_v8 = vmov 0.0|0.0   ;;  %v15876_v37 = vmov 0.0  }
 0x514   :  { %14799 = vmatprep.subr.bf16.mxu1 %v14798_v23  ;;  %15146 = vmatprep.subr.bf16.mxu0 %v15874_v8 }
 0x515   :  { %14176 = vmatprep.mubr.msk.f32.mxu0 %vm15875_vm3, %v15876_v37 }
 0x516   :  { %5331 = vmatmul.mubr.f32.vlgmr.msra.gmra.mrb[22].mxu1 %v18366_v29  ;;  %v14818_v29 = vpack.c.bf16 %v5468_v41, %v5461_v1  ;;  %v6003_v1 = vsub.f32 %v6001_v24, %v6002_v55 }
 0x517   :  { %14801 = vmatpush3.bf16.msra.mxu1 %v14798_v23  ;;  %13582 = vmatprep.mubr.f32.mxu1 %v5429_v60 }
 0x518   :  { %14803 = vmatprep.subr.bf16.mxu1 %v14802_v3 }
 0x51b   :  { %14805 = vmatpush3.bf16.msra.mxu1 %v14802_v3 }
 0x51c   :  { %14807 = vmatprep.subr.bf16.mxu1 %v14806_v38 }
 0x51e   :  { %13583 = vmatmul.mubr.f32.vlgmr.msra.gmra.mrb[24].mxu1 %v5439_v21 }
 0x51f   :  { %14809 = vmatpush3.bf16.msra.mxu1 %v14806_v38  ;;  %13593 = vmatprep.mubr.f32.mxu1 %v18518_v43 }
 0x520   :  { %14811 = vmatprep.subr.bf16.mxu1 %v14810_v61 }
 0x523   :  { %14813 = vmatpush3.bf16.msra.mxu1 %v14810_v61 }
 0x524   :  { %14815 = vmatprep.subr.bf16.mxu1 %v14814_v42 }
 0x526   :  { %13594 = vmatmul.mubr.f32.vlgmr.msra.gmra.mrb[24].mxu1 %v18540_v53 }
 0x527   :  { %14817 = vmatpush3.bf16.msra.mxu1 %v14814_v42  ;;  %13604 = vmatprep.mubr.f32.mxu1 %v18532_v46 }
 0x528   :  { %14819 = vmatprep.subr.bf16.mxu1 %v14818_v29 }
 0x529   :  { %v12347_v28 = vpop.f32.mrb[10].mxu1 }
 0x52a   :  { %v12348_v45 = vpop.f32.mrb[11].mxu1 }
 0x52b   :  { %v12349_v7 = vadd.f32 %v12348_v45, %v12347_v28  ;;  %14821 = vmatpush3.bf16.msra.mxu1 %v14818_v29  ;;  %v6919_v28 = vld [vmem:[%s19201_s8] sm:$0xff]  ;;  %v6920_v45 = vld [vmem:[%s19201_s8 + $0x8] sm:$0xff] }
 0x52c   :  { %14823 = vmatprep.subr.bf16.mxu1 %v14798_v23 }
 0x52d   :  { %v4471_v57 = vadd.f32 %v12349_v7, %v4367_v11  ;;  %v6016_v11 = vand.u32 4294901760, %v6015_v4  ;;  %v6935_v7 = vand.u32 4294901760, %v6919_v28 }
 0x52e   :  { %13605 = vmatmul.mubr.f32.vlgmr.msra.gmra.mrb[24].mxu1 %v5436_v32 }
 0x52f   :  { %14825 = vmatpush3.bf16.msra.mxu1 %v14798_v23  ;;  %13615 = vmatprep.mubr.f32.mxu1 %v5427_v25  ;;  %v6017_v63 = vsub.f32 %v6015_v4, %v6016_v11 }
 0x530   :  { %14827 = vmatprep.subr.bf16.mxu1 %v14802_v3 }
 0x533   :  { %14829 = vmatpush3.bf16.msra.mxu1 %v14802_v3 }
 0x534   :  { %14831 = vmatprep.subr.bf16.mxu1 %v14830_v10 }
 0x536   :  { %13616 = vmatmul.mubr.f32.vlgmr.msra.gmra.mrb[24].mxu1 %v5437_v22  ;;  %v6018_v22 = vand.u32 4294901760, %v6017_v63 }
 0x537   :  { %14833 = vmatpush3.bf16.msra.mxu1 %v14830_v10  ;;  %13626 = vmatprep.mubr.f32.mxu1 %v18518_v43  ;;  %v6921_v10 = vld [vmem:[%s19201_s8 + $0x10] sm:$0xff] }
 0x538   :  { %14835 = vmatprep.subr.bf16.mxu1 %v14834_v20 }
 0x53b   :  { %14837 = vmatpush3.bf16.msra.mxu1 %v14834_v20  ;;  %v6922_v20 = vld [vmem:[%s19201_s8 + $0x18] sm:$0xff] }
 0x53c   :  { %14839 = vmatprep.subr.bf16.mxu1 %v14798_v23 }
 0x53e   :  { %13627 = vmatmul.mubr.f32.vlgmr.msra.gmra.mrb[24].mxu1 %v18540_v53 }
 0x53f   :  { %14841 = vmatpush3.bf16.msra.mxu1 %v14798_v23  ;;  %13637 = vmatprep.mubr.f32.mxu1 %v18518_v43  ;;  %v5888_v43 = vld [vmem:[%s19200_s7 + $0x10] sm:$0xff]  ;;  %v6004_v23 = vand.u32 4294901760, %v6003_v1 }
 0x540   :  { %14843 = vmatprep.subr.bf16.mxu1 %v14802_v3  ;;  %v5910_v40 = vand.u32 4294901760, %v5888_v43 }
 0x542   :  { %v18578_v44 = vpack.c.bf16 %v5913_v16, %v5910_v40  ;;  %v6008_v25 = vsub.f32 %v5888_v43, %v5910_v40 }
 0x543   :  { %14845 = vmatpush3.bf16.msra.mxu1 %v14802_v3 }
 0x544   :  { %14847 = vmatprep.subr.bf16.mxu1 %v18576_v56  ;;  %v6009_v41 = vand.u32 4294901760, %v6008_v25  ;;  %v18591_v60 = vpack.c.bf16 %v6015_v4, %v6008_v25 }
 0x546   :  { %13638 = vmatmul.mubr.f32.vlgmr.msra.gmra.mrb[24].mxu1 %v18540_v53  ;;  %v5995_v53 = vand.u32 4294901760, %v5994_v19  ;;  %v6010_v39 = vsub.f32 %v6008_v25, %v6009_v41  ;;  %v18595_v38 = vpack.c.bf16 %v6016_v11, %v6009_v41 }
 0x547   :  { %14849 = vmatpush3.bf16.msra.mxu1 %v18576_v56 }
 0x548   :  { %14851 = vmatprep.subr.bf16.mxu1 %v18578_v44  ;;  %v5996_v36 = vsub.f32 %v5994_v19, %v5995_v53  ;;  %v6011_v51 = vand.u32 4294901760, %v6010_v39  ;;  %v18593_v50 = vpack.c.bf16 %v6002_v55, %v5995_v53 }
 0x549   :  { %v12382_v0 = vpop.f32.mrb[12].mxu1 }
 0x54a   :  { %v12383_v18 = vpop.f32.mrb[13].mxu1  ;;  %v5997_v32 = vand.u32 4294901760, %v5996_v36  ;;  %v18589_v3 = vpack.c.bf16 %v6018_v22, %v6011_v51 }
 0x54b   :  { %v12384_v15 = vadd.f32 %v12383_v18, %v12382_v0  ;;  %14853 = vmatpush3.bf16.msra.mxu1 %v18578_v44  ;;  %v6941_v18 = vand.u32 4294901760, %v6921_v10 }
 0x54c   :  { %v18586_v17 = vpack.c.bf16 %v6004_v23, %v5997_v32 }
 0x54d   :  { %v4583_v35 = vadd.f32 %v12384_v15, %v4471_v57  ;;  %v6938_v57 = vand.u32 4294901760, %v6920_v45  ;;  %v6944_v15 = vand.u32 4294901760, %v6922_v20 }
 0x54e   :  { %14855 = vmatprep.subr.bf16.mxu1 %v18586_v17 }
 0x54f   :  { %v18614_v0 = vpack.c.bf16 %v6938_v57, %v6935_v7 }
 0x551   :  { %15148 = vmatpush3.bf16.msra.mxu0 %v18614_v0 }
 0x552   :  { %15149 = vmatprep.subr.bf16.mxu0 %v15874_v8 }
 0x569   :  { %v12417_v9 = vpop.f32.mrb[14].mxu1 }
 0x56a   :  { %v12418_v5 = vpop.f32.mrb[15].mxu1 }
 0x56b   :  { %v12419_v59 = vadd.f32 %v12418_v5, %v12417_v9  ;;  %v7015_v9 = vsub.f32 %v6919_v28, %v6935_v7  ;;  %v7022_v5 = vsub.f32 %v6920_v45, %v6938_v57 }
 0x56d   :  { %v4815_v33 = vadd.f32 %v12419_v59, %v4583_v35  ;;  %v18618_v35 = vpack.c.bf16 %v6944_v15, %v6941_v18  ;;  %v7016_v59 = vand.u32 4294901760, %v7015_v9  ;;  %v18627_v24 = vpack.c.bf16 %v7022_v5, %v7015_v9 }
 0x56f   :  { %15151 = vmatpush3.bf16.msra.mxu0 %v18618_v35 }
 0x570   :  { %15152 = vmatprep.subr.bf16.mxu0 %v15874_v8 }
 0x589   :  { %v12452_v58 = vpop.f32.mrb[16].mxu1 }
 0x58a   :  { %v12453_v52 = vpop.f32.mrb[17].mxu1 }
 0x58b   :  { %v12454_v34 = vadd.f32 %v12453_v52, %v12452_v58  ;;  %v7029_v58 = vsub.f32 %v6921_v10, %v6941_v18  ;;  %v7036_v52 = vsub.f32 %v6922_v20, %v6944_v15 }
 0x58d   :  { %v4953_v48 = vadd.f32 %v12454_v34, %v4815_v33  ;;  %v7023_v33 = vand.u32 4294901760, %v7022_v5  ;;  %v11714_v34 = vld [vmem:[%s19199_s6] ss:$0 sm:$0xff]  ;;  %v7030_v14 = vand.u32 4294901760, %v7029_v58  ;;  %v7037_v43 = vand.u32 4294901760, %v7036_v52 }
 0x58e   :  { %v18629_v55 = vpack.c.bf16 %v7036_v52, %v7029_v58 }
 0x58f   :  { %v7024_v6 = vsub.f32 %v7022_v5, %v7023_v33  ;;  %v18635_v51 = vpack.c.bf16 %v7023_v33, %v7016_v59 }
 0x591   :  { %v7025_v40 = vand.u32 4294901760, %v7024_v6 }
 0x5a9   :  { %v12487_v54 = vpop.f32.mrb[18].mxu1 }
 0x5aa   :  { %v12488_v46 = vpop.f32.mrb[19].mxu1 }
 0x5ab   :  { %v12489_v27 = vadd.f32 %v12488_v46, %v12487_v54  ;;  %v7031_v46 = vsub.f32 %v7029_v58, %v7030_v14 }
 0x5ad   :  { %v5061_v2 = vadd.f32 %v12489_v27, %v4953_v48  ;;  %v7017_v48 = vsub.f32 %v7015_v9, %v7016_v59  ;;  %v7038_v27 = vsub.f32 %v7036_v52, %v7037_v43  ;;  %v7032_v19 = vand.u32 4294901760, %v7031_v46  ;;  %v18765_v52 = vld [vmem:[%s19203_s10] ss:$0 sm:$0xff]  ;;  %s15878_s10 = smov 96  }
 0x5af   :  { %v7018_v30 = vand.u32 4294901760, %v7017_v48  ;;  %v7039_v53 = vand.u32 4294901760, %v7038_v27 }
 0x5b1   :  { %v18631_v25 = vpack.c.bf16 %v7039_v53, %v7032_v19 }
 0x5c9   :  { %v12522_v26 = vpop.f32.mrb[20].mxu1 }
 0x5ca   :  { %v12523_v12 = vpop.f32.mrb[21].mxu1 }
 0x5cb   :  { %v12524_v31 = vadd.f32 %v12523_v12, %v12522_v26  ;;  %v18637_v12 = vpack.c.bf16 %v7037_v43, %v7030_v14 }
 0x5cd   :  { %v5229_v49 = vadd.f32 %v12524_v31, %v5061_v2  ;;  %v18625_v2 = vpack.c.bf16 %v7025_v40, %v7018_v30 }
 0x5e9   :  { %v12557_v21 = vpop.f32.mrb[22].mxu1 }
 0x5ea   :  { %v12558_v61 = vpop.f32.mrb[23].mxu1 }
 0x5eb   :  { %v12559_v42 = vadd.f32 %v12558_v61, %v12557_v21 }
 0x5ed   :  { %v18600_v29 = vadd.f32 %v12559_v42, %v5229_v49 }
 0x5ef   :  { %v6432_v61 = vsel %vm5349_vm2, %v18600_v29, 0 }
 0x5f0   :  { %v6503_v42 = vand.u32 4294901760, %v6432_v61 }
 0x5f2   :  { %v6504_v28 = vsub.f32 %v6432_v61, %v6503_v42 }
 0x5f4   :  { %v6505_v45 = vand.u32 4294901760, %v6504_v28 }
 0x5f6   :  { %v6506_v29 = vsub.f32 %v6504_v28, %v6505_v45 }
 0x5f8   :  { %v6507_v7 = vand.u32 4294901760, %v6506_v29 }
 0x619   :  { %v13639_v54 = vpop.f32.mrb[24].mxu1 }
 0x61a   :  { %v15330_v62 = vadd.f32 %v13639_v54, %v11714_v34  ;;  %v5874_v47 = vpop.f32.mrb[25].mxu1 }
 0x61b   :  { %v15331_v16 = vadd.f32 %v11714_v34, %v5874_v47 }
 0x61c   :  { %15794 = vtanh.f32 %v15330_v62 }
 0x61d   :  { %15796 = vtanh.f32 %v15331_v16 }
 0x626   :  { %v15795_v4 = vpop.eup %15794 }
 0x627   :  { %v15797_v36 = vpop.eup %15796  ;;  %v5901_v1 = vsel %vm5349_vm2, %v15795_v4, 0 }
 0x628   :  { %v5982_v41 = vand.u32 4294901760, %v5901_v1  ;;  %v5898_v11 = vsel %vm5349_vm2, %v15797_v36, 0 }
 0x629   :  { %v5972_v32 = vand.u32 4294901760, %v5898_v11 }
 0x62a   :  { %v5983_v23 = vsub.f32 %v5901_v1, %v5982_v41 }
 0x62b   :  { %v5973_v39 = vsub.f32 %v5898_v11, %v5972_v32 }
 0x62c   :  { %v5984_v63 = vand.u32 4294901760, %v5983_v23 }
 0x62d   :  { %v5974_v22 = vand.u32 4294901760, %v5973_v39 }
 0x62e   :  { %v5985_v26 = vsub.f32 %v5983_v23, %v5984_v63 }
 0x62f   :  { %v5975_v31 = vsub.f32 %v5973_v39, %v5974_v22 }
 0x630   :  { %v5986_v21 = vand.u32 4294901760, %v5985_v26 }
 0x631   :  { %v5976_v49 = vand.u32 4294901760, %v5975_v31 }
 0x633   :  { %13648 = vmatprep.mubr.f32.mxu1 %v5976_v49 }
 0x634   :  { %13649 = vmatmul.mubr.f32.vlgmr.msra.gmra.mrb[26].mxu1 %v5986_v21 }
 0x635   :  { %14857 = vmatpush3.bf16.msra.mxu1 %v18586_v17  ;;  %13659 = vmatprep.mubr.f32.mxu1 %v5972_v32 }
 0x636   :  { %14859 = vmatprep.subr.bf16.mxu1 %v18589_v3 }
 0x639   :  { %14861 = vmatpush3.bf16.msra.mxu1 %v18589_v3 }
 0x63a   :  { %14863 = vmatprep.subr.bf16.mxu1 %v18584_v13 }
 0x63c   :  { %13660 = vmatmul.mubr.f32.vlgmr.msra.gmra.mrb[26].mxu1 %v5982_v41 }
 0x63d   :  { %14865 = vmatpush3.bf16.msra.mxu1 %v18584_v13  ;;  %13670 = vmatprep.mubr.f32.mxu1 %v5973_v39 }
 0x63e   :  { %14867 = vmatprep.subr.bf16.mxu1 %v18591_v60 }
 0x641   :  { %14869 = vmatpush3.bf16.msra.mxu1 %v18591_v60 }
 0x642   :  { %14871 = vmatprep.subr.bf16.mxu1 %v18576_v56 }
 0x644   :  { %13671 = vmatmul.mubr.f32.vlgmr.msra.gmra.mrb[26].mxu1 %v5983_v23 }
 0x645   :  { %14873 = vmatpush3.bf16.msra.mxu1 %v18576_v56  ;;  %13681 = vmatprep.mubr.f32.mxu1 %v5974_v22 }
 0x646   :  { %14875 = vmatprep.subr.bf16.mxu1 %v18578_v44 }
 0x649   :  { %14877 = vmatpush3.bf16.msra.mxu1 %v18578_v44 }
 0x64a   :  { %14879 = vmatprep.subr.bf16.mxu1 %v18593_v50 }
 0x64c   :  { %13682 = vmatmul.mubr.f32.vlgmr.msra.gmra.mrb[26].mxu1 %v5984_v63 }
 0x64d   :  { %14881 = vmatpush3.bf16.msra.mxu1 %v18593_v50  ;;  %13692 = vmatprep.mubr.f32.mxu1 %v5972_v32 }
 0x64e   :  { %14883 = vmatprep.subr.bf16.mxu1 %v18595_v38 }
 0x651   :  { %14885 = vmatpush3.bf16.msra.mxu1 %v18595_v38 }
 0x652   :  { %14887 = vmatprep.subr.bf16.mxu1 %v18576_v56 }
 0x654   :  { %13693 = vmatmul.mubr.f32.vlgmr.msra.gmra.mrb[26].mxu1 %v5982_v41 }
 0x655   :  { %14889 = vmatpush3.bf16.msra.mxu1 %v18576_v56  ;;  %13703 = vmatprep.mubr.f32.mxu1 %v5972_v32 }
 0x656   :  { %14891 = vmatprep.subr.bf16.mxu1 %v18578_v44 }
 0x659   :  { %14893 = vmatpush3.bf16.msra.mxu1 %v18578_v44 }
 0x65a   :  { %14894 = vmatprep.subr.bf16.mxu1 %v15874_v8 }
 0x65c   :  { %13704 = vmatmul.mubr.f32.vlgmr.msra.gmra.mrb[26].mxu1 %v5982_v41 }
 0x65d   :  { %14896 = vmatpush3.bf16.msra.mxu1 %v18576_v56  ;;  %13714 = vmatprep.mubr.msk.f32.mxu1 %vm15875_vm3, %v15876_v37 }
 0x65e   :  { %14897 = vmatprep.subr.bf16.mxu1 %v15874_v8 }
 0x661   :  { %14899 = vmatpush3.bf16.msra.mxu1 %v18578_v44 }
 0x662   :  { %14900 = vmatprep.subr.bf16.mxu1 %v15874_v8 }
 0x664   :  { %13715 = vmatmul.mubr.f32.vlgmr.msra.gmra.mrb[28].mxu1 %v6507_v7 }
 0x665   :  { %14902 = vmatpush3.bf16.msra.mxu1 %v18586_v17  ;;  %13725 = vmatprep.mubr.msk.f32.mxu1 %vm15875_vm3, %v15876_v37 }
 0x666   :  { %14903 = vmatprep.subr.bf16.mxu1 %v15874_v8 }
 0x669   :  { %14905 = vmatpush3.bf16.msra.mxu1 %v18589_v3 }
 0x66a   :  { %14906 = vmatprep.subr.bf16.mxu1 %v15874_v8 }
 0x66c   :  { %13726 = vmatmul.mubr.f32.vlgmr.msra.gmra.mrb[28].mxu1 %v6503_v42 }
 0x66d   :  { %14908 = vmatpush3.bf16.msra.mxu1 %v18584_v13  ;;  %13736 = vmatprep.mubr.msk.f32.mxu1 %vm15875_vm3, %v15876_v37 }
 0x66e   :  { %14909 = vmatprep.subr.bf16.mxu1 %v15874_v8 }
 0x671   :  { %14911 = vmatpush3.bf16.msra.mxu1 %v18591_v60 }
 0x672   :  { %14912 = vmatprep.subr.bf16.mxu1 %v15874_v8 }
 0x674   :  { %13737 = vmatmul.mubr.f32.vlgmr.msra.gmra.mrb[28].mxu1 %v6504_v28 }
 0x675   :  { %14914 = vmatpush3.bf16.msra.mxu1 %v18576_v56  ;;  %13747 = vmatprep.mubr.msk.f32.mxu1 %vm15875_vm3, %v15876_v37 }
 0x676   :  { %14915 = vmatprep.subr.bf16.mxu1 %v15874_v8 }
 0x679   :  { %14917 = vmatpush3.bf16.msra.mxu1 %v18578_v44 }
 0x67a   :  { %14918 = vmatprep.subr.bf16.mxu1 %v15874_v8 }
 0x67c   :  { %13748 = vmatmul.mubr.f32.vlgmr.msra.gmra.mrb[28].mxu1 %v6505_v45 }
 0x67d   :  { %14920 = vmatpush3.bf16.msra.mxu1 %v18593_v50  ;;  %13758 = vmatprep.mubr.msk.f32.mxu1 %vm15875_vm3, %v15876_v37 }
 0x67e   :  { %14921 = vmatprep.subr.bf16.mxu1 %v15874_v8 }
 0x681   :  { %14923 = vmatpush3.bf16.msra.mxu1 %v18595_v38 }
 0x682   :  { %14924 = vmatprep.subr.bf16.mxu1 %v15874_v8 }
 0x684   :  { %13759 = vmatmul.mubr.f32.vlgmr.msra.gmra.mrb[28].mxu1 %v6503_v42 }
 0x685   :  { %14926 = vmatpush3.bf16.msra.mxu1 %v18576_v56  ;;  %13769 = vmatprep.mubr.msk.f32.mxu1 %vm15875_vm3, %v15876_v37  ;;  %v11715_v56 = vld [vmem:[%s19202_s9] ss:$0 sm:$0xff] }
 0x686   :  { %14927 = vmatprep.subr.bf16.mxu1 %v15874_v8 }
 0x689   :  { %14929 = vmatpush3.bf16.msra.mxu1 %v18578_v44 }
 0x68a   :  { %14930 = vmatprep.subr.bf16.mxu1 %v15874_v8 }
 0x68c   :  { %13770 = vmatmul.mubr.f32.vlgmr.msra.gmra.mrb[28].mxu1 %v6503_v42 }
 0x68d   :  { %14932 = vmatpush3.bf16.msra.mxu1 %v18614_v0  ;;  %13780 = vmatprep.mubr.msk.f32.mxu1 %vm15875_vm3, %v15876_v37 }
 0x68e   :  { %14933 = vmatprep.subr.bf16.mxu1 %v15874_v8 }
 0x691   :  { %14935 = vmatpush3.bf16.msra.mxu1 %v18618_v35 }
 0x692   :  { %14936 = vmatprep.subr.bf16.mxu1 %v15874_v8 }
 0x694   :  { %13781 = vmatmul.mubr.f32.vlgmr.msra.gmra.mrb[30].mxu1 %v15876_v37 }
 0x695   :  { %14938 = vmatpush3.bf16.msra.mxu1 %v18625_v2  ;;  %13791 = vmatprep.mubr.msk.f32.mxu1 %vm15875_vm3, %v15876_v37 }
 0x696   :  { %14939 = vmatprep.subr.bf16.mxu1 %v15874_v8 }
 0x699   :  { %14941 = vmatpush3.bf16.msra.mxu1 %v18631_v25 }
 0x69a   :  { %14942 = vmatprep.subr.bf16.mxu1 %v15874_v8 }
 0x69c   :  { %13792 = vmatmul.mubr.f32.vlgmr.msra.gmra.mrb[30].mxu1 %v15876_v37 }
 0x69d   :  { %14944 = vmatpush3.bf16.msra.mxu1 %v18627_v24  ;;  %13802 = vmatprep.mubr.msk.f32.mxu1 %vm15875_vm3, %v15876_v37 }
 0x69e   :  { %14945 = vmatprep.subr.bf16.mxu1 %v15874_v8 }
 0x6a1   :  { %14947 = vmatpush3.bf16.msra.mxu1 %v18629_v55 }
 0x6a2   :  { %14948 = vmatprep.subr.bf16.mxu1 %v15874_v8 }
 0x6a4   :  { %13803 = vmatmul.mubr.f32.vlgmr.msra.gmra.mrb[30].mxu1 %v15876_v37 }
 0x6a5   :  { %14950 = vmatpush3.bf16.msra.mxu1 %v18614_v0  ;;  %13813 = vmatprep.mubr.msk.f32.mxu1 %vm15875_vm3, %v15876_v37 }
 0x6a6   :  { %14951 = vmatprep.subr.bf16.mxu1 %v15874_v8 }
 0x6a9   :  { %14953 = vmatpush3.bf16.msra.mxu1 %v18618_v35 }
 0x6aa   :  { %14954 = vmatprep.subr.bf16.mxu1 %v15874_v8 }
 0x6ac   :  { %13814 = vmatmul.mubr.f32.vlgmr.msra.gmra.mrb[30].mxu1 %v15876_v37 }
 0x6ad   :  { %14956 = vmatpush3.bf16.msra.mxu1 %v18635_v51  ;;  %13824 = vmatprep.mubr.msk.f32.mxu1 %vm15875_vm3, %v15876_v37 }
 0x6ae   :  { %14957 = vmatprep.subr.bf16.mxu1 %v15874_v8 }
 0x6b1   :  { %14959 = vmatpush3.bf16.msra.mxu1 %v18637_v12 }
 0x6b2   :  { %14960 = vmatprep.subr.bf16.mxu1 %v15874_v8 }
 0x6b4   :  { %13825 = vmatmul.mubr.f32.vlgmr.msra.gmra.mrb[30].mxu1 %v15876_v37 }
 0x6b5   :  { %14962 = vmatpush3.bf16.msra.mxu1 %v18614_v0  ;;  %13835 = vmatprep.mubr.msk.f32.mxu1 %vm15875_vm3, %v15876_v37 }
 0x6b6   :  { %14963 = vmatprep.subr.bf16.mxu1 %v15874_v8 }
 0x6b9   :  { %14965 = vmatpush3.bf16.msra.mxu1 %v18618_v35 }
 0x6ba   :  { %14966 = vmatprep.subr.bf16.mxu1 %v15874_v8 }
 0x6bc   :  { %13836 = vmatmul.mubr.f32.vlgmr.msra.gmra.mrb[30].mxu1 %v15876_v37 }
 0x6bd   :  { %14968 = vmatpush3.bf16.msra.mxu1 %v18614_v0  ;;  %13846 = vmatprep.mubr.msk.f32.mxu1 %vm15875_vm3, %v15876_v37 }
 0x6be   :  { %14969 = vmatprep.subr.bf16.mxu1 %v15874_v8 }
 0x6c1   :  { %14971 = vmatpush3.bf16.msra.mxu1 %v18618_v35 }
 0x6c2   :  { %14972 = vmatprep.subr.bf16.mxu1 %v15874_v8 }
 0x72f   :  { %v13705_v44 = vpop.f32.mrb[26].mxu1 }
 0x730   :  { %v15332_v13 = vadd.f32 %v13705_v44, %v11715_v56  ;;  %v6421_v17 = vpop.f32.mrb[27].mxu1 }
 0x731   :  { %v15333_v3 = vadd.f32 %v11715_v56, %v6421_v17 }
 0x75f   :  { %v6915_v60 = vpop.f32.mrb[28].mxu1 }
 0x760   :  { %v13771_v50 = vpop.f32.mrb[29].mxu1  ;;  %v6924_v38 = vadd.f32 %v15333_v3, %v6915_v60  ;;  %v7446_v57 = vrot.slane %v6915_v60, 6  ;;  %v7969_v10 = vrot.slane %v6915_v60, 4  ;;  %v8493_v20 = vrot.slane %v6915_v60, 2 }
 0x761   :  { %v18748_v18 = vadd.f32 %v15332_v13, %v6915_v60 }
 0x762   :  { %v18750_v15 = vadd.f32 %v15333_v3, %v7446_v57  ;;  %v18752_v9 = vadd.f32 %v15333_v3, %v7969_v10  ;;  %v18754_v5 = vadd.f32 %v15333_v3, %v8493_v20  ;;  %v18756_v59 = vadd.f32 %v15332_v13, %v7446_v57 }
 0x763   :  { %v18758_v33 = vadd.f32 %v15332_v13, %v7969_v10  ;;  %v18760_v58 = vadd.f32 %v15332_v13, %v8493_v20 }
 0x78f   :  { %v7415_v34 = vpop.f32.mrb[30].mxu1 }
 0x790   :  { %v15334_v48 = vadd.f32 %v18765_v52, %v7415_v34  ;;  %v13837_v6 = vpop.f32.mrb[31].mxu1 }
 0x792   :  { %7427 = vrot.lane.b32.xlu0 %v15334_v48, %s15877_s14  ;;  %v7419_v14 = vadd.f32 %v15334_v48, %v6924_v38 }
 0x794   :  { %v11717_v43 = vmul.f32 -1.442695, %v7419_v14 }
 0x796   :  { %15798 = vpow2.f32 %v11717_v43 }
 0x7a0   :  { %v15799_v54 = vpop.eup %15798 }
 0x7a1   :  { %v7423_v62 = vadd.f32 1.0, %v15799_v54 }
 0x7a3   :  { %15800 = vrcp.f32 %v7423_v62 }
 0x7ad   :  { %v15801_v47 = vpop.eup %15800 }
 0x7ae   :  { %v7437_v19 = vsub.f32 1.0, %v15801_v47  ;;  %v7443_v4 = vmul.f32 0.0, %v15801_v47 }
 0x804   :  { %v7428_v30 = vpop.permute.xlu0 %7427 }
 0x805   :  { %v7430_v40 = vmul.f32 %v15801_v47, %v7428_v30 }
 0x807   :  { %7432 = vrot.lane.b32.xlu0 %v7430_v40, %s15877_s14 }
 0x879   :  { %v7433_v46 = vpop.permute.xlu0 %7432 }
 0x87a   :  { %v7435_v16 = vadd.f32 %v7433_v46, %v6924_v38 }
 0x87c   :  { %15802 = vtanh.f32 %v7435_v16 }
 0x886   :  { %v15803_v27 = vpop.eup %15802 }
 0x887   :  { %7439 = vrot.lane.b32.xlu1 %v15803_v27, %s15878_s10 }
 0x8f9   :  { %v7440_v53 = vpop.permute.xlu1 %7439 }
 0x8fa   :  { %v7442_v36 = vmul.f32 %v7440_v53, %v7437_v19 }
 0x8fc   :  { %v18771_v1 = vadd.f32 %v7443_v4, %v7442_v36 }
 0x8fe   :  { %7450 = vrot.lane.b32.xlu1 %v18771_v1, %s15878_s10  ;;  %v7965_v60 = vrot.slane %v18771_v1, 6 }
 0x970   :  { %v7451_v41 = vpop.permute.xlu1 %7450 }
 0x971   :  { %v7452_v11 = vsel %vm5349_vm2, %v7451_v41, 0 }
 0x972   :  { %v7523_v32 = vand.u32 4294901760, %v7452_v11 }
 0x974   :  { %v7524_v23 = vsub.f32 %v7452_v11, %v7523_v32 }
 0x976   :  { %v7525_v39 = vand.u32 4294901760, %v7524_v23 }
 0x978   :  { %v7526_v63 = vsub.f32 %v7524_v23, %v7525_v39 }
 0x97a   :  { %v7527_v22 = vand.u32 4294901760, %v7526_v63 }
 0x97c   :  { %13847 = vmatmul.mubr.f32.vlgmr.msra.gmra.mrb[32].mxu1 %v7527_v22 }
 0x97d   :  { %14974 = vmatpush3.bf16.msra.mxu1 %v18625_v2  ;;  %13857 = vmatprep.mubr.msk.f32.mxu1 %vm15875_vm3, %v15876_v37 }
 0x97e   :  { %14975 = vmatprep.subr.bf16.mxu1 %v15874_v8 }
 0x981   :  { %14977 = vmatpush3.bf16.msra.mxu1 %v18631_v25 }
 0x982   :  { %14978 = vmatprep.subr.bf16.mxu1 %v15874_v8 }
 0x984   :  { %13858 = vmatmul.mubr.f32.vlgmr.msra.gmra.mrb[32].mxu1 %v7523_v32 }
 0x985   :  { %14980 = vmatpush3.bf16.msra.mxu1 %v18627_v24  ;;  %13868 = vmatprep.mubr.msk.f32.mxu1 %vm15875_vm3, %v15876_v37 }
 0x986   :  { %14981 = vmatprep.subr.bf16.mxu1 %v15874_v8 }
 0x989   :  { %14983 = vmatpush3.bf16.msra.mxu1 %v18629_v55 }
 0x98a   :  { %14984 = vmatprep.subr.bf16.mxu1 %v15874_v8 }
 0x98c   :  { %13869 = vmatmul.mubr.f32.vlgmr.msra.gmra.mrb[32].mxu1 %v7524_v23 }
 0x98d   :  { %14986 = vmatpush3.bf16.msra.mxu1 %v18614_v0  ;;  %13879 = vmatprep.mubr.msk.f32.mxu1 %vm15875_vm3, %v15876_v37 }
 0x98e   :  { %14987 = vmatprep.subr.bf16.mxu1 %v15874_v8 }
 0x991   :  { %14989 = vmatpush3.bf16.msra.mxu1 %v18618_v35 }
 0x992   :  { %14990 = vmatprep.subr.bf16.mxu1 %v15874_v8 }
 0x994   :  { %13880 = vmatmul.mubr.f32.vlgmr.msra.gmra.mrb[32].mxu1 %v7525_v39 }
 0x995   :  { %14992 = vmatpush3.bf16.msra.mxu1 %v18635_v51  ;;  %13890 = vmatprep.mubr.msk.f32.mxu1 %vm15875_vm3, %v15876_v37 }
 0x996   :  { %14993 = vmatprep.subr.bf16.mxu1 %v15874_v8 }
 0x999   :  { %14995 = vmatpush3.bf16.msra.mxu1 %v18637_v12 }
 0x99a   :  { %14996 = vmatprep.subr.bf16.mxu1 %v15874_v8 }
 0x99c   :  { %13891 = vmatmul.mubr.f32.vlgmr.msra.gmra.mrb[32].mxu1 %v7523_v32 }
 0x99d   :  { %14998 = vmatpush3.bf16.msra.mxu1 %v18614_v0  ;;  %13901 = vmatprep.mubr.msk.f32.mxu1 %vm15875_vm3, %v15876_v37 }
 0x99e   :  { %14999 = vmatprep.subr.bf16.mxu1 %v15874_v8 }
 0x9a1   :  { %15001 = vmatpush3.bf16.msra.mxu1 %v18618_v35 }
 0x9a2   :  { %15002 = vmatprep.subr.bf16.mxu1 %v15874_v8 }
 0x9a4   :  { %13902 = vmatmul.mubr.f32.vlgmr.msra.gmra.mrb[32].mxu1 %v7523_v32 }
 0x9a5   :  { %15004 = vmatpush3.bf16.msra.mxu1 %v18614_v0  ;;  %13912 = vmatprep.mubr.msk.f32.mxu1 %vm15875_vm3, %v15876_v37 }
 0x9a6   :  { %15005 = vmatprep.subr.bf16.mxu1 %v15874_v8 }
 0x9a9   :  { %15007 = vmatpush3.bf16.msra.mxu1 %v18618_v35 }
 0x9aa   :  { %15008 = vmatprep.subr.bf16.mxu1 %v15874_v8 }
 0xa77   :  { %v7935_v26 = vpop.f32.mrb[32].mxu1 }
 0xa78   :  { %v15335_v31 = vadd.f32 %v18765_v52, %v7935_v26  ;;  %v13903_v49 = vpop.f32.mrb[33].mxu1 }
 0xa7a   :  { %v7940_v21 = vrot.slane %v15335_v31, 6 }
 0xa7c   :  { %7949 = vrot.lane.b32.xlu0 %v7940_v21, %s15877_s14  ;;  %v7942_v61 = vadd.f32 %v7940_v21, %v18750_v15  ;;  %v11114_v21 = vrot.slane %v18771_v1, 1 }
 0xa7e   :  { %v11718_v42 = vmul.f32 -1.442695, %v7942_v61 }
 0xa80   :  { %15804 = vpow2.f32 %v11718_v42 }
 0xa8a   :  { %v15805_v28 = vpop.eup %15804 }
 0xa8b   :  { %v7946_v45 = vadd.f32 1.0, %v15805_v28 }
 0xa8d   :  { %15806 = vrcp.f32 %v7946_v45 }
 0xa97   :  { %v15807_v29 = vpop.eup %15806 }
 0xa98   :  { %v7959_v3 = vsub.f32 1.0, %v15807_v29  ;;  %v7967_v38 = vmul.f32 %v15807_v29, %v7965_v60 }
 0xaee   :  { %v7950_v7 = vpop.permute.xlu0 %7949 }
 0xaef   :  { %v7952_v56 = vmul.f32 %v15807_v29, %v7950_v7 }
 0xaf1   :  { %7954 = vrot.lane.b32.xlu1 %v7952_v56, %s15877_s14 }
 0xb63   :  { %v7955_v44 = vpop.permute.xlu1 %7954 }
 0xb64   :  { %v7957_v13 = vadd.f32 %v7955_v44, %v18750_v15 }
 0xb66   :  { %15808 = vtanh.f32 %v7957_v13 }
 0xb70   :  { %v15809_v17 = vpop.eup %15808 }
 0xb71   :  { %7961 = vrot.lane.b32.xlu0 %v15809_v17, %s15878_s10 }
 0xbe3   :  { %v7962_v50 = vpop.permute.xlu0 %7961 }
 0xbe4   :  { %v7964_v57 = vmul.f32 %v7962_v50, %v7959_v3 }
 0xbe6   :  { %v18819_v10 = vadd.f32 %v7967_v38, %v7964_v57 }
 0xbe8   :  { %v7973_v20 = vrot.slane %v18819_v10, 2  ;;  %v8489_v39 = vrot.slane %v18819_v10, 6  ;;  %v11101_v31 = vrot.slane %v18819_v10, 1 }
 0xbea   :  { %7974 = vrot.lane.b32.xlu1 %v7973_v20, %s15878_s10  ;;  %v11126_v28 = vsel %vm11125_vm4, %v18771_v1, %v11101_v31  ;;  %v11138_v45 = vsel %vm11125_vm4, %v11114_v21, %v7973_v20 }
 0xc5c   :  { %v7975_v34 = vpop.permute.xlu1 %7974 }
 0xc5d   :  { %v7976_v15 = vsel %vm5349_vm2, %v7975_v34, 0 }
 0xc5e   :  { %v8047_v48 = vand.u32 4294901760, %v7976_v15 }
 0xc60   :  { %v8048_v6 = vsub.f32 %v7976_v15, %v8047_v48 }
 0xc62   :  { %v8049_v14 = vand.u32 4294901760, %v8048_v6 }
 0xc64   :  { %v8050_v43 = vsub.f32 %v8048_v6, %v8049_v14 }
 0xc66   :  { %v8051_v54 = vand.u32 4294901760, %v8050_v43 }
 0xc68   :  { %13913 = vmatmul.mubr.f32.vlgmr.msra.gmra.mrb[34].mxu1 %v8051_v54 }
 0xc69   :  { %15010 = vmatpush3.bf16.msra.mxu1 %v18625_v2  ;;  %13923 = vmatprep.mubr.msk.f32.mxu1 %vm15875_vm3, %v15876_v37 }
 0xc6a   :  { %15011 = vmatprep.subr.bf16.mxu1 %v15874_v8 }
 0xc6d   :  { %15013 = vmatpush3.bf16.msra.mxu1 %v18631_v25 }
 0xc6e   :  { %15014 = vmatprep.subr.bf16.mxu1 %v15874_v8 }
 0xc70   :  { %13924 = vmatmul.mubr.f32.vlgmr.msra.gmra.mrb[34].mxu1 %v8047_v48 }
 0xc71   :  { %15016 = vmatpush3.bf16.msra.mxu1 %v18627_v24  ;;  %13934 = vmatprep.mubr.msk.f32.mxu1 %vm15875_vm3, %v15876_v37 }
 0xc72   :  { %15017 = vmatprep.subr.bf16.mxu1 %v15874_v8 }
 0xc75   :  { %15019 = vmatpush3.bf16.msra.mxu1 %v18629_v55 }
 0xc76   :  { %15020 = vmatprep.subr.bf16.mxu1 %v15874_v8 }
 0xc78   :  { %13935 = vmatmul.mubr.f32.vlgmr.msra.gmra.mrb[34].mxu1 %v8048_v6 }
 0xc79   :  { %15022 = vmatpush3.bf16.msra.mxu1 %v18614_v0  ;;  %13945 = vmatprep.mubr.msk.f32.mxu1 %vm15875_vm3, %v15876_v37 }
 0xc7a   :  { %15023 = vmatprep.subr.bf16.mxu1 %v15874_v8 }
 0xc7d   :  { %15025 = vmatpush3.bf16.msra.mxu1 %v18618_v35 }
 0xc7e   :  { %15026 = vmatprep.subr.bf16.mxu1 %v15874_v8 }
 0xc80   :  { %13946 = vmatmul.mubr.f32.vlgmr.msra.gmra.mrb[34].mxu1 %v8049_v14 }
 0xc81   :  { %15028 = vmatpush3.bf16.msra.mxu1 %v18635_v51  ;;  %13956 = vmatprep.mubr.msk.f32.mxu1 %vm15875_vm3, %v15876_v37 }
 0xc82   :  { %15029 = vmatprep.subr.bf16.mxu1 %v15874_v8 }
 0xc85   :  { %15031 = vmatpush3.bf16.msra.mxu1 %v18637_v12 }
 0xc86   :  { %15032 = vmatprep.subr.bf16.mxu1 %v15874_v8 }
 0xc88   :  { %13957 = vmatmul.mubr.f32.vlgmr.msra.gmra.mrb[34].mxu1 %v8047_v48 }
 0xc89   :  { %15034 = vmatpush3.bf16.msra.mxu1 %v18614_v0  ;;  %13967 = vmatprep.mubr.msk.f32.mxu1 %vm15875_vm3, %v15876_v37 }
 0xc8a   :  { %15035 = vmatprep.subr.bf16.mxu1 %v15874_v8 }
 0xc8d   :  { %15037 = vmatpush3.bf16.msra.mxu1 %v18618_v35 }
 0xc8e   :  { %15038 = vmatprep.subr.bf16.mxu1 %v15874_v8 }
 0xc90   :  { %13968 = vmatmul.mubr.f32.vlgmr.msra.gmra.mrb[34].mxu1 %v8047_v48 }
 0xc91   :  { %15040 = vmatpush3.bf16.msra.mxu1 %v18614_v0  ;;  %13978 = vmatprep.mubr.msk.f32.mxu1 %vm15875_vm3, %v15876_v37 }
 0xc92   :  { %15041 = vmatprep.subr.bf16.mxu1 %v15874_v8 }
 0xc95   :  { %15043 = vmatpush3.bf16.msra.mxu1 %v18618_v35 }
 0xc96   :  { %15044 = vmatprep.subr.bf16.mxu1 %v15874_v8 }
 0xd63   :  { %v8459_v62 = vpop.f32.mrb[34].mxu1 }
 0xd64   :  { %v15336_v47 = vadd.f32 %v18765_v52, %v8459_v62  ;;  %v13969_v30 = vpop.f32.mrb[35].mxu1 }
 0xd66   :  { %v8464_v40 = vrot.slane %v15336_v47, 4 }
 0xd68   :  { %8473 = vrot.lane.b32.xlu0 %v8464_v40, %s15877_s14  ;;  %v8466_v46 = vadd.f32 %v8464_v40, %v18752_v9 }
 0xd6a   :  { %v11719_v16 = vmul.f32 -1.442695, %v8466_v46 }
 0xd6c   :  { %15810 = vpow2.f32 %v11719_v16 }
 0xd76   :  { %v15811_v27 = vpop.eup %15810 }
 0xd77   :  { %v8470_v19 = vadd.f32 1.0, %v15811_v27 }
 0xd79   :  { %15812 = vrcp.f32 %v8470_v19 }
 0xd83   :  { %v15813_v53 = vpop.eup %15812 }
 0xd84   :  { %v8483_v23 = vsub.f32 1.0, %v15813_v53  ;;  %v8491_v22 = vmul.f32 %v15813_v53, %v8489_v39 }
 0xdda   :  { %v8474_v4 = vpop.permute.xlu0 %8473 }
 0xddb   :  { %v8476_v36 = vmul.f32 %v15813_v53, %v8474_v4 }
 0xddd   :  { %8478 = vrot.lane.b32.xlu1 %v8476_v36, %s15877_s14 }
 0xe4f   :  { %v8479_v41 = vpop.permute.xlu1 %8478 }
 0xe50   :  { %v8481_v11 = vadd.f32 %v8479_v41, %v18752_v9 }
 0xe52   :  { %15814 = vtanh.f32 %v8481_v11 }
 0xe5c   :  { %v15815_v32 = vpop.eup %15814 }
 0xe5d   :  { %8485 = vrot.lane.b32.xlu0 %v15815_v32, %s15878_s10 }
 0xecf   :  { %v8486_v63 = vpop.permute.xlu0 %8485 }
 0xed0   :  { %v8488_v26 = vmul.f32 %v8486_v63, %v8483_v23 }
 0xed2   :  { %v18870_v49 = vadd.f32 %v8491_v22, %v8488_v26 }
 0xed4   :  { %v11103_v9 = vrot.slane %v18870_v49, 2  ;;  %v11117_v61 = vrot.slane %v18870_v49, 3  ;;  %v8497_v42 = vrot.slane %v18870_v49, 4  ;;  %v9013_v40 = vrot.slane %v18870_v49, 6 }
 0xed6   :  { %8498 = vrot.lane.b32.xlu1 %v8497_v42, %s15878_s10  ;;  %v18880_v29 = vsel %vm11127_vm5, %v11138_v45, %v11117_v61  ;;  %v18882_v7 = vsel %vm11127_vm5, %v11126_v28, %v11103_v9 }
 0xf48   :  { %v8499_v56 = vpop.permute.xlu1 %8498 }
 0xf49   :  { %v8500_v44 = vsel %vm5349_vm2, %v8499_v56, 0 }
 0xf4a   :  { %v8571_v13 = vand.u32 4294901760, %v8500_v44 }
 0xf4c   :  { %v8572_v17 = vsub.f32 %v8500_v44, %v8571_v13 }
 0xf4e   :  { %v8573_v3 = vand.u32 4294901760, %v8572_v17 }
 0xf50   :  { %v8574_v60 = vsub.f32 %v8572_v17, %v8573_v3 }
 0xf52   :  { %v8575_v50 = vand.u32 4294901760, %v8574_v60 }
 0xf54   :  { %13979 = vmatmul.mubr.f32.vlgmr.msra.gmra.mrb[36].mxu1 %v8575_v50 }
 0xf55   :  { %15046 = vmatpush3.bf16.msra.mxu1 %v18625_v2  ;;  %13989 = vmatprep.mubr.msk.f32.mxu1 %vm15875_vm3, %v15876_v37 }
 0xf56   :  { %15047 = vmatprep.subr.bf16.mxu1 %v15874_v8 }
 0xf59   :  { %15049 = vmatpush3.bf16.msra.mxu1 %v18631_v25 }
 0xf5a   :  { %15050 = vmatprep.subr.bf16.mxu1 %v15874_v8 }
 0xf5c   :  { %13990 = vmatmul.mubr.f32.vlgmr.msra.gmra.mrb[36].mxu1 %v8571_v13 }
 0xf5d   :  { %15052 = vmatpush3.bf16.msra.mxu1 %v18627_v24  ;;  %14000 = vmatprep.mubr.msk.f32.mxu1 %vm15875_vm3, %v15876_v37 }
 0xf5e   :  { %15053 = vmatprep.subr.bf16.mxu1 %v15874_v8 }
 0xf61   :  { %15055 = vmatpush3.bf16.msra.mxu1 %v18629_v55 }
 0xf62   :  { %15056 = vmatprep.subr.bf16.mxu1 %v15874_v8 }
 0xf64   :  { %14001 = vmatmul.mubr.f32.vlgmr.msra.gmra.mrb[36].mxu1 %v8572_v17 }
 0xf65   :  { %15058 = vmatpush3.bf16.msra.mxu1 %v18614_v0  ;;  %14011 = vmatprep.mubr.msk.f32.mxu1 %vm15875_vm3, %v15876_v37 }
 0xf66   :  { %15059 = vmatprep.subr.bf16.mxu1 %v15874_v8 }
 0xf69   :  { %15061 = vmatpush3.bf16.msra.mxu1 %v18618_v35 }
 0xf6a   :  { %15062 = vmatprep.subr.bf16.mxu1 %v15874_v8 }
 0xf6c   :  { %14012 = vmatmul.mubr.f32.vlgmr.msra.gmra.mrb[36].mxu1 %v8573_v3 }
 0xf6d   :  { %15064 = vmatpush3.bf16.msra.mxu1 %v18635_v51  ;;  %14022 = vmatprep.mubr.msk.f32.mxu1 %vm15875_vm3, %v15876_v37 }
 0xf6e   :  { %15065 = vmatprep.subr.bf16.mxu1 %v15874_v8 }
 0xf71   :  { %15067 = vmatpush3.bf16.msra.mxu1 %v18637_v12 }
 0xf72   :  { %15068 = vmatprep.subr.bf16.mxu1 %v15874_v8 }
 0xf74   :  { %14023 = vmatmul.mubr.f32.vlgmr.msra.gmra.mrb[36].mxu1 %v8571_v13 }
 0xf75   :  { %15070 = vmatpush3.bf16.msra.mxu1 %v18614_v0  ;;  %14033 = vmatprep.mubr.msk.f32.mxu1 %vm15875_vm3, %v15876_v37 }
 0xf76   :  { %15071 = vmatprep.subr.bf16.mxu1 %v15874_v8 }
 0xf79   :  { %15073 = vmatpush3.bf16.msra.mxu1 %v18618_v35 }
 0xf7a   :  { %15074 = vmatprep.subr.bf16.mxu1 %v15874_v8 }
 0xf7c   :  { %14034 = vmatmul.mubr.f32.vlgmr.msra.gmra.mrb[36].mxu1 %v8571_v13 }
 0xf7d   :  { %15076 = vmatpush3.bf16.msra.mxu1 %v18614_v0  ;;  %14044 = vmatprep.mubr.msk.f32.mxu1 %vm15875_vm3, %v15876_v37 }
 0xf7e   :  { %15077 = vmatprep.subr.bf16.mxu1 %v15874_v8 }
 0xf81   :  { %15079 = vmatpush3.bf16.msra.mxu1 %v18618_v35 }
 0xf82   :  { %15080 = vmatprep.subr.bf16.mxu1 %v15874_v8 }
0x104f   :  { %v8983_v1 = vpop.f32.mrb[36].mxu1 }
0x1050   :  { %v15337_v38 = vadd.f32 %v18765_v52, %v8983_v1  ;;  %v14035_v57 = vpop.f32.mrb[37].mxu1 }
0x1052   :  { %v8988_v10 = vrot.slane %v15337_v38, 2 }
0x1054   :  { %8997 = vrot.lane.b32.xlu0 %v8988_v10, %s15877_s14  ;;  %v8990_v20 = vadd.f32 %v8988_v10, %v18754_v5 }
0x1056   :  { %v11720_v34 = vmul.f32 -1.442695, %v8990_v20 }
0x1058   :  { %15816 = vpow2.f32 %v11720_v34 }
0x1062   :  { %v15817_v15 = vpop.eup %15816 }
0x1063   :  { %v8994_v48 = vadd.f32 1.0, %v15817_v15 }
0x1065   :  { %15818 = vrcp.f32 %v8994_v48 }
0x106f   :  { %v15819_v6 = vpop.eup %15818 }
0x1070   :  { %v9007_v30 = vsub.f32 1.0, %v15819_v6  ;;  %v9015_v16 = vmul.f32 %v15819_v6, %v9013_v40 }
0x10c6   :  { %v8998_v14 = vpop.permute.xlu0 %8997 }
0x10c7   :  { %v9000_v43 = vmul.f32 %v15819_v6, %v8998_v14 }
0x10c9   :  { %9002 = vrot.lane.b32.xlu1 %v9000_v43, %s15877_s14 }
0x113b   :  { %v9003_v54 = vpop.permute.xlu1 %9002 }
0x113c   :  { %v9005_v62 = vadd.f32 %v9003_v54, %v18754_v5 }
0x113e   :  { %15820 = vtanh.f32 %v9005_v62 }
0x1148   :  { %v15821_v47 = vpop.eup %15820 }
0x1149   :  { %9009 = vrot.lane.b32.xlu0 %v15821_v47, %s15878_s10 }
0x11bb   :  { %v9010_v46 = vpop.permute.xlu0 %9009 }
0x11bc   :  { %v9012_v27 = vmul.f32 %v9010_v46, %v9007_v30 }
0x11be   :  { %v18928_v19 = vadd.f32 %v9015_v16, %v9012_v27 }
0x11c0   :  { %v11105_v53 = vrot.slane %v18928_v19, 3  ;;  %v11119_v4 = vrot.slane %v18928_v19, 4  ;;  %v9019_v36 = vrot.slane %v18928_v19, 6 }
0x11c2   :  { %9020 = vrot.lane.b32.xlu1 %v9019_v36, %s15878_s10  ;;  %v18937_v5 = vsel %vm11129_vm6, %v18880_v29, %v11119_v4  ;;  %v18940_v41 = vsel %vm11129_vm6, %v18882_v7, %v11105_v53 }
0x1234   :  { %v9021_v11 = vpop.permute.xlu1 %9020 }
0x1235   :  { %v9022_v32 = vsel %vm5349_vm2, %v9021_v11, 0 }
0x1236   :  { %v9093_v23 = vand.u32 4294901760, %v9022_v32 }
0x1238   :  { %v9094_v39 = vsub.f32 %v9022_v32, %v9093_v23 }
0x123a   :  { %v9095_v63 = vand.u32 4294901760, %v9094_v39 }
0x123c   :  { %v9096_v22 = vsub.f32 %v9094_v39, %v9095_v63 }
0x123e   :  { %v9097_v26 = vand.u32 4294901760, %v9096_v22 }
0x1240   :  { %14045 = vmatmul.mubr.f32.vlgmr.msra.gmra.mrb[38].mxu1 %v9097_v26 }
0x1241   :  { %15082 = vmatpush3.bf16.msra.mxu1 %v18625_v2  ;;  %14055 = vmatprep.mubr.msk.f32.mxu1 %vm15875_vm3, %v15876_v37 }
0x1242   :  { %15083 = vmatprep.subr.bf16.mxu1 %v15874_v8 }
0x1245   :  { %15085 = vmatpush3.bf16.msra.mxu1 %v18631_v25 }
0x1246   :  { %15086 = vmatprep.subr.bf16.mxu1 %v15874_v8 }
0x1248   :  { %14056 = vmatmul.mubr.f32.vlgmr.msra.gmra.mrb[38].mxu1 %v9093_v23 }
0x1249   :  { %15088 = vmatpush3.bf16.msra.mxu1 %v18627_v24  ;;  %14066 = vmatprep.mubr.msk.f32.mxu1 %vm15875_vm3, %v15876_v37 }
0x124a   :  { %15089 = vmatprep.subr.bf16.mxu1 %v15874_v8 }
0x124d   :  { %15091 = vmatpush3.bf16.msra.mxu1 %v18629_v55 }
0x124e   :  { %15092 = vmatprep.subr.bf16.mxu1 %v15874_v8 }
0x1250   :  { %14067 = vmatmul.mubr.f32.vlgmr.msra.gmra.mrb[38].mxu1 %v9094_v39 }
0x1251   :  { %15094 = vmatpush3.bf16.msra.mxu1 %v18614_v0  ;;  %14077 = vmatprep.mubr.msk.f32.mxu1 %vm15875_vm3, %v15876_v37 }
0x1252   :  { %15095 = vmatprep.subr.bf16.mxu1 %v15874_v8 }
0x1255   :  { %15097 = vmatpush3.bf16.msra.mxu1 %v18618_v35 }
0x1256   :  { %15098 = vmatprep.subr.bf16.mxu1 %v15874_v8 }
0x1258   :  { %14078 = vmatmul.mubr.f32.vlgmr.msra.gmra.mrb[38].mxu1 %v9095_v63 }
0x1259   :  { %15100 = vmatpush3.bf16.msra.mxu1 %v18635_v51  ;;  %14088 = vmatprep.mubr.msk.f32.mxu1 %vm15875_vm3, %v15876_v37 }
0x125a   :  { %15101 = vmatprep.subr.bf16.mxu1 %v15874_v8 }
0x125d   :  { %15103 = vmatpush3.bf16.msra.mxu1 %v18637_v12 }
0x125e   :  { %15104 = vmatprep.subr.bf16.mxu1 %v15874_v8 }
0x1260   :  { %14089 = vmatmul.mubr.f32.vlgmr.msra.gmra.mrb[38].mxu1 %v9093_v23 }
0x1261   :  { %15106 = vmatpush3.bf16.msra.mxu1 %v18614_v0  ;;  %14099 = vmatprep.mubr.msk.f32.mxu1 %vm15875_vm3, %v15876_v37 }
0x1262   :  { %15107 = vmatprep.subr.bf16.mxu1 %v15874_v8 }
0x1265   :  { %15109 = vmatpush3.bf16.msra.mxu1 %v18618_v35 }
0x1266   :  { %15110 = vmatprep.subr.bf16.mxu1 %v15874_v8 }
0x1268   :  { %14100 = vmatmul.mubr.f32.vlgmr.msra.gmra.mrb[38].mxu1 %v9093_v23 }
0x1269   :  { %15112 = vmatpush3.bf16.msra.mxu1 %v18614_v0  ;;  %14110 = vmatprep.mubr.msk.f32.mxu1 %vm15875_vm3, %v15876_v37 }
0x126a   :  { %15113 = vmatprep.subr.bf16.mxu1 %v15874_v8 }
0x126d   :  { %15115 = vmatpush3.bf16.msra.mxu1 %v18618_v35 }
0x126e   :  { %15116 = vmatprep.subr.bf16.mxu1 %v15874_v8 }
0x133b   :  { %v9505_v31 = vpop.f32.mrb[38].mxu1 }
0x133c   :  { %v15338_v49 = vadd.f32 %v18765_v52, %v9505_v31  ;;  %v14101_v21 = vpop.f32.mrb[39].mxu1 }
0x133e   :  { %9517 = vrot.lane.b32.xlu0 %v15338_v49, %s15877_s14  ;;  %v9509_v9 = vadd.f32 %v15338_v49, %v18748_v18 }
0x1340   :  { %v11721_v61 = vmul.f32 -1.442695, %v9509_v9 }
0x1342   :  { %15822 = vpow2.f32 %v11721_v61 }
0x134c   :  { %v15823_v42 = vpop.eup %15822 }
0x134d   :  { %v9513_v28 = vadd.f32 1.0, %v15823_v42 }
0x134f   :  { %15824 = vrcp.f32 %v9513_v28 }
0x1359   :  { %v15825_v45 = vpop.eup %15824 }
0x135a   :  { %v9527_v17 = vsub.f32 1.0, %v15825_v45  ;;  %v9534_v60 = vmul.f32 %v15825_v45, %v9019_v36 }
0x13b0   :  { %v9518_v29 = vpop.permute.xlu0 %9517 }
0x13b1   :  { %v9520_v7 = vmul.f32 %v15825_v45, %v9518_v29 }
0x13b3   :  { %9522 = vrot.lane.b32.xlu1 %v9520_v7, %s15877_s14 }
0x1425   :  { %v9523_v56 = vpop.permute.xlu1 %9522 }
0x1426   :  { %v9525_v44 = vadd.f32 %v9523_v56, %v18748_v18 }
0x1428   :  { %15826 = vtanh.f32 %v9525_v44 }
0x1432   :  { %v15827_v13 = vpop.eup %15826 }
0x1433   :  { %9529 = vrot.lane.b32.xlu0 %v15827_v13, %s15878_s10 }
0x14a5   :  { %v9530_v3 = vpop.permute.xlu0 %9529 }
0x14a6   :  { %v9532_v50 = vmul.f32 %v9530_v3, %v9527_v17 }
0x14a8   :  { %v18987_v1 = vadd.f32 %v9534_v60, %v9532_v50 }
0x14aa   :  { %v11107_v38 = vrot.slane %v18987_v1, 4  ;;  %v11121_v57 = vrot.slane %v18987_v1, 5  ;;  %9538 = vrot.lane.b32.xlu1 %v18987_v1, %s15878_s10  ;;  %v10053_v32 = vrot.slane %v18987_v1, 6 }
0x14ac   :  { %v18995_v18 = vsel %vm314_vm0, %v18937_v5, %v11121_v57  ;;  %v18999_v10 = vsel %vm314_vm0, %v18940_v41, %v11107_v38 }
0x151c   :  { %v9539_v20 = vpop.permute.xlu1 %9538 }
0x151d   :  { %v9540_v34 = vsel %vm5349_vm2, %v9539_v20, 0 }
0x151e   :  { %v9611_v15 = vand.u32 4294901760, %v9540_v34 }
0x1520   :  { %v9612_v48 = vsub.f32 %v9540_v34, %v9611_v15 }
0x1522   :  { %v9613_v6 = vand.u32 4294901760, %v9612_v48 }
0x1524   :  { %v9614_v14 = vsub.f32 %v9612_v48, %v9613_v6 }
0x1526   :  { %v9615_v43 = vand.u32 4294901760, %v9614_v14 }
0x1528   :  { %14111 = vmatmul.mubr.f32.vlgmr.msra.gmra.mrb[40].mxu1 %v9615_v43 }
0x1529   :  { %15118 = vmatpush3.bf16.msra.mxu1 %v18625_v2  ;;  %14121 = vmatprep.mubr.msk.f32.mxu1 %vm15875_vm3, %v15876_v37 }
0x152a   :  { %15119 = vmatprep.subr.bf16.mxu1 %v15874_v8 }
0x152d   :  { %15121 = vmatpush3.bf16.msra.mxu1 %v18631_v25 }
0x152e   :  { %15122 = vmatprep.subr.bf16.mxu1 %v15874_v8 }
0x1530   :  { %14122 = vmatmul.mubr.f32.vlgmr.msra.gmra.mrb[40].mxu1 %v9611_v15 }
0x1531   :  { %15124 = vmatpush3.bf16.msra.mxu1 %v18627_v24  ;;  %14132 = vmatprep.mubr.msk.f32.mxu1 %vm15875_vm3, %v15876_v37 }
0x1532   :  { %15125 = vmatprep.subr.bf16.mxu1 %v15874_v8 }
0x1535   :  { %15127 = vmatpush3.bf16.msra.mxu1 %v18629_v55 }
0x1536   :  { %15128 = vmatprep.subr.bf16.mxu1 %v15874_v8 }
0x1538   :  { %14133 = vmatmul.mubr.f32.vlgmr.msra.gmra.mrb[40].mxu1 %v9612_v48 }
0x1539   :  { %15130 = vmatpush3.bf16.msra.mxu1 %v18614_v0  ;;  %14143 = vmatprep.mubr.msk.f32.mxu1 %vm15875_vm3, %v15876_v37 }
0x153a   :  { %15131 = vmatprep.subr.bf16.mxu1 %v15874_v8 }
0x153d   :  { %15133 = vmatpush3.bf16.msra.mxu1 %v18618_v35 }
0x153e   :  { %15134 = vmatprep.subr.bf16.mxu1 %v15874_v8 }
0x1540   :  { %14144 = vmatmul.mubr.f32.vlgmr.msra.gmra.mrb[40].mxu1 %v9613_v6 }
0x1541   :  { %15136 = vmatpush3.bf16.msra.mxu1 %v18635_v51  ;;  %14154 = vmatprep.mubr.msk.f32.mxu1 %vm15875_vm3, %v15876_v37 }
0x1542   :  { %15137 = vmatprep.subr.bf16.mxu1 %v15874_v8 }
0x1545   :  { %15139 = vmatpush3.bf16.msra.mxu1 %v18637_v12 }
0x1546   :  { %15140 = vmatprep.subr.bf16.mxu1 %v15874_v8 }
0x1548   :  { %14155 = vmatmul.mubr.f32.vlgmr.msra.gmra.mrb[40].mxu1 %v9611_v15 }
0x1549   :  { %15142 = vmatpush3.bf16.msra.mxu1 %v18614_v0  ;;  %14165 = vmatprep.mubr.msk.f32.mxu1 %vm15875_vm3, %v15876_v37 }
0x154a   :  { %15143 = vmatprep.subr.bf16.mxu1 %v15874_v8 }
0x154d   :  { %15145 = vmatpush3.bf16.msra.mxu1 %v18618_v35 }
0x154e   :  { %15182 = vmatprep.subr.bf16.mxu1 %v15874_v8 }
0x1550   :  { %14166 = vmatmul.mubr.f32.vlgmr.msra.gmra.mrb[40].mxu1 %v9611_v15 }
0x1551   :  { %15184 = vmatpush3.bf16.msra.mxu1 %v18614_v0  ;;  %14242 = vmatprep.mubr.msk.f32.mxu1 %vm15875_vm3, %v15876_v37 }
0x1552   :  { %15185 = vmatprep.subr.bf16.mxu1 %v15874_v8 }
0x1555   :  { %15187 = vmatpush3.bf16.msra.mxu1 %v18618_v35 }
0x1556   :  { %15188 = vmatprep.subr.bf16.mxu1 %v15874_v8 }
0x1623   :  { %v10023_v54 = vpop.f32.mrb[40].mxu1 }
0x1624   :  { %v15339_v62 = vadd.f32 %v18765_v52, %v10023_v54  ;;  %v14167_v47 = vpop.f32.mrb[41].mxu1 }
0x1626   :  { %v10028_v30 = vrot.slane %v15339_v62, 6 }
0x1628   :  { %10037 = vrot.lane.b32.xlu0 %v10028_v30, %s15877_s14  ;;  %v10030_v40 = vadd.f32 %v10028_v30, %v18756_v59 }
0x162a   :  { %v11722_v46 = vmul.f32 -1.442695, %v10030_v40 }
0x162c   :  { %15828 = vpow2.f32 %v11722_v46 }
0x1636   :  { %v15829_v16 = vpop.eup %15828 }
0x1637   :  { %v10034_v27 = vadd.f32 1.0, %v15829_v16 }
0x1639   :  { %15830 = vrcp.f32 %v10034_v27 }
0x1643   :  { %v15831_v19 = vpop.eup %15830 }
0x1644   :  { %v10047_v11 = vsub.f32 1.0, %v15831_v19  ;;  %v10055_v39 = vmul.f32 %v15831_v19, %v10053_v32 }
0x169a   :  { %v10038_v53 = vpop.permute.xlu0 %10037 }
0x169b   :  { %v10040_v4 = vmul.f32 %v15831_v19, %v10038_v53 }
0x169d   :  { %10042 = vrot.lane.b32.xlu1 %v10040_v4, %s15877_s14 }
0x170f   :  { %v10043_v36 = vpop.permute.xlu1 %10042 }
0x1710   :  { %v10045_v5 = vadd.f32 %v10043_v36, %v18756_v59 }
0x1712   :  { %15832 = vtanh.f32 %v10045_v5 }
0x171c   :  { %v15833_v41 = vpop.eup %15832 }
0x171d   :  { %10049 = vrot.lane.b32.xlu0 %v15833_v41, %s15878_s10 }
0x178f   :  { %v10050_v23 = vpop.permute.xlu0 %10049 }
0x1790   :  { %v10052_v63 = vmul.f32 %v10050_v23, %v10047_v11 }
0x1792   :  { %v19045_v22 = vadd.f32 %v10055_v39, %v10052_v63  ;;  %v11145_v63 = vld [vmem:[%s19204_s11] sm:$0xff] }
0x1794   :  { %v11109_v26 = vrot.slane %v19045_v22, 5  ;;  %v10059_v31 = vrot.slane %v19045_v22, 2  ;;  %v10575_v15 = vrot.slane %v19045_v22, 6  ;;  %v11146_v22 = vld [vmem:[%s19204_s11 + $0x8] sm:$0xff] }
0x1796   :  { %10060 = vrot.lane.b32.xlu1 %v10059_v31, %s15878_s10  ;;  %v19052_v59 = vsel %vm11132_vm7, %v18999_v10, %v11109_v26  ;;  %v11167_v31 = vand.u32 4294901760, %v11145_v63 }
0x1808   :  { %v10061_v49 = vpop.permute.xlu1 %10060 }
0x1809   :  { %v10062_v21 = vsel %vm5349_vm2, %v10061_v49, 0  ;;  %v11148_v49 = vld [vmem:[%s19204_s11 + $0x18] sm:$0xff] }
0x180a   :  { %v10133_v9 = vand.u32 4294901760, %v10062_v21 }
0x180c   :  { %v10134_v61 = vsub.f32 %v10062_v21, %v10133_v9 }
0x180e   :  { %v10135_v42 = vand.u32 4294901760, %v10134_v61 }
0x1810   :  { %v10136_v28 = vsub.f32 %v10134_v61, %v10135_v42 }
0x1812   :  { %v10137_v45 = vand.u32 4294901760, %v10136_v28 }
0x1814   :  { %14177 = vmatmul.mubr.f32.vlgmr.msra.gmra.mrb[64].mxu0 %v10137_v45 }
0x1815   :  { %15154 = vmatpush3.bf16.msra.mxu0 %v18625_v2  ;;  %14187 = vmatprep.mubr.msk.f32.mxu0 %vm15875_vm3, %v15876_v37 }
0x1816   :  { %15155 = vmatprep.subr.bf16.mxu0 %v15874_v8 }
0x1819   :  { %15157 = vmatpush3.bf16.msra.mxu0 %v18631_v25 }
0x181a   :  { %15158 = vmatprep.subr.bf16.mxu0 %v15874_v8 }
0x181c   :  { %14188 = vmatmul.mubr.f32.vlgmr.msra.gmra.mrb[64].mxu0 %v10133_v9 }
0x181d   :  { %15160 = vmatpush3.bf16.msra.mxu0 %v18627_v24  ;;  %14198 = vmatprep.mubr.msk.f32.mxu0 %vm15875_vm3, %v15876_v37 }
0x181e   :  { %15161 = vmatprep.subr.bf16.mxu0 %v15874_v8 }
0x1821   :  { %15163 = vmatpush3.bf16.msra.mxu0 %v18629_v55 }
0x1822   :  { %15164 = vmatprep.subr.bf16.mxu0 %v15874_v8 }
0x1824   :  { %14199 = vmatmul.mubr.f32.vlgmr.msra.gmra.mrb[64].mxu0 %v10134_v61 }
0x1825   :  { %15166 = vmatpush3.bf16.msra.mxu0 %v18614_v0  ;;  %14209 = vmatprep.mubr.msk.f32.mxu0 %vm15875_vm3, %v15876_v37 }
0x1826   :  { %15167 = vmatprep.subr.bf16.mxu0 %v15874_v8 }
0x1829   :  { %15169 = vmatpush3.bf16.msra.mxu0 %v18618_v35 }
0x182a   :  { %15170 = vmatprep.subr.bf16.mxu0 %v15874_v8 }
0x182c   :  { %14210 = vmatmul.mubr.f32.vlgmr.msra.gmra.mrb[64].mxu0 %v10135_v42 }
0x182d   :  { %15172 = vmatpush3.bf16.msra.mxu0 %v18635_v51  ;;  %14220 = vmatprep.mubr.msk.f32.mxu0 %vm15875_vm3, %v15876_v37 }
0x182e   :  { %15173 = vmatprep.subr.bf16.mxu0 %v15874_v8 }
0x1831   :  { %15175 = vmatpush3.bf16.msra.mxu0 %v18637_v12 }
0x1832   :  { %15176 = vmatprep.subr.bf16.mxu0 %v15874_v8 }
0x1834   :  { %14221 = vmatmul.mubr.f32.vlgmr.msra.gmra.mrb[64].mxu0 %v10133_v9 }
0x1835   :  { %15178 = vmatpush3.bf16.msra.mxu0 %v18614_v0  ;;  %14231 = vmatprep.mubr.msk.f32.mxu0 %vm15875_vm3, %v15876_v37 }
0x1836   :  { %15179 = vmatprep.subr.bf16.mxu0 %v15874_v8 }
0x1839   :  { %15181 = vmatpush3.bf16.msra.mxu0 %v18618_v35 }
0x183c   :  { %14232 = vmatmul.mubr.f32.vlgmr.msra.gmra.mrb[64].mxu0 %v10133_v9  ;;  %v11176_v9 = vand.u32 4294901760, %v11148_v49 }
0x190f   :  { %v10545_v29 = vpop.f32.mrb[64].mxu0 }
0x1910   :  { %v15340_v7 = vadd.f32 %v18765_v52, %v10545_v29  ;;  %v14233_v56 = vpop.f32.mrb[65].mxu0 }
0x1912   :  { %v10550_v44 = vrot.slane %v15340_v7, 4  ;;  %v11257_v7 = vsub.f32 %v11145_v63, %v11167_v31 }
0x1914   :  { %10559 = vrot.lane.b32.xlu0 %v10550_v44, %s15877_s14  ;;  %v10552_v13 = vadd.f32 %v10550_v44, %v18758_v33 }
0x1916   :  { %v11723_v17 = vmul.f32 -1.442695, %v10552_v13  ;;  %v11278_v13 = vsub.f32 %v11148_v49, %v11176_v9 }
0x1918   :  { %15834 = vpow2.f32 %v11723_v17  ;;  %v11258_v17 = vand.u32 4294901760, %v11257_v7 }
0x1922   :  { %v15835_v3 = vpop.eup %15834 }
0x1923   :  { %v10556_v60 = vadd.f32 1.0, %v15835_v3 }
0x1925   :  { %15836 = vrcp.f32 %v10556_v60 }
0x192f   :  { %v15837_v50 = vpop.eup %15836 }
0x1930   :  { %v10569_v34 = vsub.f32 1.0, %v15837_v50  ;;  %v10577_v6 = vmul.f32 %v15837_v50, %v10575_v15 }
0x1986   :  { %v10560_v1 = vpop.permute.xlu0 %10559 }
0x1987   :  { %v10562_v38 = vmul.f32 %v15837_v50, %v10560_v1  ;;  %v11279_v50 = vand.u32 4294901760, %v11278_v13  ;;  %v11259_v1 = vsub.f32 %v11257_v7, %v11258_v17 }
0x1989   :  { %10564 = vrot.lane.b32.xlu1 %v10562_v38, %s15877_s14 }
0x19fb   :  { %v10565_v57 = vpop.permute.xlu1 %10564 }
0x19fc   :  { %v10567_v10 = vadd.f32 %v10565_v57, %v18758_v33  ;;  %v11142_v33 = vsel %vm11132_vm7, %v18995_v18, %v10575_v15 }
0x19fe   :  { %15838 = vtanh.f32 %v10567_v10  ;;  %v11280_v10 = vsub.f32 %v11278_v13, %v11279_v50 }
0x1a08   :  { %v15839_v20 = vpop.eup %15838 }
0x1a09   :  { %10571 = vrot.lane.b32.xlu0 %v15839_v20, %s15878_s10  ;;  %v11260_v20 = vand.u32 4294901760, %v11259_v1 }
0x1a7b   :  { %v10572_v48 = vpop.permute.xlu0 %10571 }
0x1a7c   :  { %v10574_v14 = vmul.f32 %v10572_v48, %v10569_v34  ;;  %v11281_v48 = vand.u32 4294901760, %v11280_v10 }
0x1a7e   :  { %v19091_v43 = vadd.f32 %v10577_v6, %v10574_v14 }
0x1a80   :  { %v11123_v54 = vrot.slane %v19091_v43, 7  ;;  %v10581_v62 = vrot.slane %v19091_v43, 4  ;;  %v11097_v47 = vrot.slane %v19091_v43, 6 }
0x1a82   :  { %10582 = vrot.lane.b32.xlu1 %v10581_v62, %s15878_s10  ;;  %v19099_v30 = vsel %vm11134_vm8, %v11142_v33, %v11123_v54  ;;  %v19104_v40 = vsel %vm11134_vm8, %v19052_v59, %v11097_v47  ;;  %v11170_v59 = vand.u32 4294901760, %v11146_v22 }
0x1a84   :  { %v19157_v28 = vpack.c.bf16 %v11170_v59, %v11167_v31  ;;  %v11264_v56 = vsub.f32 %v11146_v22, %v11170_v59 }
0x1a86   :  { %15219 = vmatprep.subr.bf16.mxu0 %v19157_v28  ;;  %v11265_v3 = vand.u32 4294901760, %v11264_v56  ;;  %v15234_v14 = vpack.c.bf16 %v11264_v56, %v11257_v7 }
0x1a87   :  { %15221 = vmatpush3.bf16.msra.mxu0 %v19157_v28 }
0x1a88   :  { %v11266_v38 = vsub.f32 %v11264_v56, %v11265_v3  ;;  %v15250_v62 = vpack.c.bf16 %v11265_v3, %v11258_v17 }
0x1a8a   :  { %v11267_v34 = vand.u32 4294901760, %v11266_v38 }
0x1a8c   :  { %v15226_v6 = vpack.c.bf16 %v11267_v34, %v11260_v20 }
0x1af4   :  { %v10583_v46 = vpop.permute.xlu1 %10582 }
0x1af5   :  { %v10584_v16 = vsel %vm5349_vm2, %v10583_v46, 0 }
0x1af6   :  { %v10655_v27 = vand.u32 4294901760, %v10584_v16 }
0x1af8   :  { %v10656_v19 = vsub.f32 %v10584_v16, %v10655_v27 }
0x1afa   :  { %v10657_v53 = vand.u32 4294901760, %v10656_v19 }
0x1afc   :  { %v10658_v4 = vsub.f32 %v10656_v19, %v10657_v53 }
0x1afe   :  { %v10659_v36 = vand.u32 4294901760, %v10658_v4 }
0x1b00   :  { %14243 = vmatmul.mubr.f32.vlgmr.msra.gmra.mrb[42].mxu1 %v10659_v36 }
0x1b01   :  { %15190 = vmatpush3.bf16.msra.mxu1 %v18625_v2  ;;  %14253 = vmatprep.mubr.msk.f32.mxu1 %vm15875_vm3, %v15876_v37 }
0x1b02   :  { %15191 = vmatprep.subr.bf16.mxu1 %v15874_v8 }
0x1b05   :  { %15193 = vmatpush3.bf16.msra.mxu1 %v18631_v25 }
0x1b06   :  { %15194 = vmatprep.subr.bf16.mxu1 %v15874_v8 }
0x1b08   :  { %14254 = vmatmul.mubr.f32.vlgmr.msra.gmra.mrb[42].mxu1 %v10655_v27 }
0x1b09   :  { %15196 = vmatpush3.bf16.msra.mxu1 %v18627_v24  ;;  %14264 = vmatprep.mubr.msk.f32.mxu1 %vm15875_vm3, %v15876_v37 }
0x1b0a   :  { %15197 = vmatprep.subr.bf16.mxu1 %v15874_v8 }
0x1b0d   :  { %15199 = vmatpush3.bf16.msra.mxu1 %v18629_v55 }
0x1b0e   :  { %15200 = vmatprep.subr.bf16.mxu1 %v15874_v8 }
0x1b10   :  { %14265 = vmatmul.mubr.f32.vlgmr.msra.gmra.mrb[42].mxu1 %v10656_v19 }
0x1b11   :  { %15202 = vmatpush3.bf16.msra.mxu1 %v18614_v0  ;;  %14275 = vmatprep.mubr.msk.f32.mxu1 %vm15875_vm3, %v15876_v37 }
0x1b12   :  { %15203 = vmatprep.subr.bf16.mxu1 %v15874_v8 }
0x1b15   :  { %15205 = vmatpush3.bf16.msra.mxu1 %v18618_v35 }
0x1b16   :  { %15206 = vmatprep.subr.bf16.mxu1 %v15874_v8 }
0x1b18   :  { %14276 = vmatmul.mubr.f32.vlgmr.msra.gmra.mrb[42].mxu1 %v10657_v53 }
0x1b19   :  { %15208 = vmatpush3.bf16.msra.mxu1 %v18635_v51  ;;  %14286 = vmatprep.mubr.msk.f32.mxu1 %vm15875_vm3, %v15876_v37 }
0x1b1a   :  { %15209 = vmatprep.subr.bf16.mxu1 %v15874_v8 }
0x1b1d   :  { %15211 = vmatpush3.bf16.msra.mxu1 %v18637_v12 }
0x1b1e   :  { %15212 = vmatprep.subr.bf16.mxu1 %v15874_v8 }
0x1b20   :  { %14287 = vmatmul.mubr.f32.vlgmr.msra.gmra.mrb[42].mxu1 %v10655_v27 }
0x1b21   :  { %15214 = vmatpush3.bf16.msra.mxu1 %v18614_v0  ;;  %14297 = vmatprep.mubr.msk.f32.mxu1 %vm15875_vm3, %v15876_v37 }
0x1b22   :  { %15215 = vmatprep.subr.bf16.mxu1 %v15874_v8 }
0x1b25   :  { %15217 = vmatpush3.bf16.msra.mxu1 %v18618_v35 }
0x1b28   :  { %14298 = vmatmul.mubr.f32.vlgmr.msra.gmra.mrb[42].mxu1 %v10655_v27 }
0x1bfb   :  { %v11067_v2 = vpop.f32.mrb[42].mxu1 }
0x1bfc   :  { %v15341_v24 = vadd.f32 %v18765_v52, %v11067_v2  ;;  %v14299_v55 = vpop.f32.mrb[43].mxu1 }
0x1bfe   :  { %v11072_v25 = vrot.slane %v15341_v24, 2 }
0x1c00   :  { %11081 = vrot.lane.b32.xlu0 %v11072_v25, %s15877_s14  ;;  %v11074_v51 = vadd.f32 %v11072_v25, %v18760_v58 }
0x1c02   :  { %v11724_v12 = vmul.f32 -1.442695, %v11074_v51  ;;  %v11725_v51 = vld [vmem:[%s19205_s12] ss:$0 sm:$0xff] }
0x1c04   :  { %15840 = vpow2.f32 %v11724_v12 }
0x1c0e   :  { %v15841_v0 = vpop.eup %15840 }
0x1c0f   :  { %v11078_v18 = vadd.f32 1.0, %v15841_v0 }
0x1c11   :  { %15842 = vrcp.f32 %v11078_v18 }
0x1c1b   :  { %v15843_v37 = vpop.eup %15842 }
0x1c1c   :  { %v11091_v11 = vsub.f32 1.0, %v15843_v37  ;;  %v11099_v23 = vmul.f32 %v15843_v37, %v11097_v47 }
0x1c72   :  { %v11082_v5 = vpop.permute.xlu0 %11081 }
0x1c73   :  { %v11084_v8 = vmul.f32 %v15843_v37, %v11082_v5 }
0x1c75   :  { %11086 = vrot.lane.b32.xlu1 %v11084_v8, %s15877_s14 }
0x1ce7   :  { %v11087_v35 = vpop.permute.xlu1 %11086 }
0x1ce8   :  { %v11089_v41 = vadd.f32 %v11087_v35, %v18760_v58  ;;  %v11147_v58 = vld [vmem:[%s19204_s11 + $0x10] sm:$0xff] }
0x1ce9   :  { %v11173_v21 = vand.u32 4294901760, %v11147_v58 }
0x1cea   :  { %15844 = vtanh.f32 %v11089_v41 }
0x1ceb   :  { %v19160_v45 = vpack.c.bf16 %v11176_v9, %v11173_v21  ;;  %v11271_v44 = vsub.f32 %v11147_v58, %v11173_v21 }
0x1ced   :  { %15223 = vmatprep.subr.bf16.mxu0 %v19160_v45  ;;  %v11272_v60 = vand.u32 4294901760, %v11271_v44  ;;  %v15238_v54 = vpack.c.bf16 %v11278_v13, %v11271_v44 }
0x1cee   :  { %15225 = vmatpush3.bf16.msra.mxu0 %v19160_v45 }
0x1cef   :  { %v11273_v57 = vsub.f32 %v11271_v44, %v11272_v60  ;;  %15227 = vmatprep.subr.bf16.mxu0 %v15226_v6  ;;  %v15254_v47 = vpack.c.bf16 %v11279_v50, %v11272_v60 }
0x1cf1   :  { %v11274_v15 = vand.u32 4294901760, %v11273_v57 }
0x1cf3   :  { %v15230_v43 = vpack.c.bf16 %v11281_v48, %v11274_v15 }
0x1cf4   :  { %v15845_v52 = vpop.eup %15844 }
0x1cf5   :  { %11093 = vrot.lane.b32.xlu0 %v15845_v52, %s15878_s10 }
0x1d67   :  { %v11094_v32 = vpop.permute.xlu0 %11093 }
0x1d68   :  { %v11096_v39 = vmul.f32 %v11094_v32, %v11091_v11 }
0x1d6a   :  { %v11100_v26 = vadd.f32 %v11099_v23, %v11096_v39 }
0x1d6c   :  { %v11112_v61 = vrot.slane %v11100_v26, 7  ;;  %v11144_v42 = vsel %vm11136_vm9, %v19099_v30, %v11100_v26 }
0x1d6d   :  { %11160 = vrot.lane.b32.xlu0 %v11144_v42, %s15878_s10 }
0x1d6e   :  { %v11137_v29 = vsel %vm11136_vm9, %v19104_v40, %v11112_v61 }
0x1d6f   :  { %11158 = vrot.lane.b32.xlu1 %v11137_v29, %s15878_s10 }
0x1ddf   :  { %v11161_v33 = vpop.permute.xlu0 %11160 }
0x1de0   :  { %v11164_v30 = vsel %vm5349_vm2, %v11161_v33, 0 }
0x1de1   :  { %v11245_v40 = vand.u32 4294901760, %v11164_v30  ;;  %v11159_v46 = vpop.permute.xlu1 %11158 }
0x1de2   :  { %v11162_v16 = vsel %vm5349_vm2, %v11159_v46, 0 }
0x1de3   :  { %v11246_v27 = vsub.f32 %v11164_v30, %v11245_v40  ;;  %v11235_v19 = vand.u32 4294901760, %v11162_v16 }
0x1de5   :  { %v11247_v53 = vand.u32 4294901760, %v11246_v27  ;;  %v11236_v4 = vsub.f32 %v11162_v16, %v11235_v19 }
0x1de7   :  { %v11237_v36 = vand.u32 4294901760, %v11236_v4  ;;  %v11248_v2 = vsub.f32 %v11246_v27, %v11247_v53 }
0x1de9   :  { %v11238_v24 = vsub.f32 %v11236_v4, %v11237_v36  ;;  %v11249_v25 = vand.u32 4294901760, %v11248_v2 }
0x1deb   :  { %v11239_v55 = vand.u32 4294901760, %v11238_v24 }
0x1ded   :  { %14308 = vmatprep.mubr.f32.mxu0 %v11239_v55 }
0x1dee   :  { %14309 = vmatmul.mubr.f32.vlgmr.msra.gmra.mrb[66].mxu0 %v11249_v25 }
0x1def   :  { %15229 = vmatpush3.bf16.msra.mxu0 %v15226_v6  ;;  %14319 = vmatprep.mubr.f32.mxu0 %v11235_v19 }
0x1df0   :  { %15231 = vmatprep.subr.bf16.mxu0 %v15230_v43 }
0x1df3   :  { %15233 = vmatpush3.bf16.msra.mxu0 %v15230_v43 }
0x1df4   :  { %15235 = vmatprep.subr.bf16.mxu0 %v15234_v14 }
0x1df6   :  { %14320 = vmatmul.mubr.f32.vlgmr.msra.gmra.mrb[66].mxu0 %v11245_v40 }
0x1df7   :  { %15237 = vmatpush3.bf16.msra.mxu0 %v15234_v14  ;;  %14330 = vmatprep.mubr.f32.mxu0 %v11236_v4 }
0x1df8   :  { %15239 = vmatprep.subr.bf16.mxu0 %v15238_v54 }
0x1dfb   :  { %15241 = vmatpush3.bf16.msra.mxu0 %v15238_v54 }
0x1dfc   :  { %15243 = vmatprep.subr.bf16.mxu0 %v19157_v28 }
0x1dfe   :  { %14331 = vmatmul.mubr.f32.vlgmr.msra.gmra.mrb[66].mxu0 %v11246_v27 }
0x1dff   :  { %15245 = vmatpush3.bf16.msra.mxu0 %v19157_v28  ;;  %14341 = vmatprep.mubr.f32.mxu0 %v11237_v36 }
0x1e00   :  { %15247 = vmatprep.subr.bf16.mxu0 %v19160_v45 }
0x1e03   :  { %15249 = vmatpush3.bf16.msra.mxu0 %v19160_v45 }
0x1e04   :  { %15251 = vmatprep.subr.bf16.mxu0 %v15250_v62 }
0x1e06   :  { %14342 = vmatmul.mubr.f32.vlgmr.msra.gmra.mrb[66].mxu0 %v11247_v53 }
0x1e07   :  { %15253 = vmatpush3.bf16.msra.mxu0 %v15250_v62  ;;  %14352 = vmatprep.mubr.f32.mxu0 %v11235_v19 }
0x1e08   :  { %15255 = vmatprep.subr.bf16.mxu0 %v15254_v47 }
0x1e0b   :  { %15257 = vmatpush3.bf16.msra.mxu0 %v15254_v47 }
0x1e0c   :  { %15259 = vmatprep.subr.bf16.mxu0 %v19157_v28 }
0x1e0e   :  { %14353 = vmatmul.mubr.f32.vlgmr.msra.gmra.mrb[66].mxu0 %v11245_v40 }
0x1e0f   :  { %15261 = vmatpush3.bf16.msra.mxu0 %v19157_v28  ;;  %14363 = vmatprep.mubr.f32.mxu0 %v11235_v19 }
0x1e10   :  { %15263 = vmatprep.subr.bf16.mxu0 %v19160_v45 }
0x1e13   :  { %15265 = vmatpush3.bf16.msra.mxu0 %v19160_v45 }
0x1e16   :  { %14364 = vmatmul.mubr.f32.vlgmr.msra.gmra.mrb[66].mxu0 %v11245_v40 }
0x1ee9   :  { %v14365_v12 = vpop.f32.mrb[66].mxu0 }
0x1eea   :  { %v15342_v0 = vadd.f32 %v14365_v12, %v11725_v51  ;;  %v11684_v18 = vpop.f32.mrb[67].mxu0 }
0x1eeb   :  { %v15343_v37 = vadd.f32 %v11725_v51, %v11684_v18 }
0x1eec   :  { %11696 = vst [vmem:[#allocation2 + $0x8] sm:$0xff] %v15342_v0 }
0x1eed   :  { %11694 = vst [vmem:[#allocation2] sm:$0xff] %v15343_v37 }
0x1eee   :  { %15860 = shalt.err (!%p15857_p4)
}
0x1eef   :  { %s15861_s12 = scalar_lea.hbm %s19206_s13, 256 }
0x1ef0   :  { %p15862_p5 = scmp.ne.s32.totalorder %s19206_s13, %s15861_s12  ;;  %p15865_p6 = scmp.lt.u32.totalorder %s15861_s12, %s19206_s13 }
0x1ef2   :  { %p15867_p7 = pnand %p15865_p6, %p15862_p5 }
0x1ef4   :  { %15870 = shalt.err (!%p15867_p7)
}
0x1ef5   :  { %s15880_s26 = smov 128   ;;  %s15881_s27 = smov 8  }
0x1ef6   :  { %11708 = dma.vmem_to_hbm [thread:$0]  %s11703_s22, 256, %s19206_s13, [#allocation3], %s15880_s26, %s15880_s26, %s15881_s27  }
0x1ef7   :  { %15871 = dma.done.wait [#allocation3], 256  }
0x1ef8   :  { %15872 = vsyncadd [#allocation3], 4294967040 }
0x1ef9   :  { %11712 = vsyncpa [#allocation3], 1 }

</bundles_post_ra>
